<compile_context>
chip_gen: v6e
topology: v6e:2x2x1
jax: 0.10.0
libtpu: 0.0.40
codegen_flags: <defaults>
</compile_context>

<pallas_src>
import jax
import jax.numpy as jnp
from jax.experimental import pallas as pl
from jax.experimental.pallas import tpu as pltpu


def _heads_per_group(num_heads, head_dim):
    """Largest group dividing num_heads whose q/k/v band targets 128 lanes."""
    if head_dim >= 128:
        return 1
    hg = min(num_heads, max(1, 128 // head_dim))
    while num_heads % hg:
        hg -= 1
    return hg


def _bf16_softmax_default():
    """EUP is bf16-native on v6e/v7x (~2x exp throughput); keep f32 elsewhere."""
    try:
        kind = jax.devices()[0].device_kind.lower()
    except Exception:
        return False
    return ("v6" in kind) or ("v7" in kind)


def _vmem_cap_bytes():
    """Generation-aware scoped-VMEM request cap (~0.75x physical VMEM)."""
    try:
        info = pltpu.get_tpu_info()
        return max(int(info.vmem_capacity_bytes * 0.75), 16 * 2 ** 20)
    except Exception:
        return 48 * 2 ** 20        # safe on every generation (v7x physical = 64 MiB)


def _vmem_limit_bytes(Tp, E, band, hg, num_groups, in_bytes, out_bytes,
                      attnw_bytes, mask_mode, with_pos, with_attn):
    est = 2 * Tp * E * in_bytes                          # hidden block (double-buffered)
    if with_pos:
        est += 2 * Tp * E * in_bytes                     # position embeddings block
    if mask_mode == "full":
        est += 2 * Tp * Tp * 4                           # dense additive mask
    elif mask_mode == "row":
        est += 2 * Tp * 4                                # key-padding row
    est += 2 * (E * 3 * band * 2 + 3 * band * 4)         # per-group qkv slab + bias
    est += 2 * (E * E * 2 + E * 4)                       # full out-proj weight + bias
    est += 2 * Tp * E * out_bytes                        # attn_output block
    if with_attn:
        est += 2 * hg * Tp * Tp * attnw_bytes            # attn_weights block
    if num_groups > 1:
        est += 2 * Tp * E * 2                            # bf16 x / ctx scratches
    est += Tp * 3 * band * 4 + 6 * Tp * Tp * 4           # qkv + score/exp temporaries
    return int(min(max(2 * est, 16 * 2 ** 20), _vmem_cap_bytes()))


def _make_kernel(num_groups, heads_per_group, head_dim, band, mask_mode,
                 with_pos, with_attn, exp_dtype):
    Dh = head_dim

    def kernel(*refs):
        it = iter(refs)
        h_ref = next(it)
        pos_ref = next(it) if with_pos else None
        mask_ref = next(it) if mask_mode != "none" else None
        wqkv_ref = next(it)
        bqkv_ref = next(it)
        wo_ref = next(it)
        bo_ref = next(it)
        out_ref = next(it)
        attnw_ref = next(it) if with_attn else None
        if num_groups > 1:
            x_scr = next(it)      # (Tp, E) bf16 : hidden + pos, reused across groups
            ctx_scr = next(it)    # (Tp, E) bf16 : per-head context bands

        g = pl.program_id(1)

        if num_groups > 1:
            @pl.when(g == 0)
            def _prep():
                x0 = h_ref[0]
                if with_pos:
                    x0 = x0 + pos_ref[0]
                x_scr[...] = x0.astype(x_scr.dtype)

            x = x_scr[...]
        else:
            x0 = h_ref[0]
            if with_pos:
                x0 = x0 + pos_ref[0]
            x = x0.astype(jnp.bfloat16)

        # Fused per-group q/k/v projection: (Tp, E) @ (E, 3*band), K = E (full MXU
        # depth), lane-dense output.  Band slices below are 128-lane aligned views.
        qkv = (jnp.dot(x, wqkv_ref[0], preferred_element_type=jnp.float32)
               + bqkv_ref[0]).astype(jnp.bfloat16)                   # (Tp, 3*band)
        qb = qkv[:, 0 * band:1 * band]
        kb = qkv[:, 1 * band:2 * band]
        vb = qkv[:, 2 * band:3 * band]

        m = mask_ref[...] if mask_mode != "none" else None

        ctx_parts = []
        for j in range(heads_per_group):
            qj = qb[:, j * Dh:(j + 1) * Dh]
            kj = kb[:, j * Dh:(j + 1) * Dh]
            vj = vb[:, j * Dh:(j + 1) * Dh]

            # scores: contract the last axis of both operands (no K transpose).
            # NOTE: the reference forward never applies self.scaling.
            s = jax.lax.dot_general(qj, kj, (((1,), (1,)), ((), ())),
                                    preferred_element_type=jnp.float32)  # (Tp, Tp)
            if m is not None:
                s = s + m
            s = s - jnp.max(s, axis=-1, keepdims=True)
            e = jnp.exp(s.astype(exp_dtype))
            denom = jnp.sum(e, axis=-1, keepdims=True, dtype=jnp.float32)
            inv = pl.reciprocal(denom, approx=True)                  # EUP slot

            if with_attn:
                p = e * inv.astype(exp_dtype)
                attnw_ref[0, j] = p.astype(attnw_ref.dtype)
                ctx_j = jnp.dot(p.astype(jnp.bfloat16), vj,
                                preferred_element_type=jnp.float32)  # (Tp, Dh)
            else:
                # skip the (Tp,Tp) normalization pass: scale the small ctx instead.
                ctx_j = jnp.dot(e.astype(jnp.bfloat16), vj,
                                preferred_element_type=jnp.float32) * inv
            ctx_parts.append(ctx_j.astype(jnp.bfloat16))

        band_ctx = (ctx_parts[0] if len(ctx_parts) == 1
                    else jnp.concatenate(ctx_parts, axis=-1))        # (Tp, band)

        if num_groups == 1:
            out = jnp.dot(band_ctx, wo_ref[...],
                          preferred_element_type=jnp.float32) + bo_ref[...]
            out_ref[0] = out.astype(out_ref.dtype)
        else:
            # lane-aligned (multiple-of-128) static-offset band store per group.
            for gg in range(num_groups):
                @pl.when(g == gg)
                def _store(gg=gg):
                    ctx_scr[:, gg * band:(gg + 1) * band] = band_ctx

            @pl.when(g == num_groups - 1)
            def _finalize():
                # single full-K out-projection: (Tp, E) @ (E, E)
                out = jnp.dot(ctx_scr[...], wo_ref[...],
                              preferred_element_type=jnp.float32) + bo_ref[...]
                out_ref[0] = out.astype(out_ref.dtype)

    return kernel


def mha_forward(hidden_states, w_qkv, b_qkv, w_out, b_out, num_heads,
                attention_mask=None, position_embeddings=None,
                output_attentions=False, attn_weights_dtype=None,
                bf16_softmax=None):
    """hidden_states/position_embeddings: (B, T, E); w_qkv: (3E, E); w_out: (E, E)
    in PyTorch Linear layout.  attention_mask: optional (T, T) additive float mask
    shared across batch/heads (module's expand-to-(B,1,T,S) semantics)."""
    B, T, E = hidden_states.shape
    H = num_heads
    Dh = E // H
    assert Dh * H == E, "embed_dim must be divisible by num_heads"

    hg = _heads_per_group(H, Dh)
    HG = H // hg
    band = hg * Dh
    Tp = ((T + 127) // 128) * 128
    pad = Tp - T

    if bf16_softmax is None:
        bf16_softmax = _bf16_softmax_default()
    exp_dtype = jnp.bfloat16 if bf16_softmax else jnp.float32

    # ---- wrapper-side weight re-layout (cheap XLA ops, once per call) ----
    wq, wk, wv = w_qkv[:E], w_qkv[E:2 * E], w_qkv[2 * E:]

    def per_group(w):                            # (E_out, E_in) -> (HG, E_in, band)
        return w.reshape(HG, band, E).transpose(0, 2, 1)

    w_slab = jnp.concatenate([per_group(wq), per_group(wk), per_group(wv)],
                             axis=-1).astype(jnp.bfloat16)           # (HG, E, 3*band)
    bq, bk, bv = b_qkv[:E], b_qkv[E:2 * E], b_qkv[2 * E:]
    b_slab = jnp.concatenate(
        [bq.reshape(HG, 1, band), bk.reshape(HG, 1, band), bv.reshape(HG, 1, band)],
        axis=-1).astype(jnp.float32)                                 # (HG, 1, 3*band)
    w_out_t = w_out.T.astype(jnp.bfloat16)                           # (E_in, E_out)
    b_out2 = b_out.reshape(1, E).astype(jnp.float32)

    # ---- pad T to the lane width; assemble inputs / specs ----
    with_pos = position_embeddings is not None
    hidden_p = jnp.pad(hidden_states, ((0, 0), (0, pad), (0, 0))) if pad else hidden_states
    inputs = [hidden_p]
    in_specs = [pl.BlockSpec((1, Tp, E), lambda b, g: (b, 0, 0))]
    if with_pos:
        pos_p = (jnp.pad(position_embeddings, ((0, 0), (0, pad), (0, 0)))
                 if pad else position_embeddings)
        inputs.append(pos_p)
        in_specs.append(pl.BlockSpec((1, Tp, E), lambda b, g: (b, 0, 0)))

    if attention_mask is not None:
        mask_mode = "full"
        mask_p = jnp.zeros((Tp, Tp), jnp.float32)
        mask_p = mask_p.at[:T, :T].set(attention_mask.astype(jnp.float32))
        if pad:
            mask_p = mask_p.at[:, T:].set(jnp.float32(-1e9))
        inputs.append(mask_p)
        in_specs.append(pl.BlockSpec((Tp, Tp), lambda b, g: (0, 0)))
    elif pad:
        mask_mode = "row"                                 # key-padding row only
        mask_row = jnp.where(jnp.arange(Tp)[None, :] < T, 0.0, -1e9).astype(jnp.float32)
        inputs.append(mask_row)
        in_specs.append(pl.BlockSpec((1, Tp), lambda b, g: (0, 0)))
    else:
        mask_mode = "none"                                # no mask HBM read at all

    inputs += [w_slab, b_slab, w_out_t, b_out2]
    in_specs += [
        pl.BlockSpec((1, E, 3 * band), lambda b, g: (g, 0, 0)),   # per-group qkv slab
        pl.BlockSpec((1, 1, 3 * band), lambda b, g: (g, 0, 0)),   # per-group qkv bias
        pl.BlockSpec((E, E), lambda b, g: (0, 0)),                # full out-proj weight
        pl.BlockSpec((1, E), lambda b, g: (0, 0)),                # out-proj bias
    ]

    out_dtype = hidden_states.dtype
    attnw_dtype = out_dtype if attn_weights_dtype is None else attn_weights_dtype

    out_spec_main = pl.BlockSpec((1, Tp, E), lambda b, g: (b, 0, 0))
    out_shape_main = jax.ShapeDtypeStruct((B, Tp, E), out_dtype)
    if output_attentions:
        out_shape = (out_shape_main, jax.ShapeDtypeStruct((B, H, Tp, Tp), attnw_dtype))
        out_specs = [out_spec_main,
                     pl.BlockSpec((1, hg, Tp, Tp), lambda b, g: (b, g, 0, 0))]
    else:
        out_shape = out_shape_main
        out_specs = out_spec_main

    scratch_shapes = []
    if HG > 1:
        scratch_shapes = [pltpu.VMEM((Tp, E), jnp.bfloat16),   # hidden + pos
                          pltpu.VMEM((Tp, E), jnp.bfloat16)]   # per-head ctx bands

    kernel = _make_kernel(HG, hg, Dh, band, mask_mode, with_pos,
                          output_attentions, exp_dtype)

    grid_spec = pltpu.PrefetchScalarGridSpec(
        num_scalar_prefetch=0,
        grid=(B, HG),
        in_specs=in_specs,
        out_specs=out_specs,
        scratch_shapes=scratch_shapes,
    )

    vmem_limit = _vmem_limit_bytes(
        Tp, E, band, hg, HG, jnp.dtype(hidden_states.dtype).itemsize,
        jnp.dtype(out_dtype).itemsize, jnp.dtype(attnw_dtype).itemsize,
        mask_mode, with_pos, output_attentions)

    result = pl.pallas_call(
        kernel,
        out_shape=out_shape,
        grid_spec=grid_spec,
        compiler_params=pltpu.CompilerParams(
            dimension_semantics=("parallel", "arbitrary"),
            vmem_limit_bytes=vmem_limit),
    )(*inputs)

    if output_attentions:
        out_p, attnw_p = result
        return out_p[:, :T, :], attnw_p[:, :, :T, :T]
    return result[:, :T, :], None


def _reference(hidden, pos, mask, w_qkv, b_qkv, w_out, b_out, num_heads):
    """Pure-JAX f32 reference of the intended forward pass."""
    B, T, E = hidden.shape
    Dh = E // num_heads
    x = hidden if pos is None else hidden + pos
    qkv = x @ w_qkv.T + b_qkv
    q, k, v = jnp.split(qkv, 3, axis=-1)

    def to_heads(t):
        return t.reshape(B, T, num_heads, Dh).transpose(0, 2, 1, 3)

    qh, kh, vh = to_heads(q), to_heads(k), to_heads(v)
    s = jnp.einsum('bhtd,bhsd->bhts', qh, kh)
    if mask is not None:
        s = s + mask[None, None]
    p = jax.nn.softmax(s, axis=-1)
    o = jnp.einsum('bhts,bhsd->bhtd', p, vh)
    o = o.transpose(0, 2, 1, 3).reshape(B, T, E)
    return o @ w_out.T + b_out, p


if __name__ == "__main__":
    def run_case(B, T, E, H, use_mask, use_pos, output_attentions):
        key = jax.random.PRNGKey(0)
        ks = jax.random.split(key, 7)
        bound = 1.0 / (E ** 0.5)
        w_qkv = jax.random.uniform(ks[0], (3 * E, E), jnp.float32, -bound, bound)
        b_qkv = jax.random.uniform(ks[1], (3 * E,), jnp.float32, -bound, bound)
        w_out = jax.random.uniform(ks[2], (E, E), jnp.float32, -bound, bound)
        b_out = jax.random.uniform(ks[3], (E,), jnp.float32, -bound, bound)
        hidden = jax.random.normal(ks[4], (B, T, E), jnp.float32)
        pos = jax.random.normal(ks[5], (B, T, E), jnp.float32) if use_pos else None
        mask = (jnp.where(jax.random.uniform(ks[6], (T, T)) < 0.15, -1e9, 0.0)
                .astype(jnp.float32) if use_mask else None)

        out, attnw = mha_forward(hidden, w_qkv, b_qkv, w_out, b_out, H,
                                 attention_mask=mask, position_embeddings=pos,
                                 output_attentions=output_attentions)
        jax.block_until_ready(out)
        ref_out, ref_w = _reference(hidden, pos, mask, w_qkv, b_qkv, w_out, b_out, H)
        # tolerances relaxed: bf16 MXU operands (f32 accumulate), approx reciprocal,
        # optional bf16 exp on v6e/v7x.
        assert jnp.allclose(out, ref_out, atol=5e-2, rtol=5e-2), "attn_output mismatch"
        if output_attentions:
            jax.block_until_ready(attnw)
            assert jnp.allclose(attnw.astype(jnp.float32), ref_w,
                                atol=5e-2, rtol=5e-2), "attn_weights mismatch"
        else:
            assert attnw is None

    # dense additive mask + pos, attention-weights writeback, single head group
    run_case(B=2, T=8, E=32, H=4, use_mask=True, use_pos=True, output_attentions=True)
    # same config, no attn-weights HBM writeback / no (Tp,Tp) normalization pass
    run_case(B=2, T=8, E=32, H=4, use_mask=True, use_pos=True, output_attentions=False)
    # RT-DETR-like config: E=256, H=8 (Dh=32 -> 4 heads/group, 2 groups), no user mask
    # -> (1, Tp) key-padding row, fused full-K out-projection across groups
    run_case(B=1, T=16, E=256, H=8, use_mask=False, use_pos=True, output_attentions=False)

    print("KERNEL_OK")
</pallas_src>

<mosaic_0001>
module attributes {stable_mosaic.version = 11 : i64} {
  func.func @kernel(%arg0: i32, %arg1: i32, %arg2: memref<1x128x32xf32, #tpu.memory_space<vmem>>, %arg3: memref<1x128x32xf32, #tpu.memory_space<vmem>>, %arg4: memref<128x128xf32, #tpu.memory_space<vmem>>, %arg5: memref<1x32x96xbf16, #tpu.memory_space<vmem>>, %arg6: memref<1x1x96xf32, #tpu.memory_space<vmem>>, %arg7: memref<32x32xbf16, #tpu.memory_space<vmem>>, %arg8: memref<1x32xf32, #tpu.memory_space<vmem>>, %arg9: memref<1x128x32xf32, #tpu.memory_space<vmem>>, %arg10: memref<1x4x128x128xf32, #tpu.memory_space<vmem>>) attributes {dimension_semantics = [#tpu.dimension_semantics<parallel>, #tpu.dimension_semantics<arbitrary>], iteration_bounds = array<i64: 2, 1>, scalar_prefetch = 0 : i64, scratch_operands = 0 : i64, tpu.core_type = #tpu.core_type<tc>, window_params = [{transform_indices = @transform_0, window_bounds = array<i64: 1, 128, 32>}, {transform_indices = @transform_1, window_bounds = array<i64: 1, 128, 32>}, {pipeline_mode = #tpu.pipeline_mode<synchronous>, transform_indices = @transform_2, window_bounds = array<i64: 128, 128>}, {transform_indices = @transform_3, window_bounds = array<i64: 1, 32, 96>}, {transform_indices = @transform_4, window_bounds = array<i64: 1, 1, 96>}, {pipeline_mode = #tpu.pipeline_mode<synchronous>, transform_indices = @transform_5, window_bounds = array<i64: 32, 32>}, {pipeline_mode = #tpu.pipeline_mode<synchronous>, transform_indices = @transform_6, window_bounds = array<i64: 1, 32>}, {transform_indices = @transform_7, window_bounds = array<i64: 1, 128, 32>}, {transform_indices = @transform_8, window_bounds = array<i64: 1, 4, 128, 128>}]} {
    %c0 = arith.constant 0 : index
    %c0_0 = arith.constant 0 : index
    %c0_1 = arith.constant 0 : index
    %0 = vector.load %arg2[%c0, %c0_0, %c0_1] : memref<1x128x32xf32, #tpu.memory_space<vmem>>, vector<1x128x32xf32>
    %1 = vector.shape_cast %0 : vector<1x128x32xf32> to vector<128x32xf32>
    %c0_2 = arith.constant 0 : index
    %c0_3 = arith.constant 0 : index
    %c0_4 = arith.constant 0 : index
    %2 = vector.load %arg3[%c0_2, %c0_3, %c0_4] : memref<1x128x32xf32, #tpu.memory_space<vmem>>, vector<1x128x32xf32>
    %3 = vector.shape_cast %2 : vector<1x128x32xf32> to vector<128x32xf32>
    %4 = arith.addf %1, %3 : vector<128x32xf32>
    %5 = arith.truncf %4 : vector<128x32xf32> to vector<128x32xbf16>
    %c0_5 = arith.constant 0 : index
    %c0_6 = arith.constant 0 : index
    %c0_7 = arith.constant 0 : index
    %6 = vector.load %arg5[%c0_5, %c0_6, %c0_7] : memref<1x32x96xbf16, #tpu.memory_space<vmem>>, vector<1x32x96xbf16>
    %7 = vector.shape_cast %6 : vector<1x32x96xbf16> to vector<32x96xbf16>
    %cst = arith.constant dense<0.000000e+00> : vector<128x96xf32>
    %8 = tpu.matmul %5, %7, %cst {dimension_numbers = #tpu.dot_dimension_numbers<[1], [0], [0], [1], [0, 0, 1, 1], [], []>} : vector<128x32xbf16>, vector<32x96xbf16>, vector<128x96xf32> -> vector<128x96xf32>
    %c0_8 = arith.constant 0 : index
    %c0_9 = arith.constant 0 : index
    %c0_10 = arith.constant 0 : index
    %9 = vector.load %arg6[%c0_8, %c0_9, %c0_10] : memref<1x1x96xf32, #tpu.memory_space<vmem>>, vector<1x1x96xf32>
    %10 = vector.shape_cast %9 : vector<1x1x96xf32> to vector<1x96xf32>
    %11 = vector.broadcast %10 : vector<1x96xf32> to vector<128x96xf32>
    %12 = arith.addf %8, %11 : vector<128x96xf32>
    %13 = arith.truncf %12 : vector<128x96xf32> to vector<128x96xbf16>
    %14 = vector.extract_strided_slice %13 {offsets = [0, 0], sizes = [128, 32], strides = [1, 1]} : vector<128x96xbf16> to vector<128x32xbf16>
    %15 = vector.extract_strided_slice %13 {offsets = [0, 32], sizes = [128, 32], strides = [1, 1]} : vector<128x96xbf16> to vector<128x32xbf16>
    %16 = vector.extract_strided_slice %13 {offsets = [0, 64], sizes = [128, 32], strides = [1, 1]} : vector<128x96xbf16> to vector<128x32xbf16>
    %c0_11 = arith.constant 0 : index
    %c0_12 = arith.constant 0 : index
    %17 = vector.load %arg4[%c0_11, %c0_12] : memref<128x128xf32, #tpu.memory_space<vmem>>, vector<128x128xf32>
    %18 = vector.extract_strided_slice %14 {offsets = [0, 0], sizes = [128, 8], strides = [1, 1]} : vector<128x32xbf16> to vector<128x8xbf16>
    %19 = vector.extract_strided_slice %15 {offsets = [0, 0], sizes = [128, 8], strides = [1, 1]} : vector<128x32xbf16> to vector<128x8xbf16>
    %20 = vector.extract_strided_slice %16 {offsets = [0, 0], sizes = [128, 8], strides = [1, 1]} : vector<128x32xbf16> to vector<128x8xbf16>
    %cst_13 = arith.constant dense<0.000000e+00> : vector<128x128xf32>
    %21 = tpu.matmul %18, %19, %cst_13 {dimension_numbers = #tpu.dot_dimension_numbers<[1], [1], [0], [0], [0, 0, 1, 0], [], []>} : vector<128x8xbf16>, vector<128x8xbf16>, vector<128x128xf32> -> vector<128x128xf32>
    %22 = arith.addf %21, %17 : vector<128x128xf32>
    %cst_14 = arith.constant dense<0xFF800000> : vector<128xf32>
    %23 = vector.multi_reduction <maximumf>, %22, %cst_14 [1] : vector<128x128xf32> to vector<128xf32>
    %24 = vector.shape_cast %23 : vector<128xf32> to vector<128x1xf32>
    %25 = vector.broadcast %24 : vector<128x1xf32> to vector<128x128xf32>
    %26 = arith.subf %22, %25 : vector<128x128xf32>
    %27 = math.exp %26 : vector<128x128xf32>
    %cst_15 = arith.constant dense<0.000000e+00> : vector<128xf32>
    %28 = vector.multi_reduction <add>, %27, %cst_15 [1] : vector<128x128xf32> to vector<128xf32>
    %29 = vector.shape_cast %28 : vector<128xf32> to vector<128x1xf32>
    %30 = tpu.reciprocal %29 {approx = true} : vector<128x1xf32> -> vector<128x1xf32>
    %31 = vector.broadcast %30 : vector<128x1xf32> to vector<128x128xf32>
    %32 = arith.mulf %27, %31 : vector<128x128xf32>
    %c0_16 = arith.constant 0 : index
    %c0_17 = arith.constant 0 : index
    %c0_18 = arith.constant 0 : index
    %c0_19 = arith.constant 0 : index
    %33 = vector.load %arg10[%c0_16, %c0_17, %c0_18, %c0_19] : memref<1x4x128x128xf32, #tpu.memory_space<vmem>>, vector<1x1x128x128xf32>
    %34 = vector.shape_cast %33 : vector<1x1x128x128xf32> to vector<128x128xf32>
    %35 = vector.shape_cast %32 : vector<128x128xf32> to vector<1x1x128x128xf32>
    tpu.vector_store %arg10[%c0_16, %c0_17, %c0_18, %c0_19], %35 {strides = array<i32>} : memref<1x4x128x128xf32, #tpu.memory_space<vmem>>, vector<1x1x128x128xf32>,
    %36 = arith.truncf %32 : vector<128x128xf32> to vector<128x128xbf16>
    %cst_20 = arith.constant dense<0.000000e+00> : vector<128x8xf32>
    %37 = tpu.matmul %36, %20, %cst_20 {dimension_numbers = #tpu.dot_dimension_numbers<[1], [0], [0], [1], [0, 0, 1, 1], [], []>} : vector<128x128xbf16>, vector<128x8xbf16>, vector<128x8xf32> -> vector<128x8xf32>
    %38 = arith.truncf %37 : vector<128x8xf32> to vector<128x8xbf16>
    %39 = vector.extract_strided_slice %14 {offsets = [0, 8], sizes = [128, 8], strides = [1, 1]} : vector<128x32xbf16> to vector<128x8xbf16>
    %40 = vector.extract_strided_slice %15 {offsets = [0, 8], sizes = [128, 8], strides = [1, 1]} : vector<128x32xbf16> to vector<128x8xbf16>
    %41 = vector.extract_strided_slice %16 {offsets = [0, 8], sizes = [128, 8], strides = [1, 1]} : vector<128x32xbf16> to vector<128x8xbf16>
    %cst_21 = arith.constant dense<0.000000e+00> : vector<128x128xf32>
    %42 = tpu.matmul %39, %40, %cst_21 {dimension_numbers = #tpu.dot_dimension_numbers<[1], [1], [0], [0], [0, 0, 1, 0], [], []>} : vector<128x8xbf16>, vector<128x8xbf16>, vector<128x128xf32> -> vector<128x128xf32>
    %43 = arith.addf %42, %17 : vector<128x128xf32>
    %cst_22 = arith.constant dense<0xFF800000> : vector<128xf32>
    %44 = vector.multi_reduction <maximumf>, %43, %cst_22 [1] : vector<128x128xf32> to vector<128xf32>
    %45 = vector.shape_cast %44 : vector<128xf32> to vector<128x1xf32>
    %46 = vector.broadcast %45 : vector<128x1xf32> to vector<128x128xf32>
    %47 = arith.subf %43, %46 : vector<128x128xf32>
    %48 = math.exp %47 : vector<128x128xf32>
    %cst_23 = arith.constant dense<0.000000e+00> : vector<128xf32>
    %49 = vector.multi_reduction <add>, %48, %cst_23 [1] : vector<128x128xf32> to vector<128xf32>
    %50 = vector.shape_cast %49 : vector<128xf32> to vector<128x1xf32>
    %51 = tpu.reciprocal %50 {approx = true} : vector<128x1xf32> -> vector<128x1xf32>
    %52 = vector.broadcast %51 : vector<128x1xf32> to vector<128x128xf32>
    %53 = arith.mulf %48, %52 : vector<128x128xf32>
    %c0_24 = arith.constant 0 : index
    %c1 = arith.constant 1 : index
    %c0_25 = arith.constant 0 : index
    %c0_26 = arith.constant 0 : index
    %54 = vector.load %arg10[%c0_24, %c1, %c0_25, %c0_26] : memref<1x4x128x128xf32, #tpu.memory_space<vmem>>, vector<1x1x128x128xf32>
    %55 = vector.shape_cast %54 : vector<1x1x128x128xf32> to vector<128x128xf32>
    %56 = vector.shape_cast %53 : vector<128x128xf32> to vector<1x1x128x128xf32>
    tpu.vector_store %arg10[%c0_24, %c1, %c0_25, %c0_26], %56 {strides = array<i32>} : memref<1x4x128x128xf32, #tpu.memory_space<vmem>>, vector<1x1x128x128xf32>,
    %57 = arith.truncf %53 : vector<128x128xf32> to vector<128x128xbf16>
    %cst_27 = arith.constant dense<0.000000e+00> : vector<128x8xf32>
    %58 = tpu.matmul %57, %41, %cst_27 {dimension_numbers = #tpu.dot_dimension_numbers<[1], [0], [0], [1], [0, 0, 1, 1], [], []>} : vector<128x128xbf16>, vector<128x8xbf16>, vector<128x8xf32> -> vector<128x8xf32>
    %59 = arith.truncf %58 : vector<128x8xf32> to vector<128x8xbf16>
    %60 = vector.extract_strided_slice %14 {offsets = [0, 16], sizes = [128, 8], strides = [1, 1]} : vector<128x32xbf16> to vector<128x8xbf16>
    %61 = vector.extract_strided_slice %15 {offsets = [0, 16], sizes = [128, 8], strides = [1, 1]} : vector<128x32xbf16> to vector<128x8xbf16>
    %62 = vector.extract_strided_slice %16 {offsets = [0, 16], sizes = [128, 8], strides = [1, 1]} : vector<128x32xbf16> to vector<128x8xbf16>
    %cst_28 = arith.constant dense<0.000000e+00> : vector<128x128xf32>
    %63 = tpu.matmul %60, %61, %cst_28 {dimension_numbers = #tpu.dot_dimension_numbers<[1], [1], [0], [0], [0, 0, 1, 0], [], []>} : vector<128x8xbf16>, vector<128x8xbf16>, vector<128x128xf32> -> vector<128x128xf32>
    %64 = arith.addf %63, %17 : vector<128x128xf32>
    %cst_29 = arith.constant dense<0xFF800000> : vector<128xf32>
    %65 = vector.multi_reduction <maximumf>, %64, %cst_29 [1] : vector<128x128xf32> to vector<128xf32>
    %66 = vector.shape_cast %65 : vector<128xf32> to vector<128x1xf32>
    %67 = vector.broadcast %66 : vector<128x1xf32> to vector<128x128xf32>
    %68 = arith.subf %64, %67 : vector<128x128xf32>
    %69 = math.exp %68 : vector<128x128xf32>
    %cst_30 = arith.constant dense<0.000000e+00> : vector<128xf32>
    %70 = vector.multi_reduction <add>, %69, %cst_30 [1] : vector<128x128xf32> to vector<128xf32>
    %71 = vector.shape_cast %70 : vector<128xf32> to vector<128x1xf32>
    %72 = tpu.reciprocal %71 {approx = true} : vector<128x1xf32> -> vector<128x1xf32>
    %73 = vector.broadcast %72 : vector<128x1xf32> to vector<128x128xf32>
    %74 = arith.mulf %69, %73 : vector<128x128xf32>
    %c0_31 = arith.constant 0 : index
    %c2 = arith.constant 2 : index
    %c0_32 = arith.constant 0 : index
    %c0_33 = arith.constant 0 : index
    %75 = vector.load %arg10[%c0_31, %c2, %c0_32, %c0_33] : memref<1x4x128x128xf32, #tpu.memory_space<vmem>>, vector<1x1x128x128xf32>
    %76 = vector.shape_cast %75 : vector<1x1x128x128xf32> to vector<128x128xf32>
    %77 = vector.shape_cast %74 : vector<128x128xf32> to vector<1x1x128x128xf32>
    tpu.vector_store %arg10[%c0_31, %c2, %c0_32, %c0_33], %77 {strides = array<i32>} : memref<1x4x128x128xf32, #tpu.memory_space<vmem>>, vector<1x1x128x128xf32>,
    %78 = arith.truncf %74 : vector<128x128xf32> to vector<128x128xbf16>
    %cst_34 = arith.constant dense<0.000000e+00> : vector<128x8xf32>
    %79 = tpu.matmul %78, %62, %cst_34 {dimension_numbers = #tpu.dot_dimension_numbers<[1], [0], [0], [1], [0, 0, 1, 1], [], []>} : vector<128x128xbf16>, vector<128x8xbf16>, vector<128x8xf32> -> vector<128x8xf32>
    %80 = arith.truncf %79 : vector<128x8xf32> to vector<128x8xbf16>
    %81 = vector.extract_strided_slice %14 {offsets = [0, 24], sizes = [128, 8], strides = [1, 1]} : vector<128x32xbf16> to vector<128x8xbf16>
    %82 = vector.extract_strided_slice %15 {offsets = [0, 24], sizes = [128, 8], strides = [1, 1]} : vector<128x32xbf16> to vector<128x8xbf16>
    %83 = vector.extract_strided_slice %16 {offsets = [0, 24], sizes = [128, 8], strides = [1, 1]} : vector<128x32xbf16> to vector<128x8xbf16>
    %cst_35 = arith.constant dense<0.000000e+00> : vector<128x128xf32>
    %84 = tpu.matmul %81, %82, %cst_35 {dimension_numbers = #tpu.dot_dimension_numbers<[1], [1], [0], [0], [0, 0, 1, 0], [], []>} : vector<128x8xbf16>, vector<128x8xbf16>, vector<128x128xf32> -> vector<128x128xf32>
    %85 = arith.addf %84, %17 : vector<128x128xf32>
    %cst_36 = arith.constant dense<0xFF800000> : vector<128xf32>
    %86 = vector.multi_reduction <maximumf>, %85, %cst_36 [1] : vector<128x128xf32> to vector<128xf32>
    %87 = vector.shape_cast %86 : vector<128xf32> to vector<128x1xf32>
    %88 = vector.broadcast %87 : vector<128x1xf32> to vector<128x128xf32>
    %89 = arith.subf %85, %88 : vector<128x128xf32>
    %90 = math.exp %89 : vector<128x128xf32>
    %cst_37 = arith.constant dense<0.000000e+00> : vector<128xf32>
    %91 = vector.multi_reduction <add>, %90, %cst_37 [1] : vector<128x128xf32> to vector<128xf32>
    %92 = vector.shape_cast %91 : vector<128xf32> to vector<128x1xf32>
    %93 = tpu.reciprocal %92 {approx = true} : vector<128x1xf32> -> vector<128x1xf32>
    %94 = vector.broadcast %93 : vector<128x1xf32> to vector<128x128xf32>
    %95 = arith.mulf %90, %94 : vector<128x128xf32>
    %c0_38 = arith.constant 0 : index
    %c3 = arith.constant 3 : index
    %c0_39 = arith.constant 0 : index
    %c0_40 = arith.constant 0 : index
    %96 = vector.load %arg10[%c0_38, %c3, %c0_39, %c0_40] : memref<1x4x128x128xf32, #tpu.memory_space<vmem>>, vector<1x1x128x128xf32>
    %97 = vector.shape_cast %96 : vector<1x1x128x128xf32> to vector<128x128xf32>
    %98 = vector.shape_cast %95 : vector<128x128xf32> to vector<1x1x128x128xf32>
    tpu.vector_store %arg10[%c0_38, %c3, %c0_39, %c0_40], %98 {strides = array<i32>} : memref<1x4x128x128xf32, #tpu.memory_space<vmem>>, vector<1x1x128x128xf32>,
    %99 = arith.truncf %95 : vector<128x128xf32> to vector<128x128xbf16>
    %cst_41 = arith.constant dense<0.000000e+00> : vector<128x8xf32>
    %100 = tpu.matmul %99, %83, %cst_41 {dimension_numbers = #tpu.dot_dimension_numbers<[1], [0], [0], [1], [0, 0, 1, 1], [], []>} : vector<128x128xbf16>, vector<128x8xbf16>, vector<128x8xf32> -> vector<128x8xf32>
    %101 = arith.truncf %100 : vector<128x8xf32> to vector<128x8xbf16>
    %102 = tpu.concatenate %38, %59, %80, %101 in 1 : vector<128x8xbf16>, vector<128x8xbf16>, vector<128x8xbf16>, vector<128x8xbf16> -> vector<128x32xbf16>
    %c0_42 = arith.constant 0 : index
    %c0_43 = arith.constant 0 : index
    %103 = vector.load %arg7[%c0_42, %c0_43] : memref<32x32xbf16, #tpu.memory_space<vmem>>, vector<32x32xbf16>
    %cst_44 = arith.constant dense<0.000000e+00> : vector<128x32xf32>
    %104 = tpu.matmul %102, %103, %cst_44 {dimension_numbers = #tpu.dot_dimension_numbers<[1], [0], [0], [1], [0, 0, 1, 1], [], []>} : vector<128x32xbf16>, vector<32x32xbf16>, vector<128x32xf32> -> vector<128x32xf32>
    %c0_45 = arith.constant 0 : index
    %c0_46 = arith.constant 0 : index
    %105 = vector.load %arg8[%c0_45, %c0_46] : memref<1x32xf32, #tpu.memory_space<vmem>>, vector<1x32xf32>
    %106 = vector.broadcast %105 : vector<1x32xf32> to vector<128x32xf32>
    %107 = arith.addf %104, %106 : vector<128x32xf32>
    %c0_47 = arith.constant 0 : index
    %c0_48 = arith.constant 0 : index
    %c0_49 = arith.constant 0 : index
    %108 = vector.load %arg9[%c0_47, %c0_48, %c0_49] : memref<1x128x32xf32, #tpu.memory_space<vmem>>, vector<1x128x32xf32>
    %109 = vector.shape_cast %108 : vector<1x128x32xf32> to vector<128x32xf32>
    %110 = vector.shape_cast %107 : vector<128x32xf32> to vector<1x128x32xf32>
    tpu.vector_store %arg9[%c0_47, %c0_48, %c0_49], %110 {strides = array<i32>} : memref<1x128x32xf32, #tpu.memory_space<vmem>>, vector<1x128x32xf32>,
    return
  }
  func.func @transform_0(%arg0: i32, %arg1: i32) -> (i32, i32, i32) {
    %c0_i32 = arith.constant 0 : i32
    %c0_i32_0 = arith.constant 0 : i32
    %c0_i32_1 = arith.constant 0 : i32
    return %arg0, %c0_i32, %c0_i32_0 : i32, i32, i32
  }
  func.func @transform_1(%arg0: i32, %arg1: i32) -> (i32, i32, i32) {
    %c0_i32 = arith.constant 0 : i32
    %c0_i32_0 = arith.constant 0 : i32
    %c0_i32_1 = arith.constant 0 : i32
    return %arg0, %c0_i32, %c0_i32_0 : i32, i32, i32
  }
  func.func @transform_2(%arg0: i32, %arg1: i32) -> (i32, i32) {
    %c0_i32 = arith.constant 0 : i32
    %c0_i32_0 = arith.constant 0 : i32
    %c0_i32_1 = arith.constant 0 : i32
    return %c0_i32, %c0_i32_0 : i32, i32
  }
  func.func @transform_3(%arg0: i32, %arg1: i32) -> (i32, i32, i32) {
    %c0_i32 = arith.constant 0 : i32
    %c0_i32_0 = arith.constant 0 : i32
    %c0_i32_1 = arith.constant 0 : i32
    return %arg1, %c0_i32, %c0_i32_0 : i32, i32, i32
  }
  func.func @transform_4(%arg0: i32, %arg1: i32) -> (i32, i32, i32) {
    %c0_i32 = arith.constant 0 : i32
    %c0_i32_0 = arith.constant 0 : i32
    %c0_i32_1 = arith.constant 0 : i32
    return %arg1, %c0_i32, %c0_i32_0 : i32, i32, i32
  }
  func.func @transform_5(%arg0: i32, %arg1: i32) -> (i32, i32) {
    %c0_i32 = arith.constant 0 : i32
    %c0_i32_0 = arith.constant 0 : i32
    %c0_i32_1 = arith.constant 0 : i32
    return %c0_i32, %c0_i32_0 : i32, i32
  }
  func.func @transform_6(%arg0: i32, %arg1: i32) -> (i32, i32) {
    %c0_i32 = arith.constant 0 : i32
    %c0_i32_0 = arith.constant 0 : i32
    %c0_i32_1 = arith.constant 0 : i32
    return %c0_i32, %c0_i32_0 : i32, i32
  }
  func.func @transform_7(%arg0: i32, %arg1: i32) -> (i32, i32, i32) {
    %c0_i32 = arith.constant 0 : i32
    %c0_i32_0 = arith.constant 0 : i32
    %c0_i32_1 = arith.constant 0 : i32
    return %arg0, %c0_i32, %c0_i32_0 : i32, i32, i32
  }
  func.func @transform_8(%arg0: i32, %arg1: i32) -> (i32, i32, i32, i32) {
    %c0_i32 = arith.constant 0 : i32
    %c0_i32_0 = arith.constant 0 : i32
    %c0_i32_1 = arith.constant 0 : i32
    return %arg0, %arg1, %c0_i32, %c0_i32_0 : i32, i32, i32, i32
  }
}

</mosaic_0001>

<bundles_post_ra>
// kernel: tpu_custom_call.1
= control target key start
LH: loop header
LB: loop body
LE: loop exit
PB: predicated region body
PF: predicated region fallthrough
CT: control target
= control target key end

     0   :  { %14 = vsyncpa [#allocation3], 0  ;;  %s5583_s0 = inlined_call_operand.vmem [shape: f32[2,128,32], index: 0, kind: input, shape index: {}]   ;;  %s5584_s1 = inlined_call_operand.vmem [shape: f32[2,128,32], index: 1, kind: input, shape index: {}]   ;;  %s5585_s2 = inlined_call_operand.vmem [shape: f32[128,128], index: 2, kind: input, shape index: {}]   ;;  %s5586_s3 = inlined_call_operand.vmem [shape: bf16[1,32,96], index: 3, kind: input, shape index: {}]   ;;  %s5587_s4 = inlined_call_operand.vmem [shape: f32[1,1,96], index: 4, kind: input, shape index: {}]   ;;  %s5588_s5 = inlined_call_operand.vmem [shape: bf16[32,32], index: 5, kind: input, shape index: {}]   ;;  %s5589_s6 = inlined_call_operand.vmem [shape: f32[1,32], index: 6, kind: input, shape index: {}]   ;;  %s5590_s7 = inlined_call_operand.vmem [shape: f32[2,128,32], index: 7, kind: output, shape index: {0}]   ;;  %s5591_s8 = inlined_call_operand.hbm [shape: f32[2,4,128,128], index: 8, kind: output, shape index: {1}]  }
   0x1   :  { %16 = vsyncpa [#allocation3 + $0x1], 0  ;;  %s4050_s27 = smov 0   ;;  %s4052_s28 = smov 0  }
   0x2   :  { %s4054_s29 = smov 0   ;;  %s4056_s30 = smov 0  }
   0x3   :  { %s4058_s9 = smov 0   ;;  %s4060_s10 = smov 0  }
   0x4 LB: > { %s2948_s11 = sadd.s32 4294967295, %s3987_s10   ;;  %s2949_s12 = sadd.s32 4294967294, %s3987_s10   ;;  %s3987_s10 = sphi %s4060_s10, %s22_s10   ;;  %s3983_s9 = sphi %s4058_s9, %s5688_s9   ;;  %s3979_s30 = sphi %s4056_s30, %s5687_s30   ;;  %s3975_s29 = sphi %s4054_s29, %s5686_s29   ;;  %s3971_s28 = sphi %s4052_s28, %s5685_s28   ;;  %s3967_s27 = sphi %s4050_s27, %s5684_s27  }
   0x5   : > { %s34_s13 = sadd.s32 1, %s3983_s9  ;;  %s236_s14 = sadd.s32 1, %s3975_s29 }
   0x6   : > { %p36_p0 = scmp.ge.s32.totalorder %s34_s13, 2  ;;  %p246_p1 = scmp.ne.s32.totalorder %s3975_s29, %s3971_s28 }
   0x7   : > { %p247_p2 = scmp.eq.s32.totalorder %s2948_s11, 1  ;;  %p252_p3 = scmp.ne.s32.totalorder %s3971_s28, %s3967_s27 }
   0x8   : > { %s5690_s13 = smov (%p36_p0, %s34_s13), 0  ;;  %p253_p5 = scmp.eq.s32.totalorder %s2949_s12, 1 }
   0x9   : > { %p4090_p4 = por %p247_p2, %p246_p1  ;;  %s231_s16 = ssub.s32 %s3983_s9, %s5690_s13 }
   0xa   : > { %p2954_p6 = scmp.ge.s32.totalorder %s3987_s10, 1  ;;  %p234_p7 = scmp.eq.s32.totalorder %s231_s16, 0 }
   0xb   : > { %p4097_p8 = por %p253_p5, %p252_p3  ;;  %p310_p9 = scmp.lt.s32.totalorder %s3987_s10, 3 }
   0xc   : > { %s4103_s18 = scalar_select %p234_p7, %s3975_s29, %s236_s14  }
   0xd   : > { %p311_p10 = pnand %p2954_p6, %p310_p9 }
   0xf   : > { %314 = sbr.rel (%p311_p10) target bundleno = 3502 (0xdae), region = 48 }
  0x14   : > { %v3635_v0 = vld [vmem:[%s5586_s3 + $0x8] sm:$0xff]   ;;  %p362_p11 = scmp.lt.s32.totalorder %s3979_s30, 1  ;;  %v3636_v1 = vld [vmem:[%s5586_s3] sm:$0xff]   ;;  %vm466_vm0 = vcmask 261120   ;;  %vm636_vm1 = vcmask 64512   ;;  %s3989_s21 = smov 96  }
  0x15   : > { %3221 = vmatprep.subr.bf16.mxu0 %v3635_v0  ;;  %v2962_v61 = vld [vmem:[%s5587_s4] ss:$0 sm:$0xff]  ;;  %s3990_s22 = smov 64   ;;  %s3991_s20 = smov 88   ;;  %vm2600_vm2 = vcmask 130048   ;;  %vm2617_vm3 = vcmask 195584  }
  0x16   : > { %s363_s23 = scalar_select %p362_p11, %s3979_s30, 1  ;;  %3222 = vmatpush3.bf16.msra.mxu0 %v3635_v0 }
  0x17   : > { %3223 = vmatprep.subr.bf16.mxu0 %v3636_v1  ;;  %s3992_s26 = smov 120   ;;  %s3993_s12 = smov 56  }
  0x18   : > { %s4113_s24 = sshll.u32 %s363_s23, 7  ;;  %s3995_s19 = smov 112  }
  0x19   : > { %s4119_s11 = scalar_lea.vmem %s5583_s0, %s4113_s24  ;;  %s4125_s16 = scalar_lea.vmem %s5584_s1, %s4113_s24 }
  0x1a   : > { %v387_v2 = vld [vmem:[%s4119_s11] sm:$0xff]  ;;  %v388_v3 = vld [vmem:[%s4119_s11 + $0x8] sm:$0xff]  ;;  %3224 = vmatpush3.bf16.msra.mxu0 %v3636_v1  ;;  %v389_v7 = vld [vmem:[%s4119_s11 + $0x10] sm:$0xff]  ;;  %s3999_s23 = smov 40   ;;  %s5615_s25 = smov 8  }
  0x1b   : > { %v403_v4 = vld [vmem:[%s4125_s16] sm:$0xff]  ;;  %v404_v5 = vld [vmem:[%s4125_s16 + $0x8] sm:$0xff]  ;;  %v390_v8 = vld [vmem:[%s4119_s11 + $0x18] sm:$0xff] }
  0x1c   : > { %v419_v6 = vadd.f32 %v403_v4, %v387_v2  ;;  %v420_v9 = vadd.f32 %v404_v5, %v388_v3  ;;  %v405_v10 = vld [vmem:[%s4125_s16 + $0x10] sm:$0xff]  ;;  %v406_v11 = vld [vmem:[%s4125_s16 + $0x18] sm:$0xff]  ;;  %v391_v12 = vld [vmem:[%s4119_s11 + $0x20] sm:$0xff] }
  0x1d   : > { %v421_v13 = vadd.f32 %v405_v10, %v389_v7  ;;  %v422_v14 = vadd.f32 %v406_v11, %v390_v8  ;;  %v392_v15 = vld [vmem:[%s4119_s11 + $0x28] sm:$0xff]  ;;  %v407_v16 = vld [vmem:[%s4125_s16 + $0x20] sm:$0xff]  ;;  %v393_v21 = vld [vmem:[%s4119_s11 + $0x30] sm:$0xff] }
  0x1e   : > { %v408_v17 = vld [vmem:[%s4125_s16 + $0x28] sm:$0xff]  ;;  %v435_v18 = vpack.c.bf16 %v420_v9, %v419_v6  ;;  %v423_v19 = vadd.f32 %v407_v16, %v391_v12  ;;  %v394_v22 = vld [vmem:[%s4119_s11 + $0x38] sm:$0xff]  ;;  %v409_v23 = vld [vmem:[%s4125_s16 + $0x30] sm:$0xff] }
  0x1f   : > { %v424_v20 = vadd.f32 %v408_v17, %v392_v15  ;;  %v436_v24 = vpack.c.bf16 %v422_v14, %v421_v13  ;;  %v410_v25 = vld [vmem:[%s4125_s16 + $0x38] sm:$0xff]  ;;  %v395_v26 = vld [vmem:[%s4119_s11 + $0x40] sm:$0xff]  ;;  %v396_v27 = vld [vmem:[%s4119_s11 + $0x48] sm:$0xff]  ;;  %v425_v31 = vadd.f32 %v409_v23, %v393_v21 }
  0x20   : > { %3225 = vmatprep.mubr.msk.bf16.mxu0 %vm466_vm0, %v435_v18  ;;  %v411_v29 = vld [vmem:[%s4125_s16 + $0x40] sm:$0xff]  ;;  %v412_v30 = vld [vmem:[%s4125_s16 + $0x48] sm:$0xff]  ;;  %v426_v32 = vadd.f32 %v410_v25, %v394_v22  ;;  %v397_v36 = vld [vmem:[%s4119_s11 + $0x50] sm:$0xff] }
  0x21   : > { %v437_v28 = vpack.c.bf16 %v424_v20, %v423_v19  ;;  %3226 = vmatmul.mubr.msk.bf16.vlgmr.msra.gmra.mxu0 %vm466_vm0, %v436_v24  ;;  %v427_v33 = vadd.f32 %v411_v29, %v395_v26  ;;  %v428_v34 = vadd.f32 %v412_v30, %v396_v27  ;;  %v398_v37 = vld [vmem:[%s4119_s11 + $0x58] sm:$0xff]  ;;  %v413_v39 = vld [vmem:[%s4125_s16 + $0x50] sm:$0xff]  ;;  %v399_v41 = vld [vmem:[%s4119_s11 + $0x60] sm:$0xff] }
  0x22   : > { %v438_v35 = vpack.c.bf16 %v426_v32, %v425_v31  ;;  %v414_v40 = vld [vmem:[%s4125_s16 + $0x58] sm:$0xff]  ;;  %v400_v42 = vld [vmem:[%s4119_s11 + $0x68] sm:$0xff]  ;;  %v415_v43 = vld [vmem:[%s4125_s16 + $0x60] sm:$0xff]  ;;  %v429_v45 = vadd.f32 %v413_v39, %v397_v36 }
  0x23   : > { %3229 = vmatprep.mubr.msk.bf16.mxu0 %vm466_vm0, %v437_v28  ;;  %v439_v38 = vpack.c.bf16 %v428_v34, %v427_v33  ;;  %v416_v44 = vld [vmem:[%s4125_s16 + $0x68] sm:$0xff]  ;;  %v430_v46 = vadd.f32 %v414_v40, %v398_v37  ;;  %v431_v47 = vadd.f32 %v415_v43, %v399_v41  ;;  %v401_v50 = vld [vmem:[%s4119_s11 + $0x70] sm:$0xff]  ;;  %v402_v52 = vld [vmem:[%s4119_s11 + $0x78] sm:$0xff]  ;;  %s359_s11 = sand.u32 1, %s3971_s28  }
  0x24   : > { %v432_v48 = vadd.f32 %v416_v44, %v400_v42  ;;  %v417_v53 = vld [vmem:[%s4125_s16 + $0x70] sm:$0xff]  ;;  %v418_v54 = vld [vmem:[%s4125_s16 + $0x78] sm:$0xff]  ;;  %s2955_s14 = sshll.u32 %s359_s11, 9 }
  0x25   : > { %v440_v49 = vpack.c.bf16 %v430_v46, %v429_v45  ;;  %v433_v55 = vadd.f32 %v417_v53, %v401_v50  ;;  %v434_v56 = vadd.f32 %v418_v54, %v402_v52  ;;  %s4472_s16 = scalar_lea.vmem [#allocation2], %s2955_s14 }
  0x26   : > { %v441_v51 = vpack.c.bf16 %v432_v48, %v431_v47 }
  0x27   : > { %v442_v57 = vpack.c.bf16 %v434_v56, %v433_v55 }
  0x29   : > { %3230 = vmatmul.mubr.msk.bf16.gmra.mxu0 %vm466_vm0, %v438_v35 }
  0x2a   : > { %3233 = vmatprep.mubr.msk.bf16.mxu0 %vm466_vm0, %v439_v38 }
  0x31   : > { %3234 = vmatmul.mubr.msk.bf16.gmra.mxu0 %vm466_vm0, %v440_v49 }
  0x32   : > { %3237 = vmatprep.mubr.msk.bf16.mxu0 %vm466_vm0, %v441_v51 }
  0x39   : > { %3238 = vmatmul.mubr.msk.bf16.gmra.mxu0 %vm466_vm0, %v442_v57 }
  0xe1   : > { %v3227_v58 = vpop.f32.mrf.mxu0 }
  0xe2   : > { %v534_v33 = vadd.f32 %v3227_v58, %v2962_v61 }
  0xe3   : > { %v525_v59 = vpop.f32.mrf.mxu0 }
  0xe4   : > { %v526_v63 = vadd.f32 %v2962_v61, %v525_v59  ;;  %v4237_v59 = vld [vmem:[%s5585_s2 + $0x10] sm:$0xff] }
  0xe5   : > { %v3228_v60 = vpop.f32.mrf.mxu0 }
  0xe6   : > { %v537_v31 = vadd.f32 %v3228_v60, %v2962_v61 }
  0xe7   : > { %v528_v62 = vpop.f32.mrf.mxu0 }
  0xe8   : > { %v529_v0 = vadd.f32 %v2962_v61, %v528_v62  ;;  %v4194_v34 = vpack.c.bf16 %v537_v31, %v534_v33 }
  0xe9   : > { %v3231_v1 = vpop.f32.mrf.mxu0 }
  0xea   : > { %v4170_v2 = vpack.c.bf16 %v529_v0, %v526_v63  ;;  %v550_v30 = vadd.f32 %v3231_v1, %v2962_v61  ;;  %v4245_v63 = vld [vmem:[%s5585_s2] sm:$0xff]  ;;  %v4251_v1 = vld [vmem:[%s5585_s2 + $0x8] sm:$0xff] }
  0xeb   : > { %v541_v3 = vpop.f32.mrf.mxu0 }
  0xec   : > { %3257 = vmatprep.mubr.msk.bf16.mxu1 %vm636_vm1, %v4170_v2  ;;  %v542_v20 = vadd.f32 %v2962_v61, %v541_v3 }
  0xed   : > { %v3232_v4 = vpop.f32.mrf.mxu0 }
  0xee   : > { %v553_v28 = vadd.f32 %v3232_v4, %v2962_v61  ;;  %v4259_v4 = vld [vmem:[%s5585_s2 + $0x18] sm:$0xff] }
  0xef   : > { %v544_v5 = vpop.f32.mrf.mxu0 }
  0xf0   : > { %v545_v17 = vadd.f32 %v2962_v61, %v544_v5  ;;  %v4190_v32 = vpack.c.bf16 %v553_v28, %v550_v30  ;;  %v4317_v30 = vld [vmem:[%s5585_s2 + $0x58] sm:$0xff] }
  0xf1   : > { %v3235_v6 = vpop.f32.mrf.mxu0 }
  0xf2   : > { %v566_v9 = vadd.f32 %v3235_v6, %v2962_v61  ;;  %v4180_v24 = vpack.c.bf16 %v545_v17, %v542_v20  ;;  %v4290_v20 = vld [vmem:[%s5585_s2 + $0x20] sm:$0xff] }
  0xf3   : > { %v557_v7 = vpop.f32.mrf.mxu0 }
  0xf4   : > { %v558_v15 = vadd.f32 %v2962_v61, %v557_v7 }
  0xf5   : > { %v3236_v8 = vpop.f32.mrf.mxu0 }
  0xf6   : > { %v569_v10 = vadd.f32 %v3236_v8, %v2962_v61 }
  0xf7   : > { %v560_v11 = vpop.f32.mrf.mxu0 }
  0xf8   : > { %v4174_v12 = vpack.c.bf16 %v569_v10, %v566_v9  ;;  %v561_v13 = vadd.f32 %v2962_v61, %v560_v11 }
  0xf9   : > { %v3239_v14 = vpop.f32.mrf.mxu0 }
  0xfa   : > { %630 = vrot.lane.b32.xlu1 %v4174_v12, %s3989_s21  ;;  %v4177_v18 = vpack.c.bf16 %v561_v13, %v558_v15  ;;  %v582_v21 = vadd.f32 %v3239_v14, %v2962_v61  ;;  %v4277_v15 = vld [vmem:[%s5585_s2 + $0x30] sm:$0xff] }
  0xfb   : > { %v573_v16 = vpop.f32.mrf.mxu0 }
  0xfc   : > { %v574_v27 = vadd.f32 %v2962_v61, %v573_v16  ;;  %v4282_v16 = vld [vmem:[%s5585_s2 + $0x38] sm:$0xff] }
  0xfd   : > { %v3240_v19 = vpop.f32.mrf.mxu0 }
  0xfe   : > { %v585_v22 = vadd.f32 %v3240_v19, %v2962_v61  ;;  %628 = vrot.lane.b32.xlu1 %v4177_v18, %s3989_s21 }
  0xff   : > { %v576_v23 = vpop.f32.mrf.mxu0 }
 0x100   : > { %v4182_v25 = vpack.c.bf16 %v585_v22, %v582_v21  ;;  %v577_v26 = vadd.f32 %v2962_v61, %v576_v23  ;;  %v4299_v22 = vld [vmem:[%s5585_s2 + $0x28] sm:$0xff] }
 0x102   : > { %634 = vrot.lane.b32.xlu0 %v4182_v25, %s3989_s21  ;;  %624 = vrot.lane.b32.xlu1 %v4180_v24, %s3989_s21  ;;  %v4186_v29 = vpack.c.bf16 %v577_v26, %v574_v27  ;;  %v4308_v27 = vld [vmem:[%s5585_s2 + $0x50] sm:$0xff] }
 0x106   : > { %632 = vrot.lane.b32.xlu0 %v4186_v29, %s3989_s21  ;;  %620 = vrot.lane.b32.xlu1 %v4170_v2, %s3989_s21 }
 0x10a   : > { %626 = vrot.lane.b32.xlu0 %v4190_v32, %s3989_s21  ;;  %964 = vrot.lane.b32.xlu1 %v4182_v25, %s3990_s22 }
 0x10e   : > { %622 = vrot.lane.b32.xlu0 %v4194_v34, %s3989_s21  ;;  %958 = vrot.lane.b32.xlu1 %v4177_v18, %s3990_s22  ;;  %s3996_s21 = smov 48  }
 0x112   : > { %960 = vrot.lane.b32.xlu0 %v4174_v12, %s3990_s22  ;;  %956 = vrot.lane.b32.xlu1 %v4190_v32, %s3990_s22 }
 0x116   : > { %954 = vrot.lane.b32.xlu1 %v4180_v24, %s3990_s22 }
 0x11a   : > { %952 = vrot.lane.b32.xlu1 %v4194_v34, %s3990_s22 }
 0x11e   : > { %950 = vrot.lane.b32.xlu1 %v4170_v2, %s3990_s22 }
 0x122   : > { %962 = vrot.lane.b32.xlu1 %v4186_v29, %s3990_s22  ;;  %s3998_s22 = smov 104  }
 0x16c   : > { %v631_v35 = vpop.permute.xlu1 %630 }
 0x16d   : > { %v677_v46 = vsel %vm636_vm1, %v631_v35, 0 }
 0x170   : > { %v629_v36 = vpop.permute.xlu1 %628 }
 0x171   : > { %v674_v50 = vsel %vm636_vm1, %v629_v36, 0 }
 0x174   : > { %v635_v37 = vpop.permute.xlu0 %634  ;;  %v625_v38 = vpop.permute.xlu1 %624 }
 0x175   : > { %3533 = vmatprep.subr.msk.bf16.mxu1 %vm636_vm1, %v635_v37  ;;  %v683_v39 = vsel %vm636_vm1, %v635_v37, 0  ;;  %v668_v56 = vsel %vm636_vm1, %v625_v38, 0  ;;  %v4335_v37 = vld [vmem:[%s5585_s2 + $0x48] sm:$0xff] }
 0x176   : > { %3242 = vmatpush3.bf16.xpose.msra.mxu1 %v683_v39 }
 0x178   : > { %v633_v40 = vpop.permute.xlu0 %632  ;;  %v621_v41 = vpop.permute.xlu1 %620 }
 0x179   : > { %3534 = vmatprep.subr.msk.bf16.mxu1 %vm636_vm1, %v633_v40  ;;  %v680_v43 = vsel %vm636_vm1, %v633_v40, 0  ;;  %v662_v58 = vsel %vm636_vm1, %v621_v41, 0  ;;  %v4344_v40 = vld [vmem:[%s5585_s2 + $0x70] sm:$0xff] }
 0x17c   : > { %v965_v42 = vpop.permute.xlu1 %964  ;;  %v627_v48 = vpop.permute.xlu0 %626 }
 0x17d   : > { %3273 = vmatprep.subr.bf16.mxu0 %v965_v42  ;;  %v671_v54 = vsel %vm636_vm1, %v627_v48, 0 }
 0x17e   : > { %3244 = vmatpush3.bf16.xpose.msra.mxu1 %v680_v43  ;;  %3274 = vmatpush3.bf16.msra.mxu0 %v965_v42  ;;  %v4353_v42 = vld [vmem:[%s5585_s2 + $0x78] sm:$0xff] }
 0x17f   : > { %3535 = vmatprep.subr.msk.bf16.mxu1 %vm636_vm1, %v631_v35  ;;  %v4326_v35 = vld [vmem:[%s5585_s2 + $0x40] sm:$0xff] }
 0x180   : > { %v959_v44 = vpop.permute.xlu1 %958  ;;  %v623_v51 = vpop.permute.xlu0 %622 }
 0x181   : > { %v665_v57 = vsel %vm636_vm1, %v623_v51, 0 }
 0x184   : > { %v957_v45 = vpop.permute.xlu1 %956  ;;  %v961_v55 = vpop.permute.xlu0 %960 }
 0x186   : > { %3246 = vmatpush3.bf16.xpose.msra.mxu1 %v677_v46 }
 0x187   : > { %3536 = vmatprep.subr.msk.bf16.mxu1 %vm636_vm1, %v629_v36 }
 0x188   : > { %v955_v47 = vpop.permute.xlu1 %954 }
 0x18c   : > { %v953_v49 = vpop.permute.xlu1 %952 }
 0x18e   : > { %3248 = vmatpush3.bf16.xpose.msra.mxu1 %v674_v50 }
 0x18f   : > { %3537 = vmatprep.subr.msk.bf16.mxu1 %vm636_vm1, %v627_v48  ;;  %v4371_v48 = vld [vmem:[%s5585_s2 + $0x68] sm:$0xff] }
 0x190   : > { %v951_v52 = vpop.permute.xlu1 %950 }
 0x194   : > { %v963_v53 = vpop.permute.xlu1 %962 }
 0x195   : > { %3275 = vmatprep.subr.bf16.mxu0 %v963_v53 }
 0x196   : > { %3250 = vmatpush3.bf16.xpose.msra.mxu1 %v671_v54  ;;  %3276 = vmatpush3.bf16.msra.mxu0 %v963_v53 }
 0x197   : > { %3538 = vmatprep.subr.msk.bf16.mxu1 %vm636_vm1, %v625_v38  ;;  %3277 = vmatprep.subr.bf16.mxu0 %v961_v55 }
 0x19a   : > { %3278 = vmatpush3.bf16.msra.mxu0 %v961_v55 }
 0x19b   : > { %3279 = vmatprep.subr.bf16.mxu0 %v959_v44 }
 0x19e   : > { %3252 = vmatpush3.bf16.xpose.msra.mxu1 %v668_v56  ;;  %3280 = vmatpush3.bf16.msra.mxu0 %v959_v44 }
 0x19f   : > { %3539 = vmatprep.subr.msk.bf16.mxu1 %vm636_vm1, %v623_v51  ;;  %3281 = vmatprep.subr.bf16.mxu0 %v957_v45 }
 0x1a2   : > { %3282 = vmatpush3.bf16.msra.mxu0 %v957_v45  ;;  %v4362_v45 = vld [vmem:[%s5585_s2 + $0x60] sm:$0xff] }
 0x1a3   : > { %3283 = vmatprep.subr.bf16.mxu0 %v955_v47 }
 0x1a6   : > { %3254 = vmatpush3.bf16.xpose.msra.mxu1 %v665_v57  ;;  %3284 = vmatpush3.bf16.msra.mxu0 %v955_v47 }
 0x1a7   : > { %3540 = vmatprep.subr.msk.bf16.mxu1 %vm636_vm1, %v621_v41  ;;  %3285 = vmatprep.subr.bf16.mxu0 %v953_v49 }
 0x1aa   : > { %3286 = vmatpush3.bf16.msra.mxu0 %v953_v49 }
 0x1ab   : > { %3287 = vmatprep.subr.bf16.mxu0 %v951_v52 }
 0x1ae   : > { %3256 = vmatpush3.bf16.xpose.msra.mxu1 %v662_v58  ;;  %3288 = vmatpush3.bf16.msra.mxu0 %v951_v52 }
 0x1b5   : > { %3258 = vmatmul.mubr.msk.bf16.vlgmr.msra.gmra.mxu1 %vm636_vm1, %v4194_v34 }
 0x1b6   : > { %3261 = vmatprep.mubr.msk.bf16.mxu1 %vm636_vm1, %v4180_v24 }
 0x1bd   : > { %3262 = vmatmul.mubr.msk.bf16.gmra.mxu1 %vm636_vm1, %v4190_v32 }
 0x1be   : > { %3265 = vmatprep.mubr.msk.bf16.mxu1 %vm636_vm1, %v4177_v18 }
 0x1c5   : > { %3266 = vmatmul.mubr.msk.bf16.gmra.mxu1 %vm636_vm1, %v4174_v12 }
 0x1c6   : > { %3269 = vmatprep.mubr.msk.bf16.mxu1 %vm636_vm1, %v4186_v29 }
 0x1cd   : > { %3270 = vmatmul.mubr.msk.bf16.gmra.mxu1 %vm636_vm1, %v4182_v25 }
 0x275   : > { %v3259_v60 = vpop.f32.mrf.mxu1 }
 0x276   : > { %v4240_v61 = vadd.f32 %v3259_v60, %v4237_v59 }
 0x277   : > { %v719_v62 = vpop.f32.mrf.mxu1 }
 0x278   : > { %786 = vmax.xlane.f32.xlu0 %v4240_v61  ;;  %v4254_v3 = vadd.f32 %v719_v62, %v4245_v63 }
 0x279   : > { %v3260_v0 = vpop.f32.mrf.mxu1 }
 0x27a   : > { %v4266_v7 = vadd.f32 %v3260_v0, %v4259_v4 }
 0x27b   : > { %v722_v5 = vpop.f32.mrf.mxu1 }
 0x27c   : > { %v4262_v6 = vadd.f32 %v722_v5, %v4251_v1  ;;  %782 = vmax.xlane.f32.xlu0 %v4254_v3 }
 0x27d   : > { %v3263_v8 = vpop.f32.mrf.mxu1 }
 0x27e   : > { %784 = vmax.xlane.f32.xlu1 %v4262_v6  ;;  %v4285_v19 = vadd.f32 %v3263_v8, %v4277_v15 }
 0x27f   : > { %v735_v9 = vpop.f32.mrf.mxu1 }
 0x280   : > { %788 = vmax.xlane.f32.xlu0 %v4266_v7  ;;  %v4302_v26 = vadd.f32 %v735_v9, %v4290_v20 }
 0x281   : > { %v3264_v10 = vpop.f32.mrf.mxu1 }
 0x282   : > { %v4293_v21 = vadd.f32 %v3264_v10, %v4282_v16 }
 0x283   : > { %v738_v11 = vpop.f32.mrf.mxu1 }
 0x284   : > { %v4311_v28 = vadd.f32 %v738_v11, %v4299_v22 }
 0x285   : > { %v3267_v13 = vpop.f32.mrf.mxu1 }
 0x286   : > { %v4320_v33 = vadd.f32 %v3267_v13, %v4308_v27 }
 0x287   : > { %v751_v14 = vpop.f32.mrf.mxu1 }
 0x288   : > { %v4338_v39 = vadd.f32 %v751_v14, %v4326_v35 }
 0x289   : > { %v3268_v17 = vpop.f32.mrf.mxu1 }
 0x28a   : > { %v4329_v36 = vadd.f32 %v3268_v17, %v4317_v30 }
 0x28b   : > { %v754_v23 = vpop.f32.mrf.mxu1 }
 0x28c   : > { %v4347_v41 = vadd.f32 %v754_v23, %v4335_v37 }
 0x28d   : > { %v3271_v31 = vpop.f32.mrf.mxu1 }
 0x28e   : > { %v4356_v44 = vadd.f32 %v3271_v31, %v4344_v40 }
 0x28f   : > { %1107 = vrot.lane.b32.xlu1 %v4186_v29, %s3991_s20  ;;  %v767_v38 = vpop.f32.mrf.mxu1 }
 0x290   : > { %v4374_v49 = vadd.f32 %v767_v38, %v4362_v45 }
 0x291   : > { %v3272_v43 = vpop.f32.mrf.mxu1 }
 0x292   : > { %v4365_v46 = vadd.f32 %v3272_v43, %v4353_v42 }
 0x293   : > { %v770_v47 = vpop.f32.mrf.mxu1 }
 0x294   : > { %v4378_v50 = vadd.f32 %v770_v47, %v4371_v48 }
 0x296   : > { %1109 = vrot.lane.b32.xlu0 %v4182_v25, %s3991_s20 }
 0x2b3   : > { %794 = vmax.xlane.f32.xlu1 %v4285_v19 }
 0x2b5   : > { %796 = vmax.xlane.f32.xlu0 %v4293_v21 }
 0x2b7   : > { %790 = vmax.xlane.f32.xlu1 %v4302_v26 }
 0x2b9   : > { %792 = vmax.xlane.f32.xlu0 %v4311_v28 }
 0x2bb   : > { %802 = vmax.xlane.f32.xlu1 %v4320_v33 }
 0x2bd   : > { %804 = vmax.xlane.f32.xlu0 %v4329_v36 }
 0x2bf   : > { %798 = vmax.xlane.f32.xlu1 %v4338_v39 }
 0x2c1   : > { %800 = vmax.xlane.f32.xlu0 %v4347_v41 }
 0x2c3   : > { %810 = vmax.xlane.f32.xlu1 %v4356_v44 }
 0x2c5   : > { %812 = vmax.xlane.f32.xlu0 %v4365_v46 }
 0x2c7   : > { %806 = vmax.xlane.f32.xlu1 %v4374_v49 }
 0x2c9   : > { %808 = vmax.xlane.f32.xlu0 %v4378_v50 }
 0x2d8   : > { %1105 = vrot.lane.b32.xlu1 %v4174_v12, %s3991_s20 }
 0x301   : > { %v787_v51 = vpop.xlane.xlu0 %786 }
 0x302   : > { %v816_v52 = vsub.f32 %v4240_v61, %v787_v51 }
 0x304   : > { %v834_v53 = vmul.f32 1.442695, %v816_v52 }
 0x305   : > { %v783_v54 = vpop.xlane.xlu0 %782 }
 0x306   : > { %3639 = vpow2.f32 %v834_v53  ;;  %v814_v55 = vsub.f32 %v4254_v3, %v783_v54 }
 0x307   : > { %v785_v56 = vpop.xlane.xlu1 %784 }
 0x308   : > { %v830_v57 = vmul.f32 1.442695, %v814_v55  ;;  %v815_v60 = vsub.f32 %v4262_v6, %v785_v56 }
 0x309   : > { %v789_v58 = vpop.xlane.xlu0 %788 }
 0x30a   : > { %3641 = vpow2.f32 %v830_v57  ;;  %v817_v62 = vsub.f32 %v4266_v7, %v789_v58  ;;  %v832_v8 = vmul.f32 1.442695, %v815_v60 }
 0x30b   : > { %v4404_v9 = vpop.permute.xlu1 %1107 }
 0x30c   : > { %v836_v0 = vmul.f32 1.442695, %v817_v62 }
 0x30d   : > { %v4388_v5 = vpop.permute.xlu0 %1109 }
 0x30e   : > { %3643 = vpow2.f32 %v836_v0  ;;  %3541 = vmatprep.subr.msk.bf16.mxu0 %vm636_vm1, %v4388_v5 }
 0x30f   : > { %3645 = vpow2.f32 %v832_v8 }
 0x313   : > { %v4392_v61 = vpop.eup %3639 }
 0x314   : > { %866 = vadd.xlane.f32.xlu0 %v4392_v61 }
 0x317   : > { %v4395_v3 = vpop.eup %3641 }
 0x318   : > { %862 = vadd.xlane.f32.xlu0 %v4395_v3 }
 0x31b   : > { %v4398_v6 = vpop.eup %3643 }
 0x31c   : > { %868 = vadd.xlane.f32.xlu0 %v4398_v6  ;;  %v4401_v7 = vpop.eup %3645 }
 0x320   : > { %864 = vadd.xlane.f32.xlu0 %v4401_v7 }
 0x33c   : > { %v795_v10 = vpop.xlane.xlu1 %794 }
 0x33d   : > { %v820_v11 = vsub.f32 %v4285_v19, %v795_v10 }
 0x33e   : > { %v797_v13 = vpop.xlane.xlu0 %796 }
 0x33f   : > { %v842_v14 = vmul.f32 1.442695, %v820_v11  ;;  %v821_v23 = vsub.f32 %v4293_v21, %v797_v13 }
 0x340   : > { %v791_v17 = vpop.xlane.xlu1 %790 }
 0x341   : > { %3647 = vpow2.f32 %v842_v14  ;;  %v818_v31 = vsub.f32 %v4302_v26, %v791_v17  ;;  %v844_v51 = vmul.f32 1.442695, %v821_v23 }
 0x342   : > { %v793_v38 = vpop.xlane.xlu0 %792 }
 0x343   : > { %v838_v43 = vmul.f32 1.442695, %v818_v31  ;;  %v819_v47 = vsub.f32 %v4311_v28, %v793_v38 }
 0x344   : > { %v803_v58 = vpop.xlane.xlu1 %802 }
 0x345   : > { %3649 = vpow2.f32 %v838_v43  ;;  %v840_v52 = vmul.f32 1.442695, %v819_v47  ;;  %v824_v62 = vsub.f32 %v4320_v33, %v803_v58 }
 0x346   : > { %v805_v28 = vpop.xlane.xlu0 %804 }
 0x347   : > { %3651 = vpow2.f32 %v840_v52  ;;  %v850_v8 = vmul.f32 1.442695, %v824_v62  ;;  %v825_v11 = vsub.f32 %v4329_v36, %v805_v28 }
 0x348   : > { %3653 = vpow2.f32 %v844_v51  ;;  %v799_v0 = vpop.xlane.xlu1 %798 }
 0x349   : > { %v822_v10 = vsub.f32 %v4338_v39, %v799_v0  ;;  %v852_v17 = vmul.f32 1.442695, %v825_v11 }
 0x34a   : > { %v801_v54 = vpop.xlane.xlu0 %800 }
 0x34b   : > { %v846_v13 = vmul.f32 1.442695, %v822_v10  ;;  %v823_v23 = vsub.f32 %v4347_v41, %v801_v54 }
 0x34c   : > { %v811_v14 = vpop.xlane.xlu1 %810 }
 0x34d   : > { %v828_v33 = vsub.f32 %v4356_v44, %v811_v14 }
 0x34e   : > { %v4410_v53 = vpop.eup %3647  ;;  %v813_v55 = vpop.xlane.xlu0 %812 }
 0x34f   : > { %874 = vadd.xlane.f32.xlu0 %v4410_v53  ;;  %v858_v39 = vmul.f32 1.442695, %v828_v33  ;;  %v829_v41 = vsub.f32 %v4365_v46, %v813_v55 }
 0x350   : > { %v807_v38 = vpop.xlane.xlu1 %806 }
 0x351   : > { %v826_v43 = vsub.f32 %v4374_v49, %v807_v38  ;;  %v860_v44 = vmul.f32 1.442695, %v829_v41 }
 0x352   : > { %v4413_v19 = vpop.eup %3649  ;;  %v809_v56 = vpop.xlane.xlu0 %808 }
 0x353   : > { %870 = vadd.xlane.f32.xlu0 %v4413_v19  ;;  %v827_v57 = vsub.f32 %v4378_v50, %v809_v56  ;;  %v848_v50 = vmul.f32 1.442695, %v823_v23  ;;  %v854_v47 = vmul.f32 1.442695, %v826_v43  ;;  %v1157_v23 = vsel %vm636_vm1, %v4388_v5, 0 }
 0x354   : > { %v4416_v21 = vpop.eup %3651 }
 0x355   : > { %872 = vadd.xlane.f32.xlu1 %v4416_v21  ;;  %v4419_v26 = vpop.eup %3653  ;;  %v856_v60 = vmul.f32 1.442695, %v827_v57 }
 0x357   : > { %876 = vadd.xlane.f32.xlu0 %v4419_v26  ;;  %3655 = vpow2.f32 %v856_v60 }
 0x358   : > { %3657 = vpow2.f32 %v850_v8 }
 0x359   : > { %3659 = vpow2.f32 %v846_v13 }
 0x35a   : > { %3661 = vpow2.f32 %v852_v17 }
 0x35b   : > { %3663 = vpow2.f32 %v848_v50 }
 0x35c   : > { %3665 = vpow2.f32 %v858_v39 }
 0x35d   : > { %3667 = vpow2.f32 %v854_v47 }
 0x35e   : > { %3669 = vpow2.f32 %v860_v44 }
 0x364   : > { %v4433_v31 = vpop.eup %3655 }
 0x365   : > { %v4438_v36 = vpop.eup %3657 }
 0x366   : > { %1103 = vrot.lane.b32.xlu1 %v4177_v18, %s3991_s20  ;;  %v4442_v51 = vpop.eup %3659 }
 0x367   : > { %v4445_v52 = vpop.eup %3661 }
 0x368   : > { %v4448_v49 = vpop.eup %3663 }
 0x369   : > { %v4453_v28 = vpop.eup %3665 }
 0x36a   : > { %v4458_v55 = vpop.eup %3667 }
 0x36b   : > { %v4464_v57 = vpop.eup %3669 }
 0x36d   : > { %1101 = vrot.lane.b32.xlu0 %v4190_v32, %s3991_s20 }
 0x371   : > { %1099 = vrot.lane.b32.xlu0 %v4180_v24, %s3991_s20 }
 0x38a   : > { %888 = vadd.xlane.f32.xlu1 %v4433_v31 }
 0x390   : > { %882 = vadd.xlane.f32.xlu0 %v4438_v36 }
 0x394   : > { %878 = vadd.xlane.f32.xlu0 %v4442_v51 }
 0x398   : > { %884 = vadd.xlane.f32.xlu0 %v4445_v52 }
 0x39b   : > { %1095 = vrot.lane.b32.xlu1 %v4170_v2, %s3991_s20 }
 0x39c   : > { %880 = vadd.xlane.f32.xlu0 %v4448_v49 }
 0x39d   : > { %v867_v46 = vpop.xlane.xlu0 %866 }
 0x39e   : > { %3671 = vrcp.f32 %v867_v46 }
 0x39f   : > { %1087 = vrot.lane.b32.xlu1 %v4177_v18, %s3992_s26 }
 0x3a0   : > { %890 = vadd.xlane.f32.xlu0 %v4453_v28 }
 0x3a1   : > { %v863_v54 = vpop.xlane.xlu0 %862 }
 0x3a2   : > { %3673 = vrcp.f32 %v863_v54 }
 0x3a3   : > { %1091 = vrot.lane.b32.xlu1 %v4186_v29, %s3992_s26 }
 0x3a4   : > { %886 = vadd.xlane.f32.xlu0 %v4458_v55 }
 0x3a5   : > { %v869_v56 = vpop.xlane.xlu0 %868 }
 0x3a6   : > { %3675 = vrcp.f32 %v869_v56 }
 0x3a7   : > { %1437 = vrot.lane.b32.xlu1 %v4186_v29, %s3993_s12 }
 0x3a8   : > { %892 = vadd.xlane.f32.xlu0 %v4464_v57 }
 0x3a9   : > { %v865_v58 = vpop.xlane.xlu0 %864 }
 0x3aa   : > { %3677 = vrcp.f32 %v865_v58 }
 0x3ab   : > { %v3672_v60 = vpop.eup %3671 }
 0x3ac   : > { %v912_v62 = vmul.f32 %v3672_v60, %v4392_v61 }
 0x3ae   : > { %928 = vst [vmem:[%s4472_s16 + $0x10] sm:$0xff] %v912_v62 }
 0x3af   : > { %v3674_v0 = vpop.eup %3673 }
 0x3b0   : > { %v910_v8 = vmul.f32 %v3674_v0, %v4395_v3  ;;  %v1154_v3 = vsel %vm636_vm1, %v4404_v9, 0 }
 0x3b2   : > { %926 = vst [vmem:[%s4472_s16] sm:$0xff] %v910_v8 }
 0x3b3   : > { %v3676_v10 = vpop.eup %3675 }
 0x3b4   : > { %v913_v11 = vmul.f32 %v3676_v10, %v4398_v6  ;;  %v1106_v6 = vpop.permute.xlu1 %1105 }
 0x3b5   : > { %v1151_v5 = vsel %vm636_vm1, %v1106_v6, 0 }
 0x3b6   : > { %929 = vst [vmem:[%s4472_s16 + $0x18] sm:$0xff] %v913_v11  ;;  %v943_v17 = vpack.c.bf16 %v913_v11, %v912_v62 }
 0x3b7   : > { %v3678_v13 = vpop.eup %3677 }
 0x3b8   : > { %v911_v14 = vmul.f32 %v3678_v13, %v4401_v7 }
 0x3ba   : > { %927 = vst [vmem:[%s4472_s16 + $0x8] sm:$0xff] %v911_v14  ;;  %v942_v61 = vpack.c.bf16 %v911_v14, %v910_v8 }
 0x3bc   : > { %3289 = vmatprep.mubr.bf16.mxu0 %v942_v61 }
 0x3bd   : > { %3290 = vmatmul.mubr.bf16.vlgmr.msra.gmra.mxu0 %v943_v17 }
 0x3be   : > { %3306 = vmatpush3.bf16.xpose.msra.mxu0 %v1157_v23  ;;  %1097 = vrot.lane.b32.xlu0 %v4194_v34, %s3991_s20  ;;  %s3994_s20 = smov 80  }
 0x3bf   : > { %3542 = vmatprep.subr.msk.bf16.mxu0 %vm636_vm1, %v4404_v9 }
 0x3c2   : > { %1079 = vrot.lane.b32.xlu0 %v4170_v2, %s3992_s26 }
 0x3c6   : > { %3308 = vmatpush3.bf16.xpose.msra.mxu0 %v1154_v3  ;;  %1081 = vrot.lane.b32.xlu0 %v4194_v34, %s3992_s26 }
 0x3c7   : > { %3543 = vmatprep.subr.msk.bf16.mxu0 %vm636_vm1, %v1106_v6 }
 0x3ca   : > { %1083 = vrot.lane.b32.xlu0 %v4180_v24, %s3992_s26 }
 0x3ce   : > { %3310 = vmatpush3.bf16.xpose.msra.mxu0 %v1151_v5  ;;  %1085 = vrot.lane.b32.xlu0 %v4190_v32, %s3992_s26 }
 0x3d2   : > { %1089 = vrot.lane.b32.xlu0 %v4174_v12, %s3992_s26 }
 0x3d6   : > { %1093 = vrot.lane.b32.xlu0 %v4182_v25, %s3992_s26  ;;  %s4001_s26 = smov 16  }
 0x3d8   : > { %v875_v7 = vpop.xlane.xlu0 %874 }
 0x3d9   : > { %3679 = vrcp.f32 %v875_v7 }
 0x3da   : > { %1439 = vrot.lane.b32.xlu0 %v4182_v25, %s3993_s12 }
 0x3dc   : > { %v871_v9 = vpop.xlane.xlu0 %870 }
 0x3dd   : > { %3681 = vrcp.f32 %v871_v9 }
 0x3de   : > { %v873_v50 = vpop.xlane.xlu1 %872  ;;  %1435 = vrot.lane.b32.xlu0 %v4174_v12, %s3993_s12 }
 0x3df   : > { %3683 = vrcp.f32 %v873_v50 }
 0x3e0   : > { %v877_v33 = vpop.xlane.xlu0 %876 }
 0x3e1   : > { %3685 = vrcp.f32 %v877_v33 }
 0x3e2   : > { %v1104_v38 = vpop.permute.xlu1 %1103  ;;  %1433 = vrot.lane.b32.xlu0 %v4177_v18, %s3993_s12 }
 0x3e3   : > { %3544 = vmatprep.subr.msk.bf16.mxu0 %vm636_vm1, %v1104_v38  ;;  %v1148_v39 = vsel %vm636_vm1, %v1104_v38, 0 }
 0x3e4   : > { %3312 = vmatpush3.bf16.xpose.msra.mxu0 %v1148_v39  ;;  %v1102_v43 = vpop.permute.xlu0 %1101 }
 0x3e5   : > { %3545 = vmatprep.subr.msk.bf16.mxu0 %vm636_vm1, %v1102_v43  ;;  %v1145_v46 = vsel %vm636_vm1, %v1102_v43, 0 }
 0x3e6   : > { %v3680_v41 = vpop.eup %3679  ;;  %1431 = vrot.lane.b32.xlu0 %v4190_v32, %s3993_s12 }
 0x3e7   : > { %v916_v47 = vmul.f32 %v3680_v41, %v4410_v53 }
 0x3e8   : > { %v1100_v58 = vpop.permute.xlu0 %1099 }
 0x3e9   : > { %932 = vst [vmem:[%s4472_s16 + $0x30] sm:$0xff] %v916_v47 }
 0x3ea   : > { %v3682_v44 = vpop.eup %3681 }
 0x3eb   : > { %v914_v54 = vmul.f32 %v3682_v44, %v4413_v19  ;;  %v1142_v19 = vsel %vm636_vm1, %v1100_v58, 0 }
 0x3ec   : > { %v3684_v56 = vpop.eup %3683  ;;  %3314 = vmatpush3.bf16.xpose.msra.mxu0 %v1145_v46 }
 0x3ed   : > { %3546 = vmatprep.subr.msk.bf16.mxu0 %vm636_vm1, %v1100_v58  ;;  %v915_v60 = vmul.f32 %v3684_v56, %v4416_v21  ;;  %930 = vst [vmem:[%s4472_s16 + $0x20] sm:$0xff] %v914_v54 }
 0x3ee   : > { %v3686_v62 = vpop.eup %3685 }
 0x3ef   : > { %931 = vst [vmem:[%s4472_s16 + $0x28] sm:$0xff] %v915_v60  ;;  %v944_v0 = vpack.c.bf16 %v915_v60, %v914_v54  ;;  %v917_v53 = vmul.f32 %v3686_v62, %v4419_v26 }
 0x3f1   : > { %3293 = vmatprep.mubr.bf16.mxu0 %v944_v0  ;;  %933 = vst [vmem:[%s4472_s16 + $0x38] sm:$0xff] %v917_v53  ;;  %v945_v8 = vpack.c.bf16 %v917_v53, %v916_v47 }
 0x3f3   : > { %3294 = vmatmul.mubr.bf16.gmra.mxu0 %v945_v8 }
 0x3f4   : > { %3316 = vmatpush3.bf16.xpose.msra.mxu0 %v1142_v19 }
 0x413   : > { %v889_v10 = vpop.xlane.xlu1 %888 }
 0x414   : > { %3687 = vrcp.f32 %v889_v10 }
 0x417   : > { %v1096_v41 = vpop.permute.xlu1 %1095 }
 0x418   : > { %v1136_v56 = vsel %vm636_vm1, %v1096_v41, 0 }
 0x419   : > { %v883_v11 = vpop.xlane.xlu0 %882 }
 0x41a   : > { %3689 = vrcp.f32 %v883_v11 }
 0x41b   : > { %v1088_v8 = vpop.permute.xlu1 %1087 }
 0x41d   : > { %v879_v21 = vpop.xlane.xlu0 %878 }
 0x41e   : > { %3691 = vrcp.f32 %v879_v21 }
 0x421   : > { %v3688_v13 = vpop.eup %3687  ;;  %v885_v14 = vpop.xlane.xlu0 %884 }
 0x422   : > { %3693 = vrcp.f32 %v885_v14  ;;  %v923_v26 = vmul.f32 %v3688_v13, %v4433_v31 }
 0x424   : > { %939 = vst [vmem:[%s4472_s16 + $0x68] sm:$0xff] %v923_v26 }
 0x425   : > { %v881_v61 = vpop.xlane.xlu0 %880 }
 0x426   : > { %3695 = vrcp.f32 %v881_v61 }
 0x427   : > { %v3690_v17 = vpop.eup %3689 }
 0x428   : > { %v920_v23 = vmul.f32 %v3690_v17, %v4438_v36 }
 0x429   : > { %v891_v3 = vpop.xlane.xlu0 %890 }
 0x42a   : > { %3697 = vrcp.f32 %v891_v3  ;;  %936 = vst [vmem:[%s4472_s16 + $0x50] sm:$0xff] %v920_v23 }
 0x42b   : > { %v3692_v6 = vpop.eup %3691 }
 0x42c   : > { %v918_v5 = vmul.f32 %v3692_v6, %v4442_v51  ;;  %v4916_v6 = vld [vmem:[%s5585_s2 + $0x38] sm:$0xff] }
 0x42d   : > { %v887_v7 = vpop.xlane.xlu0 %886 }
 0x42e   : > { %3699 = vrcp.f32 %v887_v7  ;;  %934 = vst [vmem:[%s4472_s16 + $0x40] sm:$0xff] %v918_v5 }
 0x42f   : > { %v3694_v9 = vpop.eup %3693 }
 0x430   : > { %v921_v31 = vmul.f32 %v3694_v9, %v4445_v52 }
 0x431   : > { %v893_v50 = vpop.xlane.xlu0 %892 }
 0x432   : > { %3701 = vrcp.f32 %v893_v50  ;;  %937 = vst [vmem:[%s4472_s16 + $0x58] sm:$0xff] %v921_v31  ;;  %v947_v47 = vpack.c.bf16 %v921_v31, %v920_v23 }
 0x433   : > { %v3696_v33 = vpop.eup %3695 }
 0x434   : > { %v919_v36 = vmul.f32 %v3696_v33, %v4448_v49 }
 0x435   : > { %v1098_v38 = vpop.permute.xlu0 %1097 }
 0x436   : > { %3547 = vmatprep.subr.msk.bf16.mxu0 %vm636_vm1, %v1098_v38  ;;  %v1139_v39 = vsel %vm636_vm1, %v1098_v38, 0  ;;  %935 = vst [vmem:[%s4472_s16 + $0x48] sm:$0xff] %v919_v36  ;;  %v946_v51 = vpack.c.bf16 %v919_v36, %v918_v5 }
 0x437   : > { %v3698_v43 = vpop.eup %3697  ;;  %3318 = vmatpush3.bf16.xpose.msra.mxu0 %v1139_v39 }
 0x438   : > { %3297 = vmatprep.mubr.bf16.mxu0 %v946_v51  ;;  %3548 = vmatprep.subr.msk.bf16.mxu0 %vm636_vm1, %v1096_v41  ;;  %v924_v52 = vmul.f32 %v3698_v43, %v4453_v28 }
 0x439   : > { %3298 = vmatmul.mubr.bf16.gmra.mxu0 %v947_v47  ;;  %v1080_v49 = vpop.permute.xlu0 %1079 }
 0x43a   : > { %940 = vst [vmem:[%s4472_s16 + $0x70] sm:$0xff] %v924_v52 }
 0x43b   : > { %v3700_v44 = vpop.eup %3699 }
 0x43c   : > { %v922_v46 = vmul.f32 %v3700_v44, %v4458_v55  ;;  %v1092_v55 = vpop.permute.xlu1 %1091  ;;  %v4894_v44 = vld [vmem:[%s5585_s2 + $0x8] sm:$0xff] }
 0x43d   : > { %v1082_v54 = vpop.permute.xlu0 %1081 }
 0x43e   : > { %938 = vst [vmem:[%s4472_s16 + $0x60] sm:$0xff] %v922_v46  ;;  %v948_v58 = vpack.c.bf16 %v923_v26, %v922_v46 }
 0x43f   : > { %v3702_v60 = vpop.eup %3701  ;;  %3320 = vmatpush3.bf16.xpose.msra.mxu0 %v1136_v56 }
 0x440   : > { %3301 = vmatprep.mubr.bf16.mxu0 %v948_v58  ;;  %v925_v62 = vmul.f32 %v3702_v60, %v4464_v57  ;;  %v1438_v21 = vpop.permute.xlu1 %1437 }
 0x441   : > { %v1084_v0 = vpop.permute.xlu0 %1083 }
 0x442   : > { %941 = vst [vmem:[%s4472_s16 + $0x78] sm:$0xff] %v925_v62  ;;  %v949_v53 = vpack.c.bf16 %v925_v62, %v924_v52 }
 0x444   : > { %3302 = vmatmul.mubr.bf16.gmra.mxu0 %v949_v53 }
 0x445   : > { %3321 = vmatprep.mubr.msk.bf16.mxu0 %vm636_vm1, %v1080_v49  ;;  %v1086_v28 = vpop.permute.xlu0 %1085 }
 0x449   : > { %v1090_v19 = vpop.permute.xlu0 %1089 }
 0x44c   : > { %3322 = vmatmul.mubr.msk.bf16.vlgmr.msra.gmra.mxu0 %vm636_vm1, %v1082_v54 }
 0x44d   : > { %3325 = vmatprep.mubr.msk.bf16.mxu0 %vm636_vm1, %v1084_v0  ;;  %v1094_v10 = vpop.permute.xlu0 %1093 }
 0x451   : > { %v1440_v11 = vpop.permute.xlu0 %1439 }
 0x452   : > { %3337 = vmatprep.subr.bf16.mxu1 %v1440_v11 }
 0x453   : > { %3338 = vmatpush3.bf16.msra.mxu1 %v1440_v11 }
 0x454   : > { %3326 = vmatmul.mubr.msk.bf16.gmra.mxu0 %vm636_vm1, %v1086_v28  ;;  %3339 = vmatprep.subr.bf16.mxu1 %v1438_v21 }
 0x455   : > { %3329 = vmatprep.mubr.msk.bf16.mxu0 %vm636_vm1, %v1088_v8  ;;  %v1436_v57 = vpop.permute.xlu0 %1435 }
 0x457   : > { %3340 = vmatpush3.bf16.msra.mxu1 %v1438_v21 }
 0x458   : > { %3341 = vmatprep.subr.bf16.mxu1 %v1436_v57 }
 0x459   : > { %v1434_v13 = vpop.permute.xlu0 %1433 }
 0x45b   : > { %3342 = vmatpush3.bf16.msra.mxu1 %v1436_v57 }
 0x45c   : > { %3330 = vmatmul.mubr.msk.bf16.gmra.mxu0 %vm636_vm1, %v1090_v19  ;;  %3343 = vmatprep.subr.bf16.mxu1 %v1434_v13 }
 0x45d   : > { %3333 = vmatprep.mubr.msk.bf16.mxu0 %vm636_vm1, %v1092_v55  ;;  %v1432_v14 = vpop.permute.xlu0 %1431 }
 0x45f   : > { %3344 = vmatpush3.bf16.msra.mxu1 %v1434_v13 }
 0x460   : > { %3345 = vmatprep.subr.bf16.mxu1 %v1432_v14 }
 0x463   : > { %3346 = vmatpush3.bf16.msra.mxu1 %v1432_v14 }
 0x464   : > { %3334 = vmatmul.mubr.msk.bf16.gmra.mxu0 %vm636_vm1, %v1094_v10 }
 0x47d   : > { %v4553_v26 = vpop.f32.mrf.mxu0 }
 0x47e   : > { %5618 = vst [vmem:[#allocation5_spill] sm:$0xff] %v4553_v26 }
 0x47f   : > { %v4555_v61 = vpop.f32.mrf.mxu0 }
 0x480   : > { %5619 = vst [vmem:[#allocation6_spill] sm:$0xff] %v4555_v61 }
 0x481   : > { %v4557_v17 = vpop.f32.mrf.mxu0 }
 0x482   : > { %5620 = vst [vmem:[#allocation7_spill] sm:$0xff] %v4557_v17 }
 0x483   : > { %v4561_v3 = vpop.f32.mrf.mxu0 }
 0x484   : > { %5621 = vst [vmem:[#allocation8_spill] sm:$0xff] %v4561_v3 }
 0x4b3   : > { %v4565_v5 = vpop.f32.mrf.mxu0 }
 0x4b4   : > { %5622 = vst [vmem:[#allocation9_spill] sm:$0xff] %v4565_v5  ;;  %v5017_v5 = vld [vmem:[%s5585_s2 + $0x68] sm:$0xff] }
 0x4b5   : > { %v4567_v7 = vpop.f32.mrf.mxu0 }
 0x4b6   : > { %5623 = vst [vmem:[#allocation10_spill] sm:$0xff] %v4567_v7 }
 0x4b7   : > { %v4569_v9 = vpop.f32.mrf.mxu0 }
 0x4b8   : > { %5624 = vst [vmem:[#allocation11_spill] sm:$0xff] %v4569_v9 }
 0x4b9   : > { %v4573_v50 = vpop.f32.mrf.mxu0 }
 0x4ba   : > { %5625 = vst [vmem:[#allocation12_spill] sm:$0xff] %v4573_v50 }
 0x4f9   : > { %v4577_v36 = vpop.f32.mrf.mxu0 }
 0x4fa   : > { %5626 = vst [vmem:[#allocation13_spill] sm:$0xff] %v4577_v36 }
 0x4fb   : > { %v4579_v38 = vpop.f32.mrf.mxu0 }
 0x4fc   : > { %5627 = vst [vmem:[#allocation14_spill] sm:$0xff] %v4579_v38 }
 0x4fd   : > { %v4581_v39 = vpop.f32.mrf.mxu0 }
 0x4fe   : > { %5628 = vst [vmem:[#allocation15_spill] sm:$0xff] %v4581_v39 }
 0x4ff   : > { %v4585_v43 = vpop.f32.mrf.mxu0 }
 0x500   : > { %5629 = vst [vmem:[#allocation16_spill] sm:$0xff] %v4585_v43 }
 0x504   : > { %v4589_v47 = vpop.f32.mrf.mxu0 }
 0x505   : > { %5630 = vst [vmem:[#allocation17_spill] sm:$0xff] %v4589_v47 }
 0x506   : > { %v4591_v52 = vpop.f32.mrf.mxu0 }
 0x507   : > { %5631 = vst [vmem:[#allocation18_spill] sm:$0xff] %v4591_v52  ;;  %v4962_v52 = vld [vmem:[%s5585_s2 + $0x40] sm:$0xff] }
 0x508   : > { %v4593_v49 = vpop.f32.mrf.mxu0 }
 0x509   : > { %5632 = vst [vmem:[#allocation19_spill] sm:$0xff] %v4593_v49  ;;  %v4980_v49 = vld [vmem:[%s5585_s2 + $0x70] sm:$0xff] }
 0x50a   : > { %v4597_v46 = vpop.f32.mrf.mxu0 }
 0x50b   : > { %5633 = vst [vmem:[#allocation20_spill] sm:$0xff] %v4597_v46  ;;  %v4970_v46 = vld [vmem:[%s5585_s2 + $0x48] sm:$0xff] }
 0x50c   : > { %v3323_v56 = vpop.f32.mrf.mxu0 }
 0x50d   : > { %v1202_v58 = vadd.f32 %v3323_v56, %v4237_v59 }
 0x50e   : > { %v1193_v60 = vpop.f32.mrf.mxu0 }
 0x50f   : > { %v1194_v62 = vadd.f32 %v1193_v60, %v4245_v63  ;;  %1260 = vmax.xlane.f32.xlu0 %v1202_v58 }
 0x510   : > { %v3324_v0 = vpop.f32.mrf.mxu0 }
 0x511   : > { %1256 = vmax.xlane.f32.xlu1 %v1194_v62  ;;  %v1205_v28 = vadd.f32 %v3324_v0, %v4259_v4 }
 0x512   : > { %v1196_v53 = vpop.f32.mrf.mxu0 }
 0x513   : > { %v4605_v8 = vadd.f32 %v1196_v53, %v4251_v1 }
 0x514   : > { %v3327_v59 = vpop.f32.mrf.mxu0 }
 0x515   : > { %1258 = vmax.xlane.f32.xlu0 %v4605_v8  ;;  %1262 = vmax.xlane.f32.xlu1 %v1205_v28  ;;  %v4613_v11 = vadd.f32 %v3327_v59, %v4277_v15 }
 0x516   : > { %v1209_v63 = vpop.f32.mrf.mxu0 }
 0x517   : > { %v4621_v21 = vadd.f32 %v1209_v63, %v4290_v20 }
 0x518   : > { %v3328_v19 = vpop.f32.mrf.mxu0 }
 0x519   : > { %v4616_v1 = vadd.f32 %v3328_v19, %v4282_v16 }
 0x51a   : > { %v1212_v55 = vpop.f32.mrf.mxu0 }
 0x51b   : > { %v4624_v57 = vadd.f32 %v1212_v55, %v4299_v22 }
 0x51c   : > { %v3331_v10 = vpop.f32.mrf.mxu0 }
 0x51d   : > { %v4629_v15 = vadd.f32 %v3331_v10, %v4308_v27 }
 0x51e   : > { %v1225_v4 = vpop.f32.mrf.mxu0 }
 0x51f   : > { %v4637_v20 = vadd.f32 %v1225_v4, %v4326_v35 }
 0x520   : > { %v3332_v13 = vpop.f32.mrf.mxu0 }
 0x521   : > { %v4632_v16 = vadd.f32 %v3332_v13, %v4317_v30 }
 0x522   : > { %v1228_v14 = vpop.f32.mrf.mxu0 }
 0x523   : > { %v4640_v22 = vadd.f32 %v1228_v14, %v4335_v37 }
 0x524   : > { %v3335_v56 = vpop.f32.mrf.mxu0 }
 0x525   : > { %v4645_v27 = vadd.f32 %v3335_v56, %v4344_v40 }
 0x526   : > { %1427 = vrot.lane.b32.xlu1 %v4194_v34, %s3993_s12  ;;  %v1241_v30 = vpop.f32.mrf.mxu0 }
 0x527   : > { %v4649_v60 = vadd.f32 %v1241_v30, %v4362_v45 }
 0x528   : > { %v3336_v35 = vpop.f32.mrf.mxu0 }
 0x529   : > { %v4663_v37 = vadd.f32 %v3336_v35, %v4353_v42 }
 0x52a   : > { %v1244_v40 = vpop.f32.mrf.mxu0 }
 0x52b   : > { %1429 = vrot.lane.b32.xlu0 %v4180_v24, %s3993_s12  ;;  %v4667_v45 = vadd.f32 %v1244_v40, %v4371_v48 }
 0x54a   : > { %1268 = vmax.xlane.f32.xlu0 %v4613_v11  ;;  %1270 = vmax.xlane.f32.xlu1 %v4616_v1 }
 0x54e   : > { %1266 = vmax.xlane.f32.xlu1 %v4624_v57  ;;  %1264 = vmax.xlane.f32.xlu0 %v4621_v21 }
 0x552   : > { %1276 = vmax.xlane.f32.xlu0 %v4629_v15  ;;  %1278 = vmax.xlane.f32.xlu1 %v4632_v16 }
 0x556   : > { %1274 = vmax.xlane.f32.xlu1 %v4640_v22  ;;  %1272 = vmax.xlane.f32.xlu0 %v4637_v20 }
 0x55a   : > { %1284 = vmax.xlane.f32.xlu0 %v4645_v27 }
 0x55e   : > { %1280 = vmax.xlane.f32.xlu0 %v4649_v60 }
 0x567   : > { %1584 = vrot.lane.b32.xlu1 %v4182_v25, %s3994_s20 }
 0x574   : > { %1425 = vrot.lane.b32.xlu0 %v4170_v2, %s3993_s12  ;;  %s3997_s12 = smov 72  }
 0x578   : > { %1582 = vrot.lane.b32.xlu0 %v4186_v29, %s3994_s20 }
 0x57c   : > { %1580 = vrot.lane.b32.xlu0 %v4174_v12, %s3994_s20 }
 0x580   : > { %1576 = vrot.lane.b32.xlu0 %v4190_v32, %s3994_s20 }
 0x58b   : > { %1286 = vmax.xlane.f32.xlu1 %v4663_v37 }
 0x58f   : > { %1282 = vmax.xlane.f32.xlu1 %v4667_v45 }
 0x598   : > { %v1261_v0 = vpop.xlane.xlu0 %1260 }
 0x599   : > { %v1290_v53 = vsub.f32 %v1202_v58, %v1261_v0 }
 0x59a   : > { %v1257_v59 = vpop.xlane.xlu1 %1256 }
 0x59b   : > { %v1308_v63 = vmul.f32 1.442695, %v1290_v53  ;;  %v1288_v19 = vsub.f32 %v1194_v62, %v1257_v59 }
 0x59d   : > { %3703 = vpow2.f32 %v1308_v63  ;;  %v1304_v55 = vmul.f32 1.442695, %v1288_v19 }
 0x59e   : > { %v1263_v10 = vpop.xlane.xlu1 %1262  ;;  %v1259_v4 = vpop.xlane.xlu0 %1258 }
 0x59f   : > { %v1291_v13 = vsub.f32 %v1205_v28, %v1263_v10  ;;  %3705 = vpow2.f32 %v1304_v55  ;;  %v1289_v14 = vsub.f32 %v4605_v8, %v1259_v4 }
 0x5a1   : > { %v1310_v42 = vmul.f32 1.442695, %v1291_v13  ;;  %v1306_v30 = vmul.f32 1.442695, %v1289_v14 }
 0x5a2   : > { %v1430_v56 = vpop.permute.xlu0 %1429  ;;  %v1428_v48 = vpop.permute.xlu1 %1427 }
 0x5a3   : > { %3347 = vmatprep.subr.bf16.mxu1 %v1430_v56  ;;  %3707 = vpow2.f32 %v1310_v42 }
 0x5a4   : > { %3348 = vmatpush3.bf16.msra.mxu1 %v1430_v56  ;;  %3709 = vpow2.f32 %v1306_v30 }
 0x5a5   : > { %3349 = vmatprep.subr.bf16.mxu1 %v1428_v48 }
 0x5a8   : > { %3350 = vmatpush3.bf16.msra.mxu1 %v1428_v48 }
 0x5aa   : > { %v4671_v58 = vpop.eup %3703 }
 0x5ab   : > { %1340 = vadd.xlane.f32.xlu1 %v4671_v58 }
 0x5ac   : > { %v4674_v62 = vpop.eup %3705 }
 0x5af   : > { %1336 = vadd.xlane.f32.xlu1 %v4674_v62 }
 0x5b0   : > { %v4677_v28 = vpop.eup %3707 }
 0x5b1   : > { %v4680_v8 = vpop.eup %3709 }
 0x5b3   : > { %1342 = vadd.xlane.f32.xlu1 %v4677_v28 }
 0x5b7   : > { %1338 = vadd.xlane.f32.xlu1 %v4680_v8 }
 0x5c8   : > { %1578 = vrot.lane.b32.xlu1 %v4177_v18, %s3994_s20 }
 0x5d3   : > { %v1271_v35 = vpop.xlane.xlu1 %1270  ;;  %v1269_v40 = vpop.xlane.xlu0 %1268 }
 0x5d4   : > { %v1294_v0 = vsub.f32 %v4613_v11, %v1269_v40  ;;  %v1295_v10 = vsub.f32 %v4616_v1, %v1271_v35 }
 0x5d6   : > { %v1316_v53 = vmul.f32 1.442695, %v1294_v0  ;;  %v1318_v14 = vmul.f32 1.442695, %v1295_v10 }
 0x5d7   : > { %v1267_v59 = vpop.xlane.xlu1 %1266  ;;  %v1265_v63 = vpop.xlane.xlu0 %1264 }
 0x5d8   : > { %v1293_v19 = vsub.f32 %v4624_v57, %v1267_v59  ;;  %v1292_v55 = vsub.f32 %v4621_v21, %v1265_v63  ;;  %3711 = vpow2.f32 %v1316_v53 }
 0x5da   : > { %v1314_v4 = vmul.f32 1.442695, %v1293_v19  ;;  %v1312_v13 = vmul.f32 1.442695, %v1292_v55 }
 0x5db   : > { %v1277_v42 = vpop.xlane.xlu0 %1276  ;;  %v1279_v11 = vpop.xlane.xlu1 %1278 }
 0x5dc   : > { %3713 = vpow2.f32 %v1314_v4  ;;  %v1298_v56 = vsub.f32 %v4629_v15, %v1277_v42  ;;  %v1299_v1 = vsub.f32 %v4632_v16, %v1279_v11 }
 0x5dd   : > { %3715 = vpow2.f32 %v1312_v13 }
 0x5de   : > { %3717 = vpow2.f32 %v1318_v14  ;;  %v1324_v30 = vmul.f32 1.442695, %v1298_v56 }
 0x5df   : > { %v1273_v48 = vpop.xlane.xlu0 %1272  ;;  %v1275_v59 = vpop.xlane.xlu1 %1274 }
 0x5e0   : > { %v1296_v40 = vsub.f32 %v4637_v20, %v1273_v48  ;;  %3719 = vpow2.f32 %v1324_v30  ;;  %v1326_v20 = vmul.f32 1.442695, %v1299_v1  ;;  %v1297_v55 = vsub.f32 %v4640_v22, %v1275_v59 }
 0x5e2   : > { %v1320_v35 = vmul.f32 1.442695, %v1296_v40 }
 0x5e3   : > { %v1285_v57 = vpop.xlane.xlu0 %1284  ;;  %v4704_v4 = vpop.permute.xlu1 %1584 }
 0x5e4   : > { %v1302_v21 = vsub.f32 %v4645_v27, %v1285_v57 }
 0x5e5   : > { %v4692_v0 = vpop.eup %3711 }
 0x5e6   : > { %v1332_v53 = vmul.f32 1.442695, %v1302_v21  ;;  %1348 = vadd.xlane.f32.xlu0 %v4692_v0 }
 0x5e7   : > { %v1281_v15 = vpop.xlane.xlu0 %1280 }
 0x5e8   : > { %3721 = vpow2.f32 %v1332_v53  ;;  %v1300_v63 = vsub.f32 %v4649_v60, %v1281_v15  ;;  %v1322_v60 = vmul.f32 1.442695, %v1297_v55 }
 0x5e9   : > { %v4697_v19 = vpop.eup %3713  ;;  %3723 = vpow2.f32 %v1320_v35 }
 0x5ea   : > { %v1328_v27 = vmul.f32 1.442695, %v1300_v63  ;;  %v4700_v10 = vpop.eup %3715  ;;  %1346 = vadd.xlane.f32.xlu0 %v4697_v19 }
 0x5eb   : > { %v1426_v16 = vpop.permute.xlu0 %1425  ;;  %v4708_v22 = vpop.eup %3717 }
 0x5ec   : > { %3725 = vpow2.f32 %v1328_v27  ;;  %1344 = vadd.xlane.f32.xlu1 %v4700_v10  ;;  %3351 = vmatprep.subr.bf16.mxu1 %v1426_v16 }
 0x5ed   : > { %3352 = vmatpush3.bf16.msra.mxu1 %v1426_v16  ;;  %3727 = vpow2.f32 %v1326_v20  ;;  %v4711_v13 = vpop.eup %3719 }
 0x5ee   : > { %3549 = vmatprep.subr.msk.bf16.mxu1 %vm636_vm1, %v4704_v4  ;;  %3729 = vpow2.f32 %v1322_v60 }
 0x5f0   : > { %1350 = vadd.xlane.f32.xlu1 %v4708_v22 }
 0x5f4   : > { %1356 = vadd.xlane.f32.xlu1 %v4711_v13 }
 0x5f5   : > { %v4714_v42 = vpop.eup %3721 }
 0x5f6   : > { %1364 = vadd.xlane.f32.xlu0 %v4714_v42  ;;  %v4717_v14 = vpop.eup %3723 }
 0x5f8   : > { %1352 = vadd.xlane.f32.xlu1 %v4717_v14 }
 0x5f9   : > { %v4720_v56 = vpop.eup %3725 }
 0x5fa   : > { %1360 = vadd.xlane.f32.xlu0 %v4720_v56  ;;  %v4723_v48 = vpop.eup %3727 }
 0x5fb   : > { %v4726_v11 = vpop.eup %3729 }
 0x5fc   : > { %1358 = vadd.xlane.f32.xlu1 %v4723_v48 }
 0x600   : > { %1354 = vadd.xlane.f32.xlu1 %v4726_v11 }
 0x614   : > { %v1287_v30 = vpop.xlane.xlu1 %1286 }
 0x615   : > { %v1303_v40 = vsub.f32 %v4663_v37, %v1287_v30 }
 0x617   : > { %v1334_v57 = vmul.f32 1.442695, %v1303_v40 }
 0x618   : > { %v1283_v21 = vpop.xlane.xlu1 %1282 }
 0x619   : > { %3731 = vpow2.f32 %v1334_v57  ;;  %v1301_v1 = vsub.f32 %v4667_v45, %v1283_v21  ;;  %v1583_v21 = vpop.permute.xlu0 %1582 }
 0x61b   : > { %v1330_v35 = vmul.f32 1.442695, %v1301_v1 }
 0x61d   : > { %3733 = vpow2.f32 %v1330_v35  ;;  %v1581_v1 = vpop.permute.xlu0 %1580 }
 0x626   : > { %v4731_v53 = vpop.eup %3731 }
 0x627   : > { %1366 = vadd.xlane.f32.xlu0 %v4731_v53 }
 0x62a   : > { %v4734_v59 = vpop.eup %3733 }
 0x62b   : > { %1362 = vadd.xlane.f32.xlu1 %v4734_v59 }
 0x634   : > { %v1341_v15 = vpop.xlane.xlu1 %1340 }
 0x635   : > { %3735 = vrcp.f32 %v1341_v15  ;;  %v1577_v15 = vpop.permute.xlu0 %1576 }
 0x638   : > { %v1337_v63 = vpop.xlane.xlu1 %1336 }
 0x639   : > { %3737 = vrcp.f32 %v1337_v63 }
 0x63c   : > { %v1343_v37 = vpop.xlane.xlu1 %1342  ;;  %1574 = vrot.lane.b32.xlu1 %v4180_v24, %s3994_s20 }
 0x63d   : > { %3739 = vrcp.f32 %v1343_v37  ;;  %1572 = vrot.lane.b32.xlu0 %v4194_v34, %s3994_s20 }
 0x640   : > { %v1339_v45 = vpop.xlane.xlu1 %1338  ;;  %1554 = vrot.lane.b32.xlu1 %v4170_v2, %s3995_s19 }
 0x641   : > { %3741 = vrcp.f32 %v1339_v45  ;;  %1570 = vrot.lane.b32.xlu0 %v4170_v2, %s3994_s20  ;;  %s5496_s20 = scalar_lea.sflag [#allocation3], %s359_s11 }
 0x642   : > { %v3736_v20 = vpop.eup %3735 }
 0x643   : > { %v1386_v55 = vmul.f32 %v3736_v20, %v4671_v58  ;;  %v1620_v20 = vsel %vm636_vm1, %v1577_v15, 0 }
 0x644   : > { %1558 = vrot.lane.b32.xlu1 %v4180_v24, %s3995_s19  ;;  %v1579_v35 = vpop.permute.xlu1 %1578 }
 0x645   : > { %1556 = vrot.lane.b32.xlu0 %v4194_v34, %s3995_s19  ;;  %2991 = vst [vmem:[%s4472_s16 + $0x90] sm:$0xff] %v1386_v55  ;;  %v1623_v63 = vsel %vm636_vm1, %v1579_v35, 0 }
 0x646   : > { %v3738_v27 = vpop.eup %3737 }
 0x647   : > { %v1384_v16 = vmul.f32 %v3738_v27, %v4674_v62 }
 0x648   : > { %1562 = vrot.lane.b32.xlu1 %v4177_v18, %s3995_s19 }
 0x649   : > { %1560 = vrot.lane.b32.xlu0 %v4190_v32, %s3995_s19  ;;  %2989 = vst [vmem:[%s4472_s16 + $0x80] sm:$0xff] %v1384_v16 }
 0x64a   : > { %v3740_v60 = vpop.eup %3739 }
 0x64b   : > { %v1387_v30 = vmul.f32 %v3740_v60, %v4677_v28  ;;  %v1632_v28 = vsel %vm636_vm1, %v4704_v4, 0  ;;  %v1626_v4 = vsel %vm636_vm1, %v1581_v1, 0 }
 0x64c   : > { %1566 = vrot.lane.b32.xlu1 %v4186_v29, %s3995_s19 }
 0x64d   : > { %1564 = vrot.lane.b32.xlu0 %v4174_v12, %s3995_s19  ;;  %2992 = vst [vmem:[%s4472_s16 + $0x98] sm:$0xff] %v1387_v30  ;;  %v1418_v57 = vpack.c.bf16 %v1387_v30, %v1386_v55 }
 0x64e   : > { %v3742_v58 = vpop.eup %3741 }
 0x64f   : > { %v1385_v40 = vmul.f32 %v3742_v58, %v4680_v8  ;;  %v1629_v8 = vsel %vm636_vm1, %v1583_v21, 0 }
 0x650   : > { %1912 = vrot.lane.b32.xlu1 %v4186_v29, %s3996_s21 }
 0x651   : > { %1568 = vrot.lane.b32.xlu0 %v4182_v25, %s3995_s19  ;;  %2990 = vst [vmem:[%s4472_s16 + $0x88] sm:$0xff] %v1385_v40  ;;  %v1417_v62 = vpack.c.bf16 %v1385_v40, %v1384_v16  ;;  %s4002_s19 = smov 24  }
 0x653   : > { %3353 = vmatprep.mubr.bf16.mxu1 %v1417_v62 }
 0x654   : > { %3354 = vmatmul.mubr.bf16.vlgmr.msra.gmra.mxu1 %v1418_v57 }
 0x655   : > { %3370 = vmatpush3.bf16.xpose.msra.mxu1 %v1632_v28  ;;  %1914 = vrot.lane.b32.xlu0 %v4182_v25, %s3996_s21 }
 0x656   : > { %3550 = vmatprep.subr.msk.bf16.mxu1 %vm636_vm1, %v1583_v21 }
 0x659   : > { %1910 = vrot.lane.b32.xlu0 %v4174_v12, %s3996_s21 }
 0x65d   : > { %3372 = vmatpush3.bf16.xpose.msra.mxu1 %v1629_v8  ;;  %1908 = vrot.lane.b32.xlu0 %v4177_v18, %s3996_s21 }
 0x65e   : > { %3551 = vmatprep.subr.msk.bf16.mxu1 %vm636_vm1, %v1581_v1 }
 0x661   : > { %1906 = vrot.lane.b32.xlu0 %v4190_v32, %s3996_s21 }
 0x665   : > { %3374 = vmatpush3.bf16.xpose.msra.mxu1 %v1626_v4 }
 0x666   : > { %3552 = vmatprep.subr.msk.bf16.mxu1 %vm636_vm1, %v1579_v35 }
 0x66d   : > { %3376 = vmatpush3.bf16.xpose.msra.mxu1 %v1623_v63 }
 0x66e   : > { %3553 = vmatprep.subr.msk.bf16.mxu1 %vm636_vm1, %v1577_v15 }
 0x66f   : > { %v1349_v37 = vpop.xlane.xlu0 %1348 }
 0x670   : > { %3743 = vrcp.f32 %v1349_v37 }
 0x673   : > { %v1347_v45 = vpop.xlane.xlu0 %1346 }
 0x674   : > { %3745 = vrcp.f32 %v1347_v45 }
 0x675   : > { %3378 = vmatpush3.bf16.xpose.msra.mxu1 %v1620_v20  ;;  %v1345_v55 = vpop.xlane.xlu1 %1344 }
 0x676   : > { %3747 = vrcp.f32 %v1345_v55 }
 0x679   : > { %v1351_v27 = vpop.xlane.xlu1 %1350 }
 0x67a   : > { %3749 = vrcp.f32 %v1351_v27 }
 0x67d   : > { %v1357_v16 = vpop.xlane.xlu1 %1356  ;;  %v3744_v60 = vpop.eup %3743 }
 0x67e   : > { %3751 = vrcp.f32 %v1357_v16  ;;  %v1390_v58 = vmul.f32 %v3744_v60, %v4692_v0 }
 0x67f   : > { %v1365_v30 = vpop.xlane.xlu0 %1364 }
 0x680   : > { %3753 = vrcp.f32 %v1365_v30  ;;  %2995 = vst [vmem:[%s4472_s16 + $0xb0] sm:$0xff] %v1390_v58 }
 0x681   : > { %v1353_v40 = vpop.xlane.xlu1 %1352  ;;  %v3746_v62 = vpop.eup %3745 }
 0x682   : > { %3755 = vrcp.f32 %v1353_v40  ;;  %v1389_v21 = vmul.f32 %v3746_v62, %v4697_v19 }
 0x683   : > { %v3748_v57 = vpop.eup %3747  ;;  %v1361_v28 = vpop.xlane.xlu0 %1360 }
 0x684   : > { %3757 = vrcp.f32 %v1361_v28  ;;  %v1388_v8 = vmul.f32 %v3748_v57, %v4700_v10  ;;  %2994 = vst [vmem:[%s4472_s16 + $0xa8] sm:$0xff] %v1389_v21 }
 0x685   : > { %v1359_v1 = vpop.xlane.xlu1 %1358 }
 0x686   : > { %3759 = vrcp.f32 %v1359_v1  ;;  %2993 = vst [vmem:[%s4472_s16 + $0xa0] sm:$0xff] %v1388_v8  ;;  %v1419_v4 = vpack.c.bf16 %v1389_v21, %v1388_v8 }
 0x687   : > { %v3750_v0 = vpop.eup %3749 }
 0x688   : > { %3357 = vmatprep.mubr.bf16.mxu1 %v1419_v4  ;;  %v1391_v35 = vmul.f32 %v3750_v0, %v4708_v22 }
 0x689   : > { %v1355_v15 = vpop.xlane.xlu1 %1354 }
 0x68a   : > { %3761 = vrcp.f32 %v1355_v15  ;;  %2996 = vst [vmem:[%s4472_s16 + $0xb8] sm:$0xff] %v1391_v35  ;;  %v1420_v19 = vpack.c.bf16 %v1391_v35, %v1390_v58 }
 0x68b   : > { %v3752_v63 = vpop.eup %3751 }
 0x68c   : > { %3358 = vmatmul.mubr.bf16.gmra.mxu1 %v1420_v19  ;;  %v1394_v10 = vmul.f32 %v3752_v63, %v4711_v13 }
 0x68d   : > { %v3754_v37 = vpop.eup %3753 }
 0x68e   : > { %2999 = vst [vmem:[%s4472_s16 + $0xd0] sm:$0xff] %v1394_v10  ;;  %v1398_v45 = vmul.f32 %v3754_v37, %v4714_v42 }
 0x68f   : > { %v3756_v20 = vpop.eup %3755 }
 0x690   : > { %v1392_v55 = vmul.f32 %v3756_v20, %v4717_v14  ;;  %3003 = vst [vmem:[%s4472_s16 + $0xf0] sm:$0xff] %v1398_v45 }
 0x691   : > { %v3758_v22 = vpop.eup %3757 }
 0x692   : > { %2997 = vst [vmem:[%s4472_s16 + $0xc0] sm:$0xff] %v1392_v55  ;;  %v1396_v27 = vmul.f32 %v3758_v22, %v4720_v56 }
 0x693   : > { %v3760_v16 = vpop.eup %3759 }
 0x694   : > { %v1395_v60 = vmul.f32 %v3760_v16, %v4723_v48  ;;  %3001 = vst [vmem:[%s4472_s16 + $0xe0] sm:$0xff] %v1396_v27 }
 0x696   : > { %3000 = vst [vmem:[%s4472_s16 + $0xd8] sm:$0xff] %v1395_v60  ;;  %v1422_v40 = vpack.c.bf16 %v1395_v60, %v1394_v10 }
 0x697   : > { %v3762_v30 = vpop.eup %3761 }
 0x698   : > { %v1393_v13 = vmul.f32 %v3762_v30, %v4726_v11 }
 0x69a   : > { %2998 = vst [vmem:[%s4472_s16 + $0xc8] sm:$0xff] %v1393_v13  ;;  %v1421_v58 = vpack.c.bf16 %v1393_v13, %v1392_v55 }
 0x69c   : > { %3361 = vmatprep.mubr.bf16.mxu1 %v1421_v58 }
 0x69d   : > { %3362 = vmatmul.mubr.bf16.gmra.mxu1 %v1422_v40 }
 0x6b0   : > { %v1367_v42 = vpop.xlane.xlu0 %1366 }
 0x6b1   : > { %3763 = vrcp.f32 %v1367_v42 }
 0x6b4   : > { %v1363_v14 = vpop.xlane.xlu1 %1362  ;;  %v1573_v62 = vpop.permute.xlu0 %1572 }
 0x6b5   : > { %3765 = vrcp.f32 %v1363_v14  ;;  %v1614_v0 = vsel %vm636_vm1, %v1573_v62, 0 }
 0x6b8   : > { %v1575_v56 = vpop.permute.xlu1 %1574  ;;  %v1571_v57 = vpop.permute.xlu0 %1570 }
 0x6b9   : > { %3554 = vmatprep.subr.msk.bf16.mxu1 %vm636_vm1, %v1575_v56  ;;  %v1617_v48 = vsel %vm636_vm1, %v1575_v56, 0  ;;  %v1611_v55 = vsel %vm636_vm1, %v1571_v57, 0 }
 0x6ba   : > { %3380 = vmatpush3.bf16.xpose.msra.mxu1 %v1617_v48 }
 0x6bb   : > { %3555 = vmatprep.subr.msk.bf16.mxu1 %vm636_vm1, %v1573_v62 }
 0x6bc   : > { %v1555_v11 = vpop.permute.xlu1 %1554  ;;  %v1557_v28 = vpop.permute.xlu0 %1556 }
 0x6be   : > { %v3764_v21 = vpop.eup %3763 }
 0x6bf   : > { %v1399_v8 = vmul.f32 %v3764_v21, %v4731_v53 }
 0x6c0   : > { %v1559_v1 = vpop.permute.xlu1 %1558  ;;  %v1561_v4 = vpop.permute.xlu0 %1560 }
 0x6c1   : > { %3004 = vst [vmem:[%s4472_s16 + $0xf8] sm:$0xff] %v1399_v8  ;;  %v1424_v37 = vpack.c.bf16 %v1399_v8, %v1398_v45 }
 0x6c2   : > { %v3766_v35 = vpop.eup %3765  ;;  %3382 = vmatpush3.bf16.xpose.msra.mxu1 %v1614_v0  ;;  %v4944_v0 = vld [vmem:[%s5585_s2 + $0x50] sm:$0xff] }
 0x6c3   : > { %3556 = vmatprep.subr.msk.bf16.mxu1 %vm636_vm1, %v1571_v57  ;;  %v1397_v15 = vmul.f32 %v3766_v35, %v4734_v59  ;;  %v4934_v57 = vld [vmem:[%s5585_s2 + $0x28] sm:$0xff] }
 0x6c4   : > { %v1563_v19 = vpop.permute.xlu1 %1562  ;;  %v1565_v63 = vpop.permute.xlu0 %1564 }
 0x6c5   : > { %3002 = vst [vmem:[%s4472_s16 + $0xe8] sm:$0xff] %v1397_v15  ;;  %v1423_v10 = vpack.c.bf16 %v1397_v15, %v1396_v27 }
 0x6c7   : > { %3365 = vmatprep.mubr.bf16.mxu1 %v1423_v10 }
 0x6c8   : > { %v1567_v20 = vpop.permute.xlu1 %1566  ;;  %3366 = vmatmul.mubr.bf16.gmra.mxu1 %v1424_v37  ;;  %v1569_v53 = vpop.permute.xlu0 %1568 }
 0x6c9   : > { %3385 = vmatprep.mubr.msk.bf16.mxu1 %vm636_vm1, %v1555_v11  ;;  %v4952_v11 = vld [vmem:[%s5585_s2 + $0x58] sm:$0xff] }
 0x6ca   : > { %3384 = vmatpush3.bf16.xpose.msra.mxu1 %v1611_v55 }
 0x6cc   : > { %v1915_v22 = vpop.permute.xlu0 %1914  ;;  %v1913_v16 = vpop.permute.xlu1 %1912 }
 0x6cd   : > { %3401 = vmatprep.subr.bf16.mxu0 %v1915_v22 }
 0x6ce   : > { %3402 = vmatpush3.bf16.msra.mxu0 %v1915_v22 }
 0x6cf   : > { %3403 = vmatprep.subr.bf16.mxu0 %v1913_v16 }
 0x6d0   : > { %v1911_v59 = vpop.permute.xlu0 %1910 }
 0x6d1   : > { %3386 = vmatmul.mubr.msk.bf16.vlgmr.msra.gmra.mxu1 %vm636_vm1, %v1557_v28 }
 0x6d2   : > { %3389 = vmatprep.mubr.msk.bf16.mxu1 %vm636_vm1, %v1559_v1  ;;  %3404 = vmatpush3.bf16.msra.mxu0 %v1913_v16  ;;  %v4876_v16 = vld [vmem:[%s5585_s2] sm:$0xff] }
 0x6d3   : > { %3405 = vmatprep.subr.bf16.mxu0 %v1911_v59  ;;  %v4926_v1 = vld [vmem:[%s5585_s2 + $0x20] sm:$0xff] }
 0x6d4   : > { %v1909_v45 = vpop.permute.xlu0 %1908 }
 0x6d6   : > { %3406 = vmatpush3.bf16.msra.mxu0 %v1911_v59 }
 0x6d7   : > { %3407 = vmatprep.subr.bf16.mxu0 %v1909_v45 }
 0x6d8   : > { %v1907_v27 = vpop.permute.xlu0 %1906 }
 0x6d9   : > { %3390 = vmatmul.mubr.msk.bf16.gmra.mxu1 %vm636_vm1, %v1561_v4 }
 0x6da   : > { %3393 = vmatprep.mubr.msk.bf16.mxu1 %vm636_vm1, %v1563_v19  ;;  %3408 = vmatpush3.bf16.msra.mxu0 %v1909_v45 }
 0x6db   : > { %3409 = vmatprep.subr.bf16.mxu0 %v1907_v27 }
 0x6de   : > { %3410 = vmatpush3.bf16.msra.mxu0 %v1907_v27 }
 0x6e1   : > { %3394 = vmatmul.mubr.msk.bf16.gmra.mxu1 %vm636_vm1, %v1565_v63 }
 0x6e2   : > { %3397 = vmatprep.mubr.msk.bf16.mxu1 %vm636_vm1, %v1567_v20 }
 0x6e9   : > { %3398 = vmatmul.mubr.msk.bf16.gmra.mxu1 %vm636_vm1, %v1569_v53  ;;  %v4868_v53 = vld [vmem:[%s5585_s2 + $0x10] sm:$0xff] }
 0x714   : > { %v4817_v60 = vpop.f32.mrf.mxu1 }
 0x716   : > { %v4819_v30 = vpop.f32.mrf.mxu1 }
 0x718   : > { %v4821_v13 = vpop.f32.mrf.mxu1 }
 0x71a   : > { %v4825_v40 = vpop.f32.mrf.mxu1 }
 0x74c   : > { %v4829_v14 = vpop.f32.mrf.mxu1 }
 0x74d   : > { %5634 = vst [vmem:[#allocation21_spill] sm:$0xff] %v4829_v14 }
 0x74e   : > { %v4831_v62 = vpop.f32.mrf.mxu1 }
 0x750   : > { %v4833_v56 = vpop.f32.mrf.mxu1 }
 0x752   : > { %v4837_v48 = vpop.f32.mrf.mxu1 }
 0x75d   : > { %v4841_v28 = vpop.f32.mrf.mxu1 }
 0x75e   : > { %5635 = vst [vmem:[#allocation22_spill] sm:$0xff] %v4841_v28 }
 0x75f   : > { %v4843_v21 = vpop.f32.mrf.mxu1 }
 0x761   : > { %v4845_v8 = vpop.f32.mrf.mxu1 }
 0x762   : > { %5636 = vst [vmem:[#allocation23_spill] sm:$0xff] %v4845_v8 }
 0x763   : > { %v4849_v4 = vpop.f32.mrf.mxu1 }
 0x788   : > { %v4853_v35 = vpop.f32.mrf.mxu1 }
 0x789   : > { %5637 = vst [vmem:[#allocation24_spill] sm:$0xff] %v4853_v35 }
 0x78a   : > { %v4855_v15 = vpop.f32.mrf.mxu1 }
 0x78b   : > { %5638 = vst [vmem:[#allocation25_spill] sm:$0xff] %v4855_v15 }
 0x78c   : > { %v4857_v19 = vpop.f32.mrf.mxu1 }
 0x78d   : > { %5639 = vst [vmem:[#allocation26_spill] sm:$0xff] %v4857_v19 }
 0x78e   : > { %v4861_v10 = vpop.f32.mrf.mxu1 }
 0x78f   : > { %5640 = vst [vmem:[#allocation27_spill] sm:$0xff] %v4861_v10 }
 0x791   : > { %v3387_v20 = vpop.f32.mrf.mxu1 }
 0x792   : > { %v4871_v55 = vadd.f32 %v4868_v53, %v3387_v20  ;;  %v4886_v20 = vld [vmem:[%s5585_s2 + $0x18] sm:$0xff] }
 0x793   : > { %v1668_v22 = vpop.f32.mrf.mxu1 }
 0x794   : > { %v4879_v59 = vadd.f32 %v4876_v16, %v1668_v22  ;;  %1735 = vmax.xlane.f32.xlu0 %v4871_v55 }
 0x795   : > { %v3388_v45 = vpop.f32.mrf.mxu1 }
 0x796   : > { %1731 = vmax.xlane.f32.xlu1 %v4879_v59  ;;  %v4889_v54 = vadd.f32 %v4886_v20, %v3388_v45 }
 0x797   : > { %v1671_v27 = vpop.f32.mrf.mxu1 }
 0x798   : > { %v4897_v22 = vadd.f32 %v4894_v44, %v1671_v27  ;;  %v4908_v27 = vld [vmem:[%s5585_s2 + $0x30] sm:$0xff] }
 0x799   : > { %v3391_v45 = vpop.f32.mrf.mxu1 }
 0x79a   : > { %1733 = vmax.xlane.f32.xlu0 %v4897_v22  ;;  %1737 = vmax.xlane.f32.xlu1 %v4889_v54  ;;  %v4911_v23 = vadd.f32 %v4908_v27, %v3391_v45 }
 0x79b   : > { %v1684_v51 = vpop.f32.mrf.mxu1 }
 0x79c   : > { %v4929_v45 = vadd.f32 %v4926_v1, %v1684_v51 }
 0x79d   : > { %v3392_v41 = vpop.f32.mrf.mxu1 }
 0x79e   : > { %v4919_v37 = vadd.f32 %v4916_v6, %v3392_v41 }
 0x79f   : > { %v1687_v31 = vpop.f32.mrf.mxu1 }
 0x7a0   : > { %v4937_v41 = vadd.f32 %v4934_v57, %v1687_v31 }
 0x7a1   : > { %v3395_v33 = vpop.f32.mrf.mxu1 }
 0x7a2   : > { %v4947_v51 = vadd.f32 %v4944_v0, %v3395_v33 }
 0x7a3   : > { %v1700_v63 = vpop.f32.mrf.mxu1 }
 0x7a4   : > { %v4965_v33 = vadd.f32 %v4962_v52, %v1700_v63 }
 0x7a5   : > { %v3396_v42 = vpop.f32.mrf.mxu1 }
 0x7a6   : > { %v4955_v31 = vadd.f32 %v4952_v11, %v3396_v42 }
 0x7a7   : > { %v1703_v58 = vpop.f32.mrf.mxu1 }
 0x7a8   : > { %v4973_v42 = vadd.f32 %v4970_v46, %v1703_v58  ;;  %v4989_v58 = vld [vmem:[%s5585_s2 + $0x60] sm:$0xff] }
 0x7a9   : > { %v3399_v47 = vpop.f32.mrf.mxu1 }
 0x7aa   : > { %v4983_v63 = vadd.f32 %v4980_v49, %v3399_v47  ;;  %v5008_v47 = vld [vmem:[%s5585_s2 + $0x78] sm:$0xff] }
 0x7ab   : > { %1902 = vrot.lane.b32.xlu1 %v4194_v34, %s3996_s21  ;;  %v1716_v36 = vpop.f32.mrf.mxu1 }
 0x7ac   : > { %v4992_v39 = vadd.f32 %v4989_v58, %v1716_v36 }
 0x7ad   : > { %v3400_v36 = vpop.f32.mrf.mxu1 }
 0x7ae   : > { %v5011_v38 = vadd.f32 %v5008_v47, %v3400_v36 }
 0x7af   : > { %v1719_v43 = vpop.f32.mrf.mxu1 }
 0x7b0   : > { %1904 = vrot.lane.b32.xlu0 %v4180_v24, %s3996_s21  ;;  %v5020_v9 = vadd.f32 %v5017_v5, %v1719_v43 }
 0x7cf   : > { %1743 = vmax.xlane.f32.xlu0 %v4911_v23  ;;  %1745 = vmax.xlane.f32.xlu1 %v4919_v37 }
 0x7d3   : > { %1741 = vmax.xlane.f32.xlu1 %v4937_v41  ;;  %1739 = vmax.xlane.f32.xlu0 %v4929_v45 }
 0x7d7   : > { %1751 = vmax.xlane.f32.xlu0 %v4947_v51  ;;  %1753 = vmax.xlane.f32.xlu1 %v4955_v31 }
 0x7db   : > { %1749 = vmax.xlane.f32.xlu1 %v4973_v42  ;;  %1747 = vmax.xlane.f32.xlu0 %v4965_v33 }
 0x7df   : > { %1759 = vmax.xlane.f32.xlu0 %v4983_v63 }
 0x7e3   : > { %1755 = vmax.xlane.f32.xlu0 %v4992_v39 }
 0x7ec   : > { %2059 = vrot.lane.b32.xlu1 %v4182_v25, %s3997_s12 }
 0x7f9   : > { %1900 = vrot.lane.b32.xlu0 %v4170_v2, %s3996_s21 }
 0x7fd   : > { %2057 = vrot.lane.b32.xlu0 %v4186_v29, %s3997_s12 }
 0x801   : > { %2055 = vrot.lane.b32.xlu0 %v4174_v12, %s3997_s12 }
 0x805   : > { %2051 = vrot.lane.b32.xlu0 %v4190_v32, %s3997_s12 }
 0x810   : > { %1761 = vmax.xlane.f32.xlu1 %v5011_v38 }
 0x814   : > { %1757 = vmax.xlane.f32.xlu1 %v5020_v9 }
 0x81d   : > { %v1736_v7 = vpop.xlane.xlu0 %1735 }
 0x81e   : > { %v1765_v50 = vsub.f32 %v4871_v55, %v1736_v7 }
 0x81f   : > { %v1732_v26 = vpop.xlane.xlu1 %1731 }
 0x820   : > { %v1783_v17 = vmul.f32 1.442695, %v1765_v50  ;;  %v1763_v36 = vsub.f32 %v4879_v59, %v1732_v26 }
 0x822   : > { %3767 = vpow2.f32 %v1783_v17  ;;  %v1779_v61 = vmul.f32 1.442695, %v1763_v36 }
 0x823   : > { %v1738_v3 = vpop.xlane.xlu1 %1737  ;;  %v1734_v15 = vpop.xlane.xlu0 %1733 }
 0x824   : > { %v1766_v10 = vsub.f32 %v4889_v54, %v1738_v3  ;;  %3769 = vpow2.f32 %v1779_v61  ;;  %v1764_v43 = vsub.f32 %v4897_v22, %v1734_v15 }
 0x826   : > { %v1785_v35 = vmul.f32 1.442695, %v1766_v10  ;;  %v1781_v7 = vmul.f32 1.442695, %v1764_v43 }
 0x827   : > { %v1905_v19 = vpop.permute.xlu0 %1904  ;;  %v1903_v28 = vpop.permute.xlu1 %1902 }
 0x828   : > { %3411 = vmatprep.subr.bf16.mxu0 %v1905_v19  ;;  %3771 = vpow2.f32 %v1785_v35 }
 0x829   : > { %3412 = vmatpush3.bf16.msra.mxu0 %v1905_v19  ;;  %3773 = vpow2.f32 %v1781_v7 }
 0x82a   : > { %3413 = vmatprep.subr.bf16.mxu0 %v1903_v28 }
 0x82d   : > { %3414 = vmatpush3.bf16.msra.mxu0 %v1903_v28 }
 0x82f   : > { %v5027_v26 = vpop.eup %3767 }
 0x830   : > { %1815 = vadd.xlane.f32.xlu1 %v5027_v26 }
 0x831   : > { %v5030_v17 = vpop.eup %3769 }
 0x834   : > { %1811 = vadd.xlane.f32.xlu1 %v5030_v17 }
 0x835   : > { %v5033_v61 = vpop.eup %3771 }
 0x836   : > { %v5036_v3 = vpop.eup %3773 }
 0x838   : > { %1817 = vadd.xlane.f32.xlu1 %v5033_v61 }
 0x83c   : > { %1813 = vadd.xlane.f32.xlu1 %v5036_v3 }
 0x84d   : > { %2053 = vrot.lane.b32.xlu1 %v4177_v18, %s3997_s12 }
 0x858   : > { %v1746_v50 = vpop.xlane.xlu1 %1745  ;;  %v1744_v54 = vpop.xlane.xlu0 %1743 }
 0x859   : > { %v1769_v28 = vsub.f32 %v4911_v23, %v1744_v54  ;;  %v1770_v59 = vsub.f32 %v4919_v37, %v1746_v50 }
 0x85b   : > { %v1791_v35 = vmul.f32 1.442695, %v1769_v28  ;;  %v1793_v7 = vmul.f32 1.442695, %v1770_v59 }
 0x85c   : > { %v1742_v15 = vpop.xlane.xlu1 %1741  ;;  %v1740_v19 = vpop.xlane.xlu0 %1739 }
 0x85d   : > { %v1768_v10 = vsub.f32 %v4937_v41, %v1742_v15  ;;  %v1767_v55 = vsub.f32 %v4929_v45, %v1740_v19  ;;  %3775 = vpow2.f32 %v1791_v35 }
 0x85f   : > { %v1789_v22 = vmul.f32 1.442695, %v1768_v10  ;;  %v1787_v36 = vmul.f32 1.442695, %v1767_v55 }
 0x860   : > { %v1752_v43 = vpop.xlane.xlu0 %1751  ;;  %v1754_v23 = vpop.xlane.xlu1 %1753 }
 0x861   : > { %3777 = vpow2.f32 %v1789_v22  ;;  %v1773_v8 = vsub.f32 %v4947_v51, %v1752_v43  ;;  %v1774_v37 = vsub.f32 %v4955_v31, %v1754_v23 }
 0x862   : > { %3779 = vpow2.f32 %v1787_v36 }
 0x863   : > { %3781 = vpow2.f32 %v1793_v7  ;;  %v1799_v54 = vmul.f32 1.442695, %v1773_v8 }
 0x864   : > { %v1748_v14 = vpop.xlane.xlu0 %1747  ;;  %v1750_v19 = vpop.xlane.xlu1 %1749 }
 0x865   : > { %v1771_v28 = vsub.f32 %v4965_v33, %v1748_v14  ;;  %3783 = vpow2.f32 %v1799_v54  ;;  %v1801_v14 = vmul.f32 1.442695, %v1774_v37  ;;  %v1772_v33 = vsub.f32 %v4973_v42, %v1750_v19 }
 0x867   : > { %v1795_v50 = vmul.f32 1.442695, %v1771_v28 }
 0x868   : > { %v1760_v41 = vpop.xlane.xlu0 %1759  ;;  %v5060_v59 = vpop.permute.xlu1 %2059 }
 0x869   : > { %v1777_v45 = vsub.f32 %v4983_v63, %v1760_v41 }
 0x86a   : > { %v5048_v35 = vpop.eup %3775 }
 0x86b   : > { %v1807_v15 = vmul.f32 1.442695, %v1777_v45  ;;  %1823 = vadd.xlane.f32.xlu0 %v5048_v35 }
 0x86c   : > { %v1756_v51 = vpop.xlane.xlu0 %1755 }
 0x86d   : > { %3785 = vpow2.f32 %v1807_v15  ;;  %v1775_v10 = vsub.f32 %v4992_v39, %v1756_v51  ;;  %v1797_v39 = vmul.f32 1.442695, %v1772_v33 }
 0x86e   : > { %v5053_v8 = vpop.eup %3777  ;;  %3787 = vpow2.f32 %v1795_v50 }
 0x86f   : > { %v1803_v63 = vmul.f32 1.442695, %v1775_v10  ;;  %v5056_v55 = vpop.eup %3779  ;;  %1821 = vadd.xlane.f32.xlu0 %v5053_v8 }
 0x870   : > { %v1901_v31 = vpop.permute.xlu0 %1900  ;;  %v5064_v42 = vpop.eup %3781 }
 0x871   : > { %3789 = vpow2.f32 %v1803_v63  ;;  %1819 = vadd.xlane.f32.xlu1 %v5056_v55  ;;  %3415 = vmatprep.subr.bf16.mxu0 %v1901_v31 }
 0x872   : > { %3416 = vmatpush3.bf16.msra.mxu0 %v1901_v31  ;;  %3791 = vpow2.f32 %v1801_v14  ;;  %v5067_v22 = vpop.eup %3783 }
 0x873   : > { %3557 = vmatprep.subr.msk.bf16.mxu0 %vm636_vm1, %v5060_v59  ;;  %3793 = vpow2.f32 %v1797_v39 }
 0x875   : > { %1825 = vadd.xlane.f32.xlu1 %v5064_v42 }
 0x879   : > { %1831 = vadd.xlane.f32.xlu1 %v5067_v22 }
 0x87a   : > { %v5070_v36 = vpop.eup %3785 }
 0x87b   : > { %1839 = vadd.xlane.f32.xlu0 %v5070_v36  ;;  %v5073_v43 = vpop.eup %3787 }
 0x87d   : > { %1827 = vadd.xlane.f32.xlu1 %v5073_v43 }
 0x87e   : > { %v5076_v7 = vpop.eup %3789 }
 0x87f   : > { %1835 = vadd.xlane.f32.xlu0 %v5076_v7  ;;  %v5079_v23 = vpop.eup %3791 }
 0x880   : > { %v5082_v54 = vpop.eup %3793 }
 0x881   : > { %1833 = vadd.xlane.f32.xlu1 %v5079_v23 }
 0x885   : > { %1829 = vadd.xlane.f32.xlu1 %v5082_v54 }
 0x899   : > { %v1762_v28 = vpop.xlane.xlu1 %1761 }
 0x89a   : > { %v1778_v41 = vsub.f32 %v5011_v38, %v1762_v28 }
 0x89c   : > { %v1809_v45 = vmul.f32 1.442695, %v1778_v41 }
 0x89d   : > { %v1758_v37 = vpop.xlane.xlu1 %1757 }
 0x89e   : > { %3795 = vpow2.f32 %v1809_v45  ;;  %v1776_v50 = vsub.f32 %v5020_v9, %v1758_v37 }
 0x8a0   : > { %v1805_v15 = vmul.f32 1.442695, %v1776_v50  ;;  %v2058_v50 = vpop.permute.xlu0 %2057 }
 0x8a2   : > { %3797 = vpow2.f32 %v1805_v15 }
 0x8ab   : > { %v5087_v19 = vpop.eup %3795 }
 0x8ac   : > { %1841 = vadd.xlane.f32.xlu0 %v5087_v19 }
 0x8af   : > { %v5090_v51 = vpop.eup %3797 }
 0x8b0   : > { %1837 = vadd.xlane.f32.xlu1 %v5090_v51 }
 0x8b9   : > { %v1816_v10 = vpop.xlane.xlu1 %1815 }
 0x8ba   : > { %3799 = vrcp.f32 %v1816_v10 }
 0x8bd   : > { %v1812_v14 = vpop.xlane.xlu1 %1811 }
 0x8be   : > { %3801 = vrcp.f32 %v1812_v14 }
 0x8c1   : > { %v1818_v38 = vpop.xlane.xlu1 %1817  ;;  %2049 = vrot.lane.b32.xlu1 %v4180_v24, %s3997_s12 }
 0x8c2   : > { %3803 = vrcp.f32 %v1818_v38  ;;  %2047 = vrot.lane.b32.xlu0 %v4194_v34, %s3997_s12 }
 0x8c5   : > { %v1814_v9 = vpop.xlane.xlu1 %1813  ;;  %2029 = vrot.lane.b32.xlu1 %v4170_v2, %s3998_s22 }
 0x8c6   : > { %3805 = vrcp.f32 %v1814_v9  ;;  %2045 = vrot.lane.b32.xlu0 %v4170_v2, %s3997_s12 }
 0x8c7   : > { %v3800_v33 = vpop.eup %3799 }
 0x8c8   : > { %v1861_v63 = vmul.f32 %v3800_v33, %v5027_v26 }
 0x8c9   : > { %2033 = vrot.lane.b32.xlu1 %v4180_v24, %s3998_s22  ;;  %v2054_v10 = vpop.permute.xlu1 %2053 }
 0x8ca   : > { %2031 = vrot.lane.b32.xlu0 %v4194_v34, %s3998_s22  ;;  %3015 = vst [vmem:[%s4472_s16 + $0x110] sm:$0xff] %v1861_v63  ;;  %v2098_v14 = vsel %vm636_vm1, %v2054_v10, 0 }
 0x8cb   : > { %v3802_v31 = vpop.eup %3801 }
 0x8cc   : > { %v1859_v39 = vmul.f32 %v3802_v31, %v5030_v17 }
 0x8cd   : > { %2037 = vrot.lane.b32.xlu1 %v4177_v18, %s3998_s22 }
 0x8ce   : > { %2035 = vrot.lane.b32.xlu0 %v4190_v32, %s3998_s22  ;;  %3013 = vst [vmem:[%s4472_s16 + $0x100] sm:$0xff] %v1859_v39 }
 0x8cf   : > { %v3804_v28 = vpop.eup %3803 }
 0x8d0   : > { %v1862_v41 = vmul.f32 %v3804_v28, %v5033_v61  ;;  %v2107_v61 = vsel %vm636_vm1, %v5060_v59, 0 }
 0x8d1   : > { %2041 = vrot.lane.b32.xlu1 %v4186_v29, %s3998_s22 }
 0x8d2   : > { %2039 = vrot.lane.b32.xlu0 %v4174_v12, %s3998_s22  ;;  %3016 = vst [vmem:[%s4472_s16 + $0x118] sm:$0xff] %v1862_v41  ;;  %v1893_v37 = vpack.c.bf16 %v1862_v41, %v1861_v63 }
 0x8d3   : > { %v3806_v26 = vpop.eup %3805 }
 0x8d4   : > { %v1860_v45 = vmul.f32 %v3806_v26, %v5036_v3  ;;  %v2104_v3 = vsel %vm636_vm1, %v2058_v50, 0 }
 0x8d5   : > { %2387 = vrot.lane.b32.xlu1 %v4186_v29, %s3999_s23  ;;  %v2056_v29 = vpop.permute.xlu0 %2055 }
 0x8d6   : > { %2043 = vrot.lane.b32.xlu0 %v4182_v25, %s3998_s22  ;;  %3014 = vst [vmem:[%s4472_s16 + $0x108] sm:$0xff] %v1860_v45  ;;  %v1892_v17 = vpack.c.bf16 %v1860_v45, %v1859_v39  ;;  %v2101_v15 = vsel %vm636_vm1, %v2056_v29, 0  ;;  %s3072_s22 = sshll.u32 %s3979_s30, 13  ;;  %s4003_s30 = smov [#allocation2]  }
 0x8d7   : > { %s5490_s14 = scalar_lea.hbm %s5591_s8, %s3072_s22 }
 0x8d8   : > { %3417 = vmatprep.mubr.bf16.mxu0 %v1892_v17 }
 0x8d9   : > { %3418 = vmatmul.mubr.bf16.vlgmr.msra.gmra.mxu0 %v1893_v37  ;;  %v2052_v59 = vpop.permute.xlu0 %2051 }
 0x8da   : > { %3434 = vmatpush3.bf16.xpose.msra.mxu0 %v2107_v61  ;;  %2389 = vrot.lane.b32.xlu0 %v4182_v25, %s3999_s23  ;;  %v2095_v38 = vsel %vm636_vm1, %v2052_v59, 0 }
 0x8db   : > { %3558 = vmatprep.subr.msk.bf16.mxu0 %vm636_vm1, %v2058_v50 }
 0x8e2   : > { %3436 = vmatpush3.bf16.xpose.msra.mxu0 %v2104_v3 }
 0x8e3   : > { %3559 = vmatprep.subr.msk.bf16.mxu0 %vm636_vm1, %v2056_v29 }
 0x8ea   : > { %3438 = vmatpush3.bf16.xpose.msra.mxu0 %v2101_v15 }
 0x8eb   : > { %3560 = vmatprep.subr.msk.bf16.mxu0 %vm636_vm1, %v2054_v10 }
 0x8f2   : > { %3440 = vmatpush3.bf16.xpose.msra.mxu0 %v2098_v14 }
 0x8f3   : > { %3561 = vmatprep.subr.msk.bf16.mxu0 %vm636_vm1, %v2052_v59 }
 0x8f4   : > { %v1824_v25 = vpop.xlane.xlu0 %1823 }
 0x8f5   : > { %3807 = vrcp.f32 %v1824_v25 }
 0x8f8   : > { %v1822_v9 = vpop.xlane.xlu0 %1821 }
 0x8f9   : > { %3809 = vrcp.f32 %v1822_v9 }
 0x8fa   : > { %3442 = vmatpush3.bf16.xpose.msra.mxu0 %v2095_v38  ;;  %v1820_v33 = vpop.xlane.xlu1 %1819 }
 0x8fb   : > { %3811 = vrcp.f32 %v1820_v33 }
 0x8fe   : > { %v1826_v63 = vpop.xlane.xlu1 %1825 }
 0x8ff   : > { %3813 = vrcp.f32 %v1826_v63 }
 0x902   : > { %v1832_v31 = vpop.xlane.xlu1 %1831  ;;  %v3808_v39 = vpop.eup %3807 }
 0x903   : > { %3815 = vrcp.f32 %v1832_v31  ;;  %v1865_v41 = vmul.f32 %v3808_v39, %v5048_v35 }
 0x904   : > { %v1840_v28 = vpop.xlane.xlu0 %1839 }
 0x905   : > { %3817 = vrcp.f32 %v1840_v28  ;;  %3019 = vst [vmem:[%s4472_s16 + $0x130] sm:$0xff] %v1865_v41 }
 0x906   : > { %v1828_v26 = vpop.xlane.xlu1 %1827  ;;  %v3810_v45 = vpop.eup %3809 }
 0x907   : > { %3819 = vrcp.f32 %v1828_v26  ;;  %v1864_v61 = vmul.f32 %v3810_v45, %v5053_v8 }
 0x908   : > { %v3812_v17 = vpop.eup %3811  ;;  %v1836_v37 = vpop.xlane.xlu0 %1835 }
 0x909   : > { %3821 = vrcp.f32 %v1836_v37  ;;  %v1863_v50 = vmul.f32 %v3812_v17, %v5056_v55  ;;  %3018 = vst [vmem:[%s4472_s16 + $0x128] sm:$0xff] %v1864_v61 }
 0x90a   : > { %v1834_v3 = vpop.xlane.xlu1 %1833 }
 0x90b   : > { %3823 = vrcp.f32 %v1834_v3  ;;  %3017 = vst [vmem:[%s4472_s16 + $0x120] sm:$0xff] %v1863_v50  ;;  %v1894_v29 = vpack.c.bf16 %v1864_v61, %v1863_v50 }
 0x90c   : > { %v3814_v35 = vpop.eup %3813 }
 0x90d   : > { %3421 = vmatprep.mubr.bf16.mxu0 %v1894_v29  ;;  %v1866_v15 = vmul.f32 %v3814_v35, %v5064_v42 }
 0x90e   : > { %v1830_v10 = vpop.xlane.xlu1 %1829 }
 0x90f   : > { %3825 = vrcp.f32 %v1830_v10  ;;  %3020 = vst [vmem:[%s4472_s16 + $0x138] sm:$0xff] %v1866_v15  ;;  %v1895_v8 = vpack.c.bf16 %v1866_v15, %v1865_v41 }
 0x910   : > { %v3816_v59 = vpop.eup %3815 }
 0x911   : > { %3422 = vmatmul.mubr.bf16.gmra.mxu0 %v1895_v8  ;;  %v1869_v55 = vmul.f32 %v3816_v59, %v5067_v22 }
 0x912   : > { %v3818_v14 = vpop.eup %3817 }
 0x913   : > { %3023 = vst [vmem:[%s4472_s16 + $0x150] sm:$0xff] %v1869_v55  ;;  %v1873_v25 = vmul.f32 %v3818_v14, %v5070_v36 }
 0x914   : > { %v3820_v38 = vpop.eup %3819 }
 0x915   : > { %v1867_v9 = vmul.f32 %v3820_v38, %v5073_v43  ;;  %3027 = vst [vmem:[%s4472_s16 + $0x170] sm:$0xff] %v1873_v25 }
 0x916   : > { %v3822_v42 = vpop.eup %3821 }
 0x917   : > { %3021 = vst [vmem:[%s4472_s16 + $0x140] sm:$0xff] %v1867_v9  ;;  %v1871_v33 = vmul.f32 %v3822_v42, %v5076_v7 }
 0x918   : > { %v3824_v63 = vpop.eup %3823 }
 0x919   : > { %v1870_v31 = vmul.f32 %v3824_v63, %v5079_v23  ;;  %3025 = vst [vmem:[%s4472_s16 + $0x160] sm:$0xff] %v1871_v33 }
 0x91b   : > { %3024 = vst [vmem:[%s4472_s16 + $0x158] sm:$0xff] %v1870_v31  ;;  %v1897_v41 = vpack.c.bf16 %v1870_v31, %v1869_v55 }
 0x91c   : > { %v3826_v39 = vpop.eup %3825 }
 0x91d   : > { %v1868_v22 = vmul.f32 %v3826_v39, %v5082_v54 }
 0x91f   : > { %3022 = vst [vmem:[%s4472_s16 + $0x148] sm:$0xff] %v1868_v22  ;;  %v1896_v28 = vpack.c.bf16 %v1868_v22, %v1867_v9 }
 0x921   : > { %3425 = vmatprep.mubr.bf16.mxu0 %v1896_v28 }
 0x922   : > { %3426 = vmatmul.mubr.bf16.gmra.mxu0 %v1897_v41 }
 0x935   : > { %v1842_v36 = vpop.xlane.xlu0 %1841 }
 0x936   : > { %3827 = vrcp.f32 %v1842_v36 }
 0x939   : > { %v1838_v43 = vpop.xlane.xlu1 %1837  ;;  %v2048_v26 = vpop.permute.xlu0 %2047 }
 0x93a   : > { %3829 = vrcp.f32 %v1838_v43  ;;  %v2089_v29 = vsel %vm636_vm1, %v2048_v26, 0 }
 0x93d   : > { %v2050_v7 = vpop.permute.xlu1 %2049  ;;  %v2046_v45 = vpop.permute.xlu0 %2045 }
 0x93e   : > { %v2092_v23 = vsel %vm636_vm1, %v2050_v7, 0  ;;  %3562 = vmatprep.subr.msk.bf16.mxu0 %vm636_vm1, %v2050_v7  ;;  %v2086_v38 = vsel %vm636_vm1, %v2046_v45, 0 }
 0x93f   : > { %3444 = vmatpush3.bf16.xpose.msra.mxu0 %v2092_v23 }
 0x940   : > { %3563 = vmatprep.subr.msk.bf16.mxu0 %vm636_vm1, %v2048_v26 }
 0x941   : > { %v2030_v54 = vpop.permute.xlu1 %2029  ;;  %v2032_v17 = vpop.permute.xlu0 %2031 }
 0x943   : > { %v3828_v37 = vpop.eup %3827 }
 0x944   : > { %v1874_v61 = vmul.f32 %v3828_v37, %v5087_v19 }
 0x945   : > { %v2034_v50 = vpop.permute.xlu1 %2033  ;;  %v2036_v3 = vpop.permute.xlu0 %2035 }
 0x946   : > { %3028 = vst [vmem:[%s4472_s16 + $0x178] sm:$0xff] %v1874_v61  ;;  %v1899_v55 = vpack.c.bf16 %v1874_v61, %v1873_v25 }
 0x947   : > { %v3830_v35 = vpop.eup %3829  ;;  %3446 = vmatpush3.bf16.xpose.msra.mxu0 %v2089_v29 }
 0x948   : > { %3564 = vmatprep.subr.msk.bf16.mxu0 %vm636_vm1, %v2046_v45  ;;  %v1872_v15 = vmul.f32 %v3830_v35, %v5090_v51 }
 0x949   : > { %v2038_v10 = vpop.permute.xlu1 %2037  ;;  %v2040_v8 = vpop.permute.xlu0 %2039 }
 0x94a   : > { %3026 = vst [vmem:[%s4472_s16 + $0x168] sm:$0xff] %v1872_v15  ;;  %v1898_v59 = vpack.c.bf16 %v1872_v15, %v1871_v33 }
 0x94c   : > { %3429 = vmatprep.mubr.bf16.mxu0 %v1898_v59 }
 0x94d   : > { %v2042_v14 = vpop.permute.xlu1 %2041  ;;  %3430 = vmatmul.mubr.bf16.gmra.mxu0 %v1899_v55  ;;  %v2044_v19 = vpop.permute.xlu0 %2043 }
 0x94e   : > { %3449 = vmatprep.mubr.msk.bf16.mxu0 %vm636_vm1, %v2030_v54 }
 0x94f   : > { %3448 = vmatpush3.bf16.xpose.msra.mxu0 %v2086_v38 }
 0x951   : > { %v2390_v9 = vpop.permute.xlu0 %2389  ;;  %v2388_v42 = vpop.permute.xlu1 %2387 }
 0x952   : > { %3465 = vmatprep.subr.bf16.mxu0 %v2390_v9  ;;  %3517 = vmatprep.subr.bf16.mxu1 %v2390_v9 }
 0x953   : > { %3525 = vmatpush3.bf16.msra.mxu1 %v2390_v9 }
 0x954   : > { %3518 = vmatprep.subr.bf16.mxu1 %v2388_v42 }
 0x956   : > { %3450 = vmatmul.mubr.msk.bf16.vlgmr.msra.gmra.mxu0 %vm636_vm1, %v2032_v17 }
 0x957   : > { %3453 = vmatprep.mubr.msk.bf16.mxu0 %vm636_vm1, %v2034_v50  ;;  %3466 = vmatpush3.bf16.msra.mxu0 %v2390_v9 }
 0x958   : > { %3526 = vmatpush3.bf16.msra.mxu1 %v2388_v42  ;;  %3467 = vmatprep.subr.bf16.mxu0 %v2388_v42 }
 0x95b   : > { %3468 = vmatpush3.bf16.msra.mxu0 %v2388_v42 }
 0x95e   : > { %3454 = vmatmul.mubr.msk.bf16.gmra.mxu0 %vm636_vm1, %v2036_v3 }
 0x95f   : > { %3457 = vmatprep.mubr.msk.bf16.mxu0 %vm636_vm1, %v2038_v10 }
 0x966   : > { %3458 = vmatmul.mubr.msk.bf16.gmra.mxu0 %vm636_vm1, %v2040_v8 }
 0x967   : > { %3461 = vmatprep.mubr.msk.bf16.mxu0 %vm636_vm1, %v2042_v14 }
 0x96e   : > { %3462 = vmatmul.mubr.msk.bf16.gmra.mxu0 %vm636_vm1, %v2044_v19 }
 0x999   : > { %v5167_v51 = vpop.f32.mrf.mxu0 }
 0x99b   : > { %v5169_v25 = vpop.f32.mrf.mxu0 }
 0x99d   : > { %v5171_v33 = vpop.f32.mrf.mxu0 }
 0x99e   : > { %v2022_v63 = vpack.c.bf16 %v5171_v33, %v5167_v51 }
 0x99f   : > { %v5175_v31 = vpop.f32.mrf.mxu0 }
 0x9a0   : > { %v2021_v39 = vpack.c.bf16 %v5175_v31, %v5169_v25 }
 0x9d1   : > { %v5179_v22 = vpop.f32.mrf.mxu0 }
 0x9d3   : > { %v5181_v28 = vpop.f32.mrf.mxu0 }
 0x9d5   : > { %v5183_v41 = vpop.f32.mrf.mxu0 }
 0x9d6   : > { %v2024_v36 = vpack.c.bf16 %v5183_v41, %v5179_v22 }
 0x9d7   : > { %v5187_v43 = vpop.f32.mrf.mxu0 }
 0x9d8   : > { %v2023_v26 = vpack.c.bf16 %v5187_v43, %v5181_v28  ;;  %v5647_v28 = vld [vmem:[#allocation23_spill] sm:$0xff]  ;;  %v5648_v43 = vld [vmem:[#allocation22_spill] sm:$0xff] }
 0x9e2   : > { %v5191_v7 = vpop.f32.mrf.mxu0 }
 0x9e4   : > { %v5193_v45 = vpop.f32.mrf.mxu0 }
 0x9e6   : > { %v5195_v23 = vpop.f32.mrf.mxu0 }
 0x9e7   : > { %v2026_v54 = vpack.c.bf16 %v5195_v23, %v5191_v7  ;;  %v5654_v7 = vld [vmem:[#allocation27_spill] sm:$0xff]  ;;  %v5655_v23 = vld [vmem:[#allocation25_spill] sm:$0xff] }
 0x9e8   : > { %v5199_v17 = vpop.f32.mrf.mxu0 }
 0xa0d   : > { %v5203_v61 = vpop.f32.mrf.mxu0 }
 0xa0f   : > { %v5205_v50 = vpop.f32.mrf.mxu0 }
 0xa11   : > { %v5207_v3 = vpop.f32.mrf.mxu0 }
 0xa13   : > { %v5211_v35 = vpop.f32.mrf.mxu0 }
 0xa16   : > { %v3451_v10 = vpop.f32.mrf.mxu0 }
 0xa17   : > { %v2152_v8 = vadd.f32 %v4868_v53, %v3451_v10 }
 0xa18   : > { %v2143_v59 = vpop.f32.mrf.mxu0 }
 0xa19   : > { %v2144_v55 = vadd.f32 %v4876_v16, %v2143_v59  ;;  %2210 = vmax.xlane.f32.xlu0 %v2152_v8 }
 0xa1a   : > { %v3452_v14 = vpop.f32.mrf.mxu0 }
 0xa1b   : > { %2206 = vmax.xlane.f32.xlu1 %v2144_v55  ;;  %v2155_v38 = vadd.f32 %v4886_v20, %v3452_v14 }
 0xa1c   : > { %v2146_v19 = vpop.f32.mrf.mxu0 }
 0xa1d   : > { %v2147_v9 = vadd.f32 %v4894_v44, %v2146_v19 }
 0xa1e   : > { %v3455_v42 = vpop.f32.mrf.mxu0 }
 0xa1f   : > { %2208 = vmax.xlane.f32.xlu0 %v2147_v9  ;;  %2212 = vmax.xlane.f32.xlu1 %v2155_v38  ;;  %v2168_v15 = vadd.f32 %v4908_v27, %v3455_v42 }
 0xa20   : > { %v2159_v29 = vpop.f32.mrf.mxu0 }
 0xa21   : > { %v2160_v10 = vadd.f32 %v4926_v1, %v2159_v29 }
 0xa22   : > { %v3456_v37 = vpop.f32.mrf.mxu0 }
 0xa23   : > { %v5221_v53 = vadd.f32 %v4916_v6, %v3456_v37  ;;  %2218 = vmax.xlane.f32.xlu0 %v2168_v15 }
 0xa24   : > { %v2162_v16 = vpop.f32.mrf.mxu0 }
 0xa25   : > { %2220 = vmax.xlane.f32.xlu1 %v5221_v53  ;;  %v2163_v20 = vadd.f32 %v4934_v57, %v2162_v16 }
 0xa26   : > { %v3459_v59 = vpop.f32.mrf.mxu0 }
 0xa27   : > { %2214 = vmax.xlane.f32.xlu0 %v2160_v10  ;;  %v5227_v14 = vadd.f32 %v4944_v0, %v3459_v59 }
 0xa28   : > { %v2175_v44 = vpop.f32.mrf.mxu0 }
 0xa29   : > { %2216 = vmax.xlane.f32.xlu1 %v2163_v20  ;;  %v5234_v1 = vadd.f32 %v4962_v52, %v2175_v44 }
 0xa2a   : > { %v3460_v27 = vpop.f32.mrf.mxu0 }
 0xa2b   : > { %v5230_v19 = vadd.f32 %v4952_v11, %v3460_v27  ;;  %2226 = vmax.xlane.f32.xlu0 %v5227_v14 }
 0xa2c   : > { %v2178_v6 = vpop.f32.mrf.mxu0 }
 0xa2d   : > { %2228 = vmax.xlane.f32.xlu1 %v5230_v19  ;;  %v5238_v57 = vadd.f32 %v4970_v46, %v2178_v6 }
 0xa2e   : > { %v3463_v37 = vpop.f32.mrf.mxu0 }
 0xa2f   : > { %2222 = vmax.xlane.f32.xlu0 %v5234_v1  ;;  %v5242_v0 = vadd.f32 %v4980_v49, %v3463_v37 }
 0xa30   : > { %v2191_v11 = vpop.f32.mrf.mxu0 }
 0xa31   : > { %2224 = vmax.xlane.f32.xlu1 %v5238_v57  ;;  %v5247_v29 = vadd.f32 %v4989_v58, %v2191_v11 }
 0xa32   : > { %v3464_v52 = vpop.f32.mrf.mxu0 }
 0xa33   : > { %2234 = vmax.xlane.f32.xlu0 %v5242_v0  ;;  %v5259_v49 = vadd.f32 %v5008_v47, %v3464_v52 }
 0xa34   : > { %v2194_v46 = vpop.f32.mrf.mxu0 }
 0xa35   : > { %v5263_v58 = vadd.f32 %v5017_v5, %v2194_v46 }
 0xa37   : > { %2230 = vmax.xlane.f32.xlu0 %v5247_v29 }
 0xa42   : > { %2381 = vrot.lane.b32.xlu1 %v4190_v32, %s3999_s23 }
 0xa4d   : > { %2385 = vrot.lane.b32.xlu0 %v4174_v12, %s3999_s23 }
 0xa51   : > { %2383 = vrot.lane.b32.xlu0 %v4177_v18, %s3999_s23 }
 0xa55   : > { %2377 = vrot.lane.b32.xlu0 %v4194_v34, %s3999_s23 }
 0xa66   : > { %2236 = vmax.xlane.f32.xlu1 %v5259_v49 }
 0xa6a   : > { %2232 = vmax.xlane.f32.xlu1 %v5263_v58 }
 0xa7b   : > { %2379 = vrot.lane.b32.xlu1 %v4180_v24, %s3999_s23 }
 0xaa2   : > { %v2211_v12 = vpop.xlane.xlu0 %2210 }
 0xaa3   : > { %v2240_v18 = vsub.f32 %v2152_v8, %v2211_v12 }
 0xaa4   : > { %v2207_v32 = vpop.xlane.xlu1 %2206 }
 0xaa5   : > { %v2258_v42 = vmul.f32 1.442695, %v2240_v18  ;;  %v2238_v34 = vsub.f32 %v2144_v55, %v2207_v32 }
 0xaa7   : > { %3831 = vpow2.f32 %v2258_v42  ;;  %v2254_v16 = vmul.f32 1.442695, %v2238_v34 }
 0xaa8   : > { %v2213_v47 = vpop.xlane.xlu1 %2212  ;;  %v2209_v59 = vpop.xlane.xlu0 %2208 }
 0xaa9   : > { %v2241_v44 = vsub.f32 %v2155_v38, %v2213_v47  ;;  %3833 = vpow2.f32 %v2254_v16  ;;  %v2239_v6 = vsub.f32 %v2147_v9, %v2209_v59 }
 0xaab   : > { %v2260_v27 = vmul.f32 1.442695, %v2241_v44  ;;  %v2256_v52 = vmul.f32 1.442695, %v2239_v6 }
 0xaac   : > { %v2219_v5 = vpop.xlane.xlu0 %2218 }
 0xaad   : > { %v2244_v37 = vsub.f32 %v2168_v15, %v2219_v5  ;;  %3835 = vpow2.f32 %v2260_v27 }
 0xaae   : > { %v2221_v11 = vpop.xlane.xlu1 %2220 }
 0xaaf   : > { %v2266_v46 = vmul.f32 1.442695, %v2244_v37  ;;  %v2245_v8 = vsub.f32 %v5221_v53, %v2221_v11 }
 0xab0   : > { %v2215_v24 = vpop.xlane.xlu0 %2214 }
 0xab1   : > { %3837 = vpow2.f32 %v2266_v46  ;;  %v2242_v12 = vsub.f32 %v2160_v10, %v2215_v24  ;;  %v2268_v34 = vmul.f32 1.442695, %v2245_v8 }
 0xab2   : > { %v2217_v55 = vpop.xlane.xlu1 %2216  ;;  %3839 = vpow2.f32 %v2256_v52 }
 0xab3   : > { %v2262_v18 = vmul.f32 1.442695, %v2242_v12  ;;  %v2243_v32 = vsub.f32 %v2163_v20, %v2217_v55 }
 0xab4   : > { %v5269_v42 = vpop.eup %3831  ;;  %v2227_v38 = vpop.xlane.xlu0 %2226 }
 0xab5   : > { %3841 = vpow2.f32 %v2262_v18  ;;  %v2264_v9 = vmul.f32 1.442695, %v2243_v32  ;;  %v2248_v15 = vsub.f32 %v5227_v14, %v2227_v38  ;;  %2290 = vadd.xlane.f32.xlu1 %v5269_v42 }
 0xab6   : > { %v2229_v16 = vpop.xlane.xlu1 %2228  ;;  %v5273_v47 = vpop.eup %3833 }
 0xab7   : > { %3843 = vpow2.f32 %v2264_v9  ;;  %v2274_v10 = vmul.f32 1.442695, %v2248_v15  ;;  %v2249_v14 = vsub.f32 %v5230_v19, %v2229_v16 }
 0xab8   : > { %v2223_v53 = vpop.xlane.xlu0 %2222  ;;  %3845 = vpow2.f32 %v2268_v34 }
 0xab9   : > { %v2246_v59 = vsub.f32 %v5234_v1, %v2223_v53  ;;  %2286 = vadd.xlane.f32.xlu1 %v5273_v47  ;;  %3847 = vpow2.f32 %v2274_v10  ;;  %v2276_v24 = vmul.f32 1.442695, %v2249_v14  ;;  %v5641_v10 = vpack.c.bf16 %v4821_v13, %v4817_v60 }
 0xaba   : > { %v2225_v20 = vpop.xlane.xlu1 %2224  ;;  %v5278_v27 = vpop.eup %3835 }
 0xabb   : > { %v2247_v44 = vsub.f32 %v5238_v57, %v2225_v20  ;;  %v2270_v5 = vmul.f32 1.442695, %v2246_v59  ;;  %v5642_v20 = vpack.c.bf16 %v4837_v48, %v4831_v62  ;;  %v5643_v62 = vpack.c.bf16 %v4849_v4, %v4843_v21  ;;  %v5645_v21 = vld [vmem:[#allocation21_spill] sm:$0xff] }
 0xabc   : > { %v2235_v6 = vpop.xlane.xlu0 %2234  ;;  %v5646_v4 = vpack.c.bf16 %v4833_v56, %v5645_v21 }
 0xabd   : > { %v2272_v37 = vmul.f32 1.442695, %v2247_v44  ;;  %v2252_v11 = vsub.f32 %v5242_v0, %v2235_v6  ;;  %2292 = vadd.xlane.f32.xlu1 %v5278_v27 }
 0xabe   : > { %v5283_v52 = vpop.eup %3837  ;;  %v2382_v38 = vpop.permute.xlu1 %2381 }
 0xabf   : > { %3849 = vpow2.f32 %v2272_v37  ;;  %v2282_v1 = vmul.f32 1.442695, %v2252_v11  ;;  %2298 = vadd.xlane.f32.xlu0 %v5283_v52  ;;  %v5286_v46 = vpop.eup %3839 }
 0xac0   : > { %v2231_v57 = vpop.xlane.xlu0 %2230  ;;  %3851 = vpow2.f32 %v2270_v5 }
 0xac1   : > { %v2250_v19 = vsub.f32 %v5247_v29, %v2231_v57  ;;  %2288 = vadd.xlane.f32.xlu1 %v5286_v46  ;;  %3853 = vpow2.f32 %v2282_v1 }
 0xac2   : > { %v5290_v8 = vpop.eup %3841  ;;  %3855 = vpow2.f32 %v2276_v24 }
 0xac3   : > { %v2278_v0 = vmul.f32 1.442695, %v2250_v19  ;;  %2294 = vadd.xlane.f32.xlu0 %v5290_v8 }
 0xac4   : > { %v5293_v12 = vpop.eup %3843  ;;  %v2386_v55 = vpop.permute.xlu0 %2385 }
 0xac5   : > { %2296 = vadd.xlane.f32.xlu1 %v5293_v12  ;;  %3469 = vmatprep.subr.bf16.mxu0 %v2386_v55  ;;  %v5296_v18 = vpop.eup %3845  ;;  %3857 = vpow2.f32 %v2278_v0 }
 0xac6   : > { %3519 = vmatprep.subr.bf16.mxu1 %v2386_v55  ;;  %3470 = vmatpush3.bf16.msra.mxu0 %v2386_v55  ;;  %v5299_v32 = vpop.eup %3847 }
 0xac7   : > { %3527 = vmatpush3.bf16.msra.mxu1 %v2386_v55  ;;  %2300 = vadd.xlane.f32.xlu0 %v5296_v18 }
 0xac8   : > { %v2384_v29 = vpop.permute.xlu0 %2383 }
 0xac9   : > { %3471 = vmatprep.subr.bf16.mxu0 %v2384_v29  ;;  %3520 = vmatprep.subr.bf16.mxu1 %v2384_v29 }
 0xaca   : > { %3472 = vmatpush3.bf16.msra.mxu0 %v2384_v29 }
 0xacb   : > { %3528 = vmatpush3.bf16.msra.mxu1 %v2384_v29  ;;  %2306 = vadd.xlane.f32.xlu0 %v5299_v32 }
 0xacc   : > { %v5302_v34 = vpop.eup %3849  ;;  %3473 = vmatprep.subr.bf16.mxu0 %v2382_v38  ;;  %3521 = vmatprep.subr.bf16.mxu1 %v2382_v38  ;;  %v2378_v25 = vpop.permute.xlu0 %2377 }
 0xacd   : > { %2304 = vadd.xlane.f32.xlu1 %v5302_v34  ;;  %v5305_v9 = vpop.eup %3851 }
 0xace   : > { %3474 = vmatpush3.bf16.msra.mxu0 %v2382_v38  ;;  %v5308_v15 = vpop.eup %3853 }
 0xacf   : > { %3529 = vmatpush3.bf16.msra.mxu1 %v2382_v38  ;;  %2302 = vadd.xlane.f32.xlu0 %v5305_v9  ;;  %v5311_v16 = vpop.eup %3855 }
 0xad1   : > { %2314 = vadd.xlane.f32.xlu1 %v5308_v15 }
 0xad2   : > { %v5314_v53 = vpop.eup %3857 }
 0xad3   : > { %2308 = vadd.xlane.f32.xlu0 %v5311_v16 }
 0xad5   : > { %2310 = vadd.xlane.f32.xlu1 %v5314_v53 }
 0xae6   : > { %2375 = vrot.lane.b32.xlu1 %v4170_v2, %s3999_s23  ;;  %s2811_s23 = sshll.u32 %s4472_s16, 4  ;;  %s5492_s23 = int_to_ptr.vmem [resolvable:$true] %s2811_s23 }
 0xae7   : > { %s3911_s21 = scalar_lea.vmem %s5492_s23, 8192 }
 0xae8   : > { %p3912_p12 = scmp.ne.s32.totalorder %s5492_s23, %s3911_s21 }
 0xaea   : > { %2514 = vrot.lane.b32.xlu1 %v5641_v10, %s5615_s25  ;;  %p3913_p13 = pnand %p3912_p12, %p4090_p4 }
 0xaec   : > { %p3914_p0 = pneg %p3913_p13 }
 0xaee   : > { %2536 = vrot.lane.b32.xlu1 %v2021_v39, %s4001_s26  ;;  %v5644_v39 = vpack.c.bf16 %v4825_v40, %v4819_v30  ;;  %v5649_v30 = vpack.c.bf16 %v5647_v28, %v5648_v43 }
 0xaef   : > { %v2237_v59 = vpop.xlane.xlu1 %2236 }
 0xaf0   : > { %v2253_v2 = vsub.f32 %v5259_v49, %v2237_v59 }
 0xaf2   : > { %2516 = vrot.lane.b32.xlu1 %v5642_v20, %s5615_s25  ;;  %v2284_v13 = vmul.f32 1.442695, %v2253_v2 }
 0xaf3   : > { %v2233_v44 = vpop.xlane.xlu1 %2232 }
 0xaf4   : > { %v2251_v14 = vsub.f32 %v5263_v58, %v2233_v44 }
 0xaf6   : > { %v2280_v6 = vmul.f32 1.442695, %v2251_v14  ;;  %2540 = vrot.lane.b32.xlu1 %v2023_v26, %s4001_s26 }
 0xaf7   : > { %v2380_v60 = vpop.permute.xlu1 %2379 }
 0xaf8   : > { %3859 = vpow2.f32 %v2280_v6  ;;  %3475 = vmatprep.subr.bf16.mxu0 %v2380_v60  ;;  %3522 = vmatprep.subr.bf16.mxu1 %v2380_v60 }
 0xaf9   : > { %3476 = vmatpush3.bf16.msra.mxu0 %v2380_v60  ;;  %3530 = vmatpush3.bf16.msra.mxu1 %v2380_v60  ;;  %3861 = vpow2.f32 %v2284_v13 }
 0xafa   : > { %2520 = vrot.lane.b32.xlu1 %v5643_v62, %s5615_s25  ;;  %3477 = vmatprep.subr.bf16.mxu0 %v2378_v25 }
 0xafb   : > { %3523 = vmatprep.subr.bf16.mxu1 %v2378_v25 }
 0xafd   : > { %3478 = vmatpush3.bf16.msra.mxu0 %v2378_v25  ;;  %3531 = vmatpush3.bf16.msra.mxu1 %v2378_v25 }
 0xb05   : > { %v5341_v48 = vpop.eup %3859 }
 0xb06   : > { %2312 = vadd.xlane.f32.xlu0 %v5341_v48  ;;  %v5344_v31 = vpop.eup %3861 }
 0xb0a   : > { %2316 = vadd.xlane.f32.xlu0 %v5344_v31 }
 0xb20   : > { %2512 = vrot.lane.b32.xlu0 %v5644_v39, %s5615_s25 }
 0xb24   : > { %2538 = vrot.lane.b32.xlu0 %v2022_v63, %s4001_s26 }
 0xb28   : > { %2518 = vrot.lane.b32.xlu0 %v5646_v4, %s5615_s25 }
 0xb2c   : > { %2542 = vrot.lane.b32.xlu0 %v2024_v36, %s4001_s26 }
 0xb30   : > { %2522 = vrot.lane.b32.xlu0 %v5649_v30, %s5615_s25 }
 0xb3e   : > { %v2291_v40 = vpop.xlane.xlu1 %2290 }
 0xb3f   : > { %3863 = vrcp.f32 %v2291_v40 }
 0xb42   : > { %v2287_v51 = vpop.xlane.xlu1 %2286 }
 0xb43   : > { %3865 = vrcp.f32 %v2287_v51 }
 0xb46   : > { %v2293_v33 = vpop.xlane.xlu1 %2292 }
 0xb47   : > { %3867 = vrcp.f32 %v2293_v33 }
 0xb48   : > { %v2299_v56 = vpop.xlane.xlu0 %2298 }
 0xb49   : > { %3869 = vrcp.f32 %v2299_v56 }
 0xb4a   : > { %v2289_v63 = vpop.xlane.xlu1 %2288 }
 0xb4b   : > { %3871 = vrcp.f32 %v2289_v63 }
 0xb4c   : > { %v3864_v26 = vpop.eup %3863  ;;  %v2295_v22 = vpop.xlane.xlu0 %2294 }
 0xb4d   : > { %3873 = vrcp.f32 %v2295_v22  ;;  %v2336_v41 = vmul.f32 %v3864_v26, %v5269_v42  ;;  %v3638_v26 = vld [vmem:[%s5588_s5] sm:$0xff]  }
 0xb4e   : > { %v2297_v36 = vpop.xlane.xlu1 %2296 }
 0xb4f   : > { %3875 = vrcp.f32 %v2297_v36  ;;  %3039 = vst [vmem:[%s4472_s16 + $0x190] sm:$0xff] %v2336_v41 }
 0xb50   : > { %v3866_v49 = vpop.eup %3865  ;;  %v2301_v58 = vpop.xlane.xlu0 %2300 }
 0xb51   : > { %3877 = vrcp.f32 %v2301_v58  ;;  %v2334_v5 = vmul.f32 %v3866_v49, %v5273_v47 }
 0xb53   : > { %3037 = vst [vmem:[%s4472_s16 + $0x180] sm:$0xff] %v2334_v5 }
 0xb54   : > { %v3868_v37 = vpop.eup %3867  ;;  %v2307_v11 = vpop.xlane.xlu0 %2306 }
 0xb55   : > { %3879 = vrcp.f32 %v2307_v11  ;;  %v2337_v1 = vmul.f32 %v3868_v37, %v5278_v27 }
 0xb56   : > { %v3870_v57 = vpop.eup %3869  ;;  %v2305_v24 = vpop.xlane.xlu1 %2304 }
 0xb57   : > { %3881 = vrcp.f32 %v2305_v24  ;;  %3040 = vst [vmem:[%s4472_s16 + $0x198] sm:$0xff] %v2337_v1  ;;  %v2340_v42 = vmul.f32 %v3870_v57, %v5283_v52  ;;  %v2368_v60 = vpack.c.bf16 %v2337_v1, %v2336_v41 }
 0xb58   : > { %v3872_v19 = vpop.eup %3871  ;;  %v2303_v0 = vpop.xlane.xlu0 %2302 }
 0xb59   : > { %3883 = vrcp.f32 %v2303_v0  ;;  %v2335_v55 = vmul.f32 %v3872_v19, %v5286_v46  ;;  %3043 = vst [vmem:[%s4472_s16 + $0x1b0] sm:$0xff] %v2340_v42 }
 0xb5a   : > { %v3874_v47 = vpop.eup %3873  ;;  %v2315_v29 = vpop.xlane.xlu1 %2314 }
 0xb5b   : > { %3885 = vrcp.f32 %v2315_v29  ;;  %3038 = vst [vmem:[%s4472_s16 + $0x188] sm:$0xff] %v2335_v55  ;;  %v2367_v27 = vpack.c.bf16 %v2335_v55, %v2334_v5  ;;  %v2338_v38 = vmul.f32 %v3874_v47, %v5290_v8  ;;  %v5651_v55 = vld [vmem:[#allocation26_spill] sm:$0xff]  ;;  %v5652_v47 = vld [vmem:[#allocation24_spill] sm:$0xff] }
 0xb5c   : > { %v3876_v10 = vpop.eup %3875  ;;  %v2309_v59 = vpop.xlane.xlu0 %2308  ;;  %v5653_v29 = vpack.c.bf16 %v5651_v55, %v5652_v47  ;;  %v5674_v55 = vld [vmem:[#allocation15_spill] sm:$0xff]  ;;  %v5675_v47 = vld [vmem:[#allocation13_spill] sm:$0xff] }
 0xb5d   : > { %3887 = vrcp.f32 %v2309_v59  ;;  %3481 = vmatprep.mubr.bf16.mxu0 %v2367_v27  ;;  %v2339_v52 = vmul.f32 %v3876_v10, %v5293_v12  ;;  %3041 = vst [vmem:[%s4472_s16 + $0x1a0] sm:$0xff] %v2338_v38 }
 0xb5e   : > { %v3878_v20 = vpop.eup %3877  ;;  %v2311_v44 = vpop.xlane.xlu1 %2310 }
 0xb5f   : > { %3889 = vrcp.f32 %v2311_v44  ;;  %3042 = vst [vmem:[%s4472_s16 + $0x1a8] sm:$0xff] %v2339_v52  ;;  %v2369_v46 = vpack.c.bf16 %v2339_v52, %v2338_v38  ;;  %v2341_v2 = vmul.f32 %v3878_v20, %v5296_v18 }
 0xb61   : > { %3485 = vmatprep.mubr.bf16.mxu1 %v2369_v46  ;;  %3044 = vst [vmem:[%s4472_s16 + $0x1b8] sm:$0xff] %v2341_v2  ;;  %v2370_v13 = vpack.c.bf16 %v2341_v2, %v2340_v42  ;;  %v5650_v42 = vpack.c.bf16 %v5199_v17, %v5193_v45  ;;  %v5657_v45 = vpack.c.bf16 %v5207_v3, %v5203_v61 }
 0xb62   : > { %v3880_v14 = vpop.eup %3879  ;;  %v2376_v8 = vpop.permute.xlu1 %2375  ;;  %v5658_v17 = vpack.c.bf16 %v5211_v35, %v5205_v50  ;;  %v5659_v50 = vld [vmem:[#allocation8_spill] sm:$0xff]  ;;  %v5660_v35 = vld [vmem:[#allocation6_spill] sm:$0xff] }
 0xb63   : > { %3479 = vmatprep.subr.bf16.mxu0 %v2376_v8  ;;  %3524 = vmatprep.subr.bf16.mxu1 %v2376_v8  ;;  %v2344_v6 = vmul.f32 %v3880_v14, %v5299_v32 }
 0xb64   : > { %v3882_v12 = vpop.eup %3881  ;;  %3480 = vmatpush3.bf16.msra.mxu0 %v2376_v8  ;;  %3532 = vmatpush3.bf16.msra.mxu1 %v2376_v8 }
 0xb65   : > { %v2343_v25 = vmul.f32 %v3882_v12, %v5302_v34  ;;  %3047 = vst [vmem:[%s4472_s16 + $0x1d0] sm:$0xff] %v2344_v6 }
 0xb66   : > { %v3884_v18 = vpop.eup %3883  ;;  %v2515_v8 = vpop.permute.xlu1 %2514 }
 0xb67   : > { %3482 = vmatmul.mubr.bf16.vlgmr.msra.gmra.mxu0 %v2368_v60  ;;  %3486 = vmatmul.mubr.bf16.vlgmr.msra.gmra.mxu1 %v2370_v13  ;;  %v2342_v62 = vmul.f32 %v3884_v18, %v5305_v9  ;;  %3046 = vst [vmem:[%s4472_s16 + $0x1c8] sm:$0xff] %v2343_v25 }
 0xb68   : > { %v3886_v39 = vpop.eup %3885 }
 0xb69   : > { %3045 = vst [vmem:[%s4472_s16 + $0x1c0] sm:$0xff] %v2342_v62  ;;  %v2371_v32 = vpack.c.bf16 %v2343_v25, %v2342_v62  ;;  %v2348_v21 = vmul.f32 %v3886_v39, %v5308_v15  ;;  %v5661_v62 = vpack.c.bf16 %v5659_v50, %v5660_v35 }
 0xb6a   : > { %v3888_v4 = vpop.eup %3887  ;;  %v2537_v12 = vpop.permute.xlu1 %2536 }
 0xb6b   : > { %3489 = vmatprep.mubr.bf16.mxu1 %v2371_v32  ;;  %v2345_v28 = vmul.f32 %v3888_v4, %v5311_v16  ;;  %3051 = vst [vmem:[%s4472_s16 + $0x1f0] sm:$0xff] %v2348_v21  ;;  %v5663_v4 = vld [vmem:[#allocation5_spill] sm:$0xff] }
 0xb6c   : > { %v3890_v34 = vpop.eup %3889 }
 0xb6d   : > { %3048 = vst [vmem:[%s4472_s16 + $0x1d8] sm:$0xff] %v2345_v28  ;;  %v2372_v43 = vpack.c.bf16 %v2345_v28, %v2344_v6  ;;  %v2346_v30 = vmul.f32 %v3890_v34, %v5314_v53  ;;  %v3637_v53 = vld [vmem:[%s5588_s5 + $0x8] sm:$0xff]  }
 0xb6e   : > { %3497 = vmatprep.subr.bf16.mxu1 %v3637_v53  ;;  %v2517_v61 = vpop.permute.xlu1 %2516 }
 0xb6f   : > { %3490 = vmatmul.mubr.bf16.gmra.mxu1 %v2372_v43  ;;  %3049 = vst [vmem:[%s4472_s16 + $0x1e0] sm:$0xff] %v2346_v30 }
 0xb70   : > { %3498 = vmatpush3.bf16.msra.mxu1 %v3637_v53 }
 0xb71   : > { %3499 = vmatprep.subr.bf16.mxu1 %v3638_v26 }
 0xb72   : > { %v2541_v13 = vpop.permute.xlu1 %2540 }
 0xb74   : > { %3500 = vmatpush3.bf16.msra.mxu1 %v3638_v26 }
 0xb76   : > { %v2521_v18 = vpop.permute.xlu1 %2520 }
 0xb8f   : > { %v2313_v9 = vpop.xlane.xlu0 %2312 }
 0xb90   : > { %3891 = vrcp.f32 %v2313_v9 }
 0xb93   : > { %v2317_v40 = vpop.xlane.xlu0 %2316 }
 0xb94   : > { %3893 = vrcp.f32 %v2317_v40 }
 0xb97   : > { %v2513_v14 = vpop.permute.xlu0 %2512 }
 0xb98   : > { %v2578_v39 = vsel %vm636_vm1, %v5661_v62, %v2513_v14  ;;  %v5680_v14 = vld [vmem:[#allocation20_spill] sm:$0xff] }
 0xb9b   : > { %v2539_v6 = vpop.permute.xlu0 %2538 }
 0xb9d   : > { %v3892_v51 = vpop.eup %3891 }
 0xb9e   : > { %v2347_v15 = vmul.f32 %v3892_v51, %v5341_v48 }
 0xb9f   : > { %v2519_v60 = vpop.permute.xlu0 %2518 }
 0xba0   : > { %3050 = vst [vmem:[%s4472_s16 + $0x1e8] sm:$0xff] %v2347_v15  ;;  %v2373_v33 = vpack.c.bf16 %v2347_v15, %v2346_v30  ;;  %v2602_v30 = vsel %vm2600_vm2, %v2578_v39, %v2537_v12 }
 0xba1   : > { %v3894_v56 = vpop.eup %3893 }
 0xba2   : > { %3493 = vmatprep.mubr.bf16.mxu1 %v2373_v33  ;;  %v2349_v16 = vmul.f32 %v3894_v56, %v5344_v31 }
 0xba3   : > { %v2543_v3 = vpop.permute.xlu0 %2542 }
 0xba4   : > { %3052 = vst [vmem:[%s4472_s16 + $0x1f8] sm:$0xff] %v2349_v16  ;;  %v2374_v63 = vpack.c.bf16 %v2349_v16, %v2348_v21  ;;  %v5662_v21 = vld [vmem:[#allocation7_spill] sm:$0xff]  ;;  %v5665_v16 = vld [vmem:[#allocation12_spill] sm:$0xff]  ;;  %s3915_s16 = sshll.u32 %s4003_s30, 4  ;;  %s3916_s16 = int_to_ptr.vmem [resolvable:$false] %s3915_s16 }
 0xba5   : > { %v5664_v28 = vpack.c.bf16 %v5662_v21, %v5663_v4  ;;  %p3918_p1 = scmp.lt.s32.totalorder %s5492_s23, %s3916_s16 }
 0xba6   : > { %3494 = vmatmul.mubr.bf16.gmra.mxu1 %v2374_v63  ;;  %v5666_v63 = vld [vmem:[#allocation10_spill] sm:$0xff] }
 0xba7   : > { %v2523_v25 = vpop.permute.xlu0 %2522  ;;  %v2581_v34 = vsel %vm636_vm1, %v5664_v28, %v2515_v8  ;;  %v5667_v53 = vpack.c.bf16 %v5665_v16, %v5666_v63  ;;  %v5681_v8 = vld [vmem:[#allocation18_spill] sm:$0xff] }
 0xba8   : > { %v2604_v9 = vsel %vm2600_vm2, %v2581_v34, %v2539_v6  ;;  %v5682_v6 = vpack.c.bf16 %v5680_v14, %v5681_v8 }
 0xba9   : > { %v2584_v26 = vsel %vm636_vm1, %v5667_v53, %v2517_v61 }
 0xc27   : > { %v3483_v48 = vpop.f32.mrf.mxu0  ;;  %v3487_v22 = vpop.f32.mrf.mxu1 }
 0xc29   : > { %v2433_v41 = vpop.f32.mrf.mxu0  ;;  %v2449_v36 = vpop.f32.mrf.mxu1 }
 0xc2b   : > { %v3484_v31 = vpop.f32.mrf.mxu0  ;;  %v3488_v49 = vpop.f32.mrf.mxu1 }
 0xc2c   : > { %v2497_v58 = vpack.c.bf16 %v3484_v31, %v3483_v48  ;;  %v2499_v24 = vpack.c.bf16 %v3488_v49, %v3487_v22  ;;  %v2606_v48 = vsel %vm2600_vm2, %v2584_v26, %v2541_v13  ;;  %v5668_v22 = vld [vmem:[#allocation11_spill] sm:$0xff] }
 0xc2d   : > { %v2436_v5 = vpop.f32.mrf.mxu0  ;;  %v2452_v37 = vpop.f32.mrf.mxu1 }
 0xc2e   : > { %v2496_v11 = vpack.c.bf16 %v2436_v5, %v2433_v41  ;;  %2562 = vrot.lane.b32.xlu0 %v2497_v58, %s4002_s19  ;;  %v2498_v19 = vpack.c.bf16 %v2452_v37, %v2449_v36  ;;  %v5669_v41 = vld [vmem:[#allocation9_spill] sm:$0xff] }
 0xc2f   : > { %v3491_v1 = vpop.f32.mrf.mxu1  ;;  %v5670_v36 = vpack.c.bf16 %v5668_v22, %v5669_v41 }
 0xc30   : > { %2560 = vrot.lane.b32.xlu1 %v2496_v11, %s4002_s19 }
 0xc31   : > { %v2465_v57 = vpop.f32.mrf.mxu1  ;;  %v2587_v31 = vsel %vm636_vm1, %v5670_v36, %v2519_v60 }
 0xc32   : > { %2546 = vrot.lane.b32.xlu0 %v2026_v54, %s4001_s26  ;;  %v5656_v54 = vpack.c.bf16 %v5654_v7, %v5655_v23  ;;  %v2608_v58 = vsel %vm2600_vm2, %v2587_v31, %v2543_v3 }
 0xc33   : > { %v3492_v0 = vpop.f32.mrf.mxu1 }
 0xc34   : > { %2544 = vrot.lane.b32.xlu1 %v5650_v42, %s4001_s26  ;;  %v2501_v38 = vpack.c.bf16 %v3492_v0, %v3491_v1  ;;  %v5672_v42 = vld [vmem:[#allocation14_spill] sm:$0xff] }
 0xc35   : > { %v2468_v27 = vpop.f32.mrf.mxu1 }
 0xc36   : > { %2566 = vrot.lane.b32.xlu0 %v2499_v24, %s4002_s19  ;;  %v2500_v10 = vpack.c.bf16 %v2468_v27, %v2465_v57  ;;  %v5671_v24 = vld [vmem:[#allocation16_spill] sm:$0xff] }
 0xc38   : > { %2564 = vrot.lane.b32.xlu1 %v2498_v19, %s4002_s19  ;;  %v5673_v19 = vpack.c.bf16 %v5671_v24, %v5672_v42 }
 0xc3a   : > { %2526 = vrot.lane.b32.xlu0 %v5653_v29, %s5615_s25  ;;  %v2590_v0 = vsel %vm636_vm1, %v5673_v19, %v2521_v18  ;;  %v5676_v29 = vpack.c.bf16 %v5674_v55, %v5675_v47 }
 0xc3c   : > { %2524 = vrot.lane.b32.xlu1 %v5656_v54, %s5615_s25  ;;  %v2593_v27 = vsel %vm636_vm1, %v5676_v29, %v2523_v25 }
 0xc3e   : > { %2570 = vrot.lane.b32.xlu0 %v2501_v38, %s4002_s19 }
 0xc40   : > { %2568 = vrot.lane.b32.xlu1 %v2500_v10, %s4002_s19  ;;  %v5677_v10 = vld [vmem:[#allocation19_spill] sm:$0xff] }
 0xc42   : > { %2550 = vrot.lane.b32.xlu0 %v5657_v45, %s4001_s26  ;;  %v5678_v45 = vld [vmem:[#allocation17_spill] sm:$0xff] }
 0xc44   : > { %2548 = vrot.lane.b32.xlu1 %v5658_v17, %s4001_s26  ;;  %v5679_v17 = vpack.c.bf16 %v5677_v10, %v5678_v45 }
 0xc66   : > { %v3495_v59 = vpop.f32.mrf.mxu1 }
 0xc68   : > { %v2481_v52 = vpop.f32.mrf.mxu1 }
 0xc6a   : > { %v3496_v20 = vpop.f32.mrf.mxu1 }
 0xc6b   : > { %v2503_v44 = vpack.c.bf16 %v3496_v20, %v3495_v59 }
 0xc6c   : > { %v2484_v46 = vpop.f32.mrf.mxu1 }
 0xc6d   : > { %v2502_v2 = vpack.c.bf16 %v2484_v46, %v2481_v52  ;;  %2574 = vrot.lane.b32.xlu0 %v2503_v44, %s4002_s19 }
 0xc6f   : > { %2572 = vrot.lane.b32.xlu1 %v2502_v2, %s4002_s19  ;;  %s3917_s19 = scalar_lea.vmem %s3916_s16, 16384 }
 0xc70   : > { %p3919_p2 = scmp.lt.s32.totalorder %s3917_s19, %s3911_s21 }
 0xc72   : > { %p3920_p3 = por %p3919_p2, %p3918_p1 }
 0xc74   : > { %p3921_p5 = pnand %p3920_p3, %p3914_p0 }
 0xca0   : > { %v2563_v32 = vpop.permute.xlu0 %2562 }
 0xca1   : > { %v2621_v51 = vsel %vm2617_vm3, %v2604_v9, %v2563_v32 }
 0xca2   : > { %v2561_v43 = vpop.permute.xlu1 %2560 }
 0xca3   : > { %v2619_v40 = vsel %vm2617_vm3, %v2602_v30, %v2561_v43 }
 0xca4   : > { %3501 = vmatprep.mubr.msk.bf16.mxu1 %vm466_vm0, %v2619_v40  ;;  %v2547_v15 = vpop.permute.xlu0 %2546 }
 0xca5   : > { %3502 = vmatmul.mubr.msk.bf16.vlgmr.msra.gmra.mxu1 %vm466_vm0, %v2621_v51  ;;  %v2612_v23 = vsel %vm2600_vm2, %v2593_v27, %v2547_v15 }
 0xca6   : > { %v2545_v33 = vpop.permute.xlu1 %2544 }
 0xca7   : > { %v2610_v38 = vsel %vm2600_vm2, %v2590_v0, %v2545_v33 }
 0xca8   : > { %v2567_v56 = vpop.permute.xlu0 %2566 }
 0xca9   : > { %v2625_v37 = vsel %vm2617_vm3, %v2608_v58, %v2567_v56 }
 0xcaa   : > { %v2565_v49 = vpop.permute.xlu1 %2564 }
 0xcab   : > { %v2623_v5 = vsel %vm2617_vm3, %v2606_v48, %v2565_v49 }
 0xcac   : > { %3505 = vmatprep.mubr.msk.bf16.mxu1 %vm466_vm0, %v2623_v5  ;;  %v2527_v11 = vpop.permute.xlu0 %2526 }
 0xcad   : > { %3506 = vmatmul.mubr.msk.bf16.gmra.mxu1 %vm466_vm0, %v2625_v37  ;;  %v2599_v59 = vsel %vm636_vm1, %v5679_v17, %v2527_v11 }
 0xcae   : > { %v2525_v1 = vpop.permute.xlu1 %2524 }
 0xcaf   : > { %v2596_v12 = vsel %vm636_vm1, %v5682_v6, %v2525_v1 }
 0xcb0   : > { %v2571_v57 = vpop.permute.xlu0 %2570 }
 0xcb1   : > { %v2629_v52 = vsel %vm2617_vm3, %v2612_v23, %v2571_v57 }
 0xcb2   : > { %v2569_v7 = vpop.permute.xlu1 %2568 }
 0xcb3   : > { %v2627_v54 = vsel %vm2617_vm3, %v2610_v38, %v2569_v7 }
 0xcb4   : > { %3509 = vmatprep.mubr.msk.bf16.mxu1 %vm466_vm0, %v2627_v54  ;;  %v2551_v20 = vpop.permute.xlu0 %2550 }
 0xcb5   : > { %v2616_v44 = vsel %vm2600_vm2, %v2599_v59, %v2551_v20  ;;  %3510 = vmatmul.mubr.msk.bf16.gmra.mxu1 %vm466_vm0, %v2629_v52 }
 0xcb6   : > { %v2549_v46 = vpop.permute.xlu1 %2548 }
 0xcb7   : > { %v2614_v61 = vsel %vm2600_vm2, %v2596_v12, %v2549_v46 }
 0xcdf   : > { %v2575_v2 = vpop.permute.xlu0 %2574 }
 0xce0   : > { %v2633_v60 = vsel %vm2617_vm3, %v2616_v44, %v2575_v2 }
 0xce1   : > { %v2573_v3 = vpop.permute.xlu1 %2572 }
 0xce2   : > { %v2631_v13 = vsel %vm2617_vm3, %v2614_v61, %v2573_v3 }
 0xce3   : > { %3513 = vmatprep.mubr.msk.bf16.mxu1 %vm466_vm0, %v2631_v13 }
 0xce4   : > { %3514 = vmatmul.mubr.msk.bf16.gmra.mxu1 %vm466_vm0, %v2633_v60 }
 0xce5   : > { %3924 = shalt.err (!%p3921_p5)
}
 0xce6   : > { %s3925_s11 = scalar_lea.hbm %s5490_s14, 8192  ;;  %s3929_s12 = scalar_lea.hbm %s5591_s8, 16384 }
 0xce7   : > { %p3926_p6 = scmp.ne.s32.totalorder %s5490_s14, %s3925_s11  ;;  %p3930_p10 = scmp.lt.s32.totalorder %s5490_s14, %s5591_s8 }
 0xce8   : > { %p3931_p11 = scmp.lt.s32.totalorder %s3929_s12, %s3925_s11 }
 0xce9   : > { %p3927_p7 = pnand %p3926_p6, %p4090_p4 }
 0xcea   : > { %p3932_p12 = por %p3931_p11, %p3930_p10 }
 0xceb   : > { %p3928_p9 = pneg %p3927_p7 }
 0xced   : > { %p3933_p13 = pnand %p3932_p12, %p3928_p9 }
 0xcef   : > { %3936 = shalt.err (!%p3933_p13)
}
 0xcf0   : > { %s4004_s21 = smov 128   ;;  %s5683_s16 = smov 8   ;;  %v3053_v25 = vld [vmem:[%s5589_s6] ss:$0 sm:$0xff] }
 0xcf1   : > { %3565 = dma.vmem_to_hbm [thread:$0]  (%p4090_p4), %s5492_s23, 8192, %s5490_s14, %s5496_s20, %s4004_s21, %s4004_s21, %s5683_s16  }
 0xcf2   : > { %s5527_s11 = scalar_lea.vmem %s5590_s7, %s4113_s24 }
 0xd65   : > { %v3503_v18 = vpop.f32.mrf.mxu1 }
 0xd66   : > { %v2716_v50 = vadd.f32 %v3503_v18, %v3053_v25 }
 0xd67   : > { %v2707_v35 = vpop.f32.mrf.mxu1 }
 0xd68   : > { %2772 = vst.msk [vmem:[%s5527_s11 + $0x10] sm:$0xff] %vm466_vm0, %v2716_v50  ;;  %v2708_v62 = vadd.f32 %v3053_v25, %v2707_v35 }
 0xd69   : > { %v3504_v39 = vpop.f32.mrf.mxu1 }
 0xd6a   : > { %2770 = vst.msk [vmem:[%s5527_s11] sm:$0xff] %vm466_vm0, %v2708_v62  ;;  %v2719_v32 = vadd.f32 %v3504_v39, %v3053_v25 }
 0xd6b   : > { %v2710_v21 = vpop.f32.mrf.mxu1 }
 0xd6c   : > { %2773 = vst.msk [vmem:[%s5527_s11 + $0x18] sm:$0xff] %vm466_vm0, %v2719_v32  ;;  %v2711_v4 = vadd.f32 %v3053_v25, %v2710_v21 }
 0xd6d   : > { %v3507_v28 = vpop.f32.mrf.mxu1 }
 0xd6e   : > { %2771 = vst.msk [vmem:[%s5527_s11 + $0x8] sm:$0xff] %vm466_vm0, %v2711_v4  ;;  %v2732_v34 = vadd.f32 %v3507_v28, %v3053_v25 }
 0xd6f   : > { %v2723_v43 = vpop.f32.mrf.mxu1 }
 0xd70   : > { %2776 = vst.msk [vmem:[%s5527_s11 + $0x30] sm:$0xff] %vm466_vm0, %v2732_v34  ;;  %v2724_v30 = vadd.f32 %v3053_v25, %v2723_v43 }
 0xd71   : > { %v3508_v9 = vpop.f32.mrf.mxu1 }
 0xd72   : > { %2774 = vst.msk [vmem:[%s5527_s11 + $0x20] sm:$0xff] %vm466_vm0, %v2724_v30  ;;  %v2735_v40 = vadd.f32 %v3508_v9, %v3053_v25 }
 0xd73   : > { %v2726_v51 = vpop.f32.mrf.mxu1 }
 0xd74   : > { %2777 = vst.msk [vmem:[%s5527_s11 + $0x38] sm:$0xff] %vm466_vm0, %v2735_v40  ;;  %v2727_v15 = vadd.f32 %v3053_v25, %v2726_v51 }
 0xd75   : > { %v3511_v33 = vpop.f32.mrf.mxu1 }
 0xd76   : > { %2775 = vst.msk [vmem:[%s5527_s11 + $0x28] sm:$0xff] %vm466_vm0, %v2727_v15  ;;  %v2748_v56 = vadd.f32 %v3511_v33, %v3053_v25 }
 0xd77   : > { %v2739_v16 = vpop.f32.mrf.mxu1 }
 0xd78   : > { %2780 = vst.msk [vmem:[%s5527_s11 + $0x50] sm:$0xff] %vm466_vm0, %v2748_v56  ;;  %v2740_v63 = vadd.f32 %v3053_v25, %v2739_v16 }
 0xd79   : > { %v3512_v53 = vpop.f32.mrf.mxu1 }
 0xd7a   : > { %2778 = vst.msk [vmem:[%s5527_s11 + $0x40] sm:$0xff] %vm466_vm0, %v2740_v63  ;;  %v2751_v26 = vadd.f32 %v3512_v53, %v3053_v25 }
 0xd7b   : > { %v2742_v48 = vpop.f32.mrf.mxu1 }
 0xd7c   : > { %2781 = vst.msk [vmem:[%s5527_s11 + $0x58] sm:$0xff] %vm466_vm0, %v2751_v26  ;;  %v2743_v22 = vadd.f32 %v3053_v25, %v2742_v48 }
 0xd7e   : > { %2779 = vst.msk [vmem:[%s5527_s11 + $0x48] sm:$0xff] %vm466_vm0, %v2743_v22 }
 0xda4   : > { %v3515_v41 = vpop.f32.mrf.mxu1 }
 0xda5   : > { %v2764_v36 = vadd.f32 %v3515_v41, %v3053_v25 }
 0xda6   : > { %v2755_v31 = vpop.f32.mrf.mxu1 }
 0xda7   : > { %2784 = vst.msk [vmem:[%s5527_s11 + $0x70] sm:$0xff] %vm466_vm0, %v2764_v36  ;;  %v2756_v49 = vadd.f32 %v3053_v25, %v2755_v31 }
 0xda8   : > { %v3516_v58 = vpop.f32.mrf.mxu1 }
 0xda9   : > { %2782 = vst.msk [vmem:[%s5527_s11 + $0x60] sm:$0xff] %vm466_vm0, %v2756_v49  ;;  %v2767_v5 = vadd.f32 %v3516_v58, %v3053_v25 }
 0xdaa   : > { %v2758_v37 = vpop.f32.mrf.mxu1 }
 0xdab   : > { %2785 = vst.msk [vmem:[%s5527_s11 + $0x78] sm:$0xff] %vm466_vm0, %v2767_v5  ;;  %v2759_v11 = vadd.f32 %v3053_v25, %v2758_v37 }
 0xdad   : > { %2783 = vst.msk [vmem:[%s5527_s11 + $0x68] sm:$0xff] %vm466_vm0, %v2759_v11 }
 0xdae PF: > { %p3571_p4 = scmp.ge.s32.totalorder %s3987_s10, 2  ;;  %s2834_s15 = sand.u32 1, %s3967_s27  }
 0xdaf   : > { %s2835_s24 = scalar_lea.sflag [#allocation3], %s2834_s15 }
 0xdb0   : > { %p3568_p0 = pnand %p3571_p4, %p4097_p8 }
 0xdb2   : > { %p3569_p1 = pneg %p3568_p0 }
 0xdb4   : > { %3962 = dma.done.wait (%p3569_p1), %s2835_s24, 8192  }
 0xdb5   : > { %3964 = vsyncadd (%p3569_p1), %s2835_s24, 4294959104  ;;  %s22_s10 = sadd.s32 1, %s3987_s10   ;;  %s5684_s27 = smov %s3971_s28 }
 0xdb6   : > { %p19_p2 = scmp.ge.s32.totalorder %s22_s10, 4   ;;  %s5685_s28 = smov %s3975_s29 }
 0xdb7   : > { %s5686_s29 = smov %s4103_s18  ;;  %s5687_s30 = smov %s3983_s9 }
 0xdb8   : > { %s5688_s9 = smov %s5690_s13  ;;  %21 = sbr.rel (!%p19_p2) target bundleno = 4 (0x4), region = 107 }
 0xdbd   :  { %2840 = vsyncpa [#allocation3], 1 }
 0xdbe   :  { %2842 = vsyncpa [#allocation3 + $0x1], 1 }

</bundles_post_ra>
